<compile_context>
chip_gen: v7x
topology: tpu7x:2x2x1
jax: 0.10.0
libtpu: 0.0.40
codegen_flags: <defaults>
</compile_context>

<pallas_src>
import functools

import jax
import jax.numpy as jnp
from jax.experimental import pallas as pl
from jax.experimental.pallas import tpu as pltpu

H, W = 28, 28
KH, KW = 5, 5
PAD = 2
C_OUT = 32
K_TAPS = KH * KW          # 25
HW = H * W                # 784
FC_IN = C_OUT * HW        # 25088
FC_OUT = 10


# ----------------------------------------------------------------------------
# Fused kernel: conv-as-GEMM + bias + ReLU + (eval-mode dropout) + FC
# One grid step processes a block of `bb` images.
# ----------------------------------------------------------------------------
def _fused_kernel(bb, col_ref, cw_ref, cb_ref, fw_ref, fb_ref, out_ref, act_ref):
    # col_ref: (bb, 25, 784)   im2col patches, p = h*28 + w in lanes (lane-dense)
    # cw_ref : (32, 25)        conv weight, rows = out channel, cols = tap kh*5+kw
    # cb_ref : (32, 1)         conv bias
    # fw_ref : (32, 10, 784)   fc weight regrouped per conv channel (lane-dense)
    # fb_ref : (1, 10)         fc bias
    # out_ref: (bb, 10)        logits for this batch block
    # act_ref: VMEM scratch (bb, 32, 784) — conv activation in c-major flatten order
    cw = cw_ref[...]
    cb = cb_ref[...]

    # Conv2d(1->32, 5x5, pad=2) + bias + ReLU on the MXU:
    #   act[b, c, p] = relu( sum_k cw[c, k] * col[b, k, p] + cb[c] )
    for b in range(bb):
        a = jnp.dot(cw, col_ref[b], preferred_element_type=jnp.float32)  # (32, 784)
        act_ref[b] = jnp.maximum(a + cb, 0.0)

    # Dropout: nn.Dropout() is identity in eval mode (deterministic forward).
    # TODO(synk): training-mode dropout would use pltpu.prng_seed/prng_random_bits.

    # Linear(25088 -> 10): out[b, o] = sum_c sum_p act[b, c, p] * fw[c, o, p] + fb[o]
    # Done as 32 per-channel MXU matmuls so the FC weight stays lane-dense and the
    # activation never needs a lane-merging reshape.
    acc = jnp.zeros((bb, FC_OUT), jnp.float32)
    for c in range(C_OUT):
        a_c = act_ref[:, c, :]                     # (bb, 784)
        w_c = fw_ref[c]                            # (10, 784)
        acc = acc + jax.lax.dot_general(
            a_c, w_c, (((1,), (1,)), ((), ())),
            preferred_element_type=jnp.float32)    # (bb, 10)
    out_ref[...] = acc + fb_ref[...]


# ----------------------------------------------------------------------------
# Forward pass (accepts PyTorch-layout parameters)
# ----------------------------------------------------------------------------
def modified_net_forward(x, params, *, batch_block=8):
    # x: (N, 1, 28, 28) float32, NCHW (PyTorch convention)
    N = x.shape[0]
    bb = min(batch_block, N)
    n_pad = ((N + bb - 1) // bb) * bb

    # ---- host/XLA-side layout prep (pure data movement, done once) ----
    x2d = x[:, 0]                                                    # (N, 28, 28)
    xp = jnp.pad(x2d, ((0, 0), (PAD, PAD), (PAD, PAD)))              # (N, 32, 32)
    cols = [xp[:, kh:kh + H, kw:kw + W] for kh in range(KH) for kw in range(KW)]
    col = jnp.stack(cols, axis=1).reshape(N, K_TAPS, HW)             # (N, 25, 784)
    if n_pad != N:
        col = jnp.pad(col, ((0, n_pad - N), (0, 0), (0, 0)))

    # PyTorch layouts -> kernel layouts.
    cw = params["conv_w"].reshape(C_OUT, K_TAPS)                     # (32, 25)
    cb = params["conv_b"].reshape(C_OUT, 1)                          # (32, 1)
    # fc weight is (10, 25088) with feature order c*784 + h*28 + w.
    fw = jnp.transpose(params["fc_w"].reshape(FC_OUT, C_OUT, HW), (1, 0, 2))  # (32,10,784)
    fb = params["fc_b"].reshape(1, FC_OUT)                           # (1, 10)

    kernel = functools.partial(_fused_kernel, bb)
    out = pl.pallas_call(
        kernel,
        out_shape=jax.ShapeDtypeStruct((n_pad, FC_OUT), jnp.float32),
        grid=(n_pad // bb,),
        in_specs=[
            pl.BlockSpec((bb, K_TAPS, HW), lambda i: (i, 0, 0)),     # im2col block
            pl.BlockSpec((C_OUT, K_TAPS), lambda i: (0, 0)),         # conv weight
            pl.BlockSpec((C_OUT, 1), lambda i: (0, 0)),              # conv bias
            pl.BlockSpec((C_OUT, FC_OUT, HW), lambda i: (0, 0, 0)),  # fc weight (lane-dense)
            pl.BlockSpec((1, FC_OUT), lambda i: (0, 0)),             # fc bias
        ],
        out_specs=pl.BlockSpec((bb, FC_OUT), lambda i: (i, 0)),
        scratch_shapes=[pltpu.VMEM((bb, C_OUT, HW), jnp.float32)],
        compiler_params=pltpu.CompilerParams(
            dimension_semantics=("parallel",)),
    )(col, cw, cb, fw, fb)

    out = out[:N]
    return (None, None, None, None, out)


# ----------------------------------------------------------------------------
# Parameters in PyTorch layout + a pure-JAX reference for validation
# ----------------------------------------------------------------------------
def init_params(key):
    k1, k2, k3, k4 = jax.random.split(key, 4)
    conv_w = 0.05 * jax.random.normal(k1, (C_OUT, 1, KH, KW), jnp.float32)
    conv_b = 0.05 * jax.random.normal(k2, (C_OUT,), jnp.float32)
    fc_w = 0.01 * jax.random.normal(k3, (FC_OUT, FC_IN), jnp.float32)
    fc_b = 0.01 * jax.random.normal(k4, (FC_OUT,), jnp.float32)
    return {"conv_w": conv_w, "conv_b": conv_b, "fc_w": fc_w, "fc_b": fc_b}


def reference_forward(x, params):
    conv = jax.lax.conv_general_dilated(
        x, params["conv_w"], window_strides=(1, 1),
        padding=((PAD, PAD), (PAD, PAD)),
        dimension_numbers=("NCHW", "OIHW", "NCHW"))
    conv = jnp.maximum(conv + params["conv_b"][None, :, None, None], 0.0)
    flat = conv.reshape(x.shape[0], -1)
    return flat @ params["fc_w"].T + params["fc_b"][None, :]


if __name__ == "__main__":
    key = jax.random.PRNGKey(0)
    kx, kp = jax.random.split(key)
    x = jax.random.normal(kx, (2, 1, 28, 28), jnp.float32)
    params = init_params(kp)

    outs = modified_net_forward(x, params)
    logits = jax.block_until_ready(outs[4])
    assert logits.shape == (2, FC_OUT) and logits.dtype == jnp.float32

    ref = jax.block_until_ready(reference_forward(x, params))
    max_err = float(jnp.max(jnp.abs(logits - ref)))
    assert jnp.allclose(logits, ref, atol=1e-2, rtol=1e-2), max_err
    print("KERNEL_OK")
</pallas_src>

<mosaic_0001>
module attributes {stable_mosaic.version = 11 : i64} {
  func.func @_fused_kernel(%arg0: i32, %arg1: memref<2x25x784xf32, #tpu.memory_space<vmem>>, %arg2: memref<32x25xf32, #tpu.memory_space<vmem>>, %arg3: memref<32x1xf32, #tpu.memory_space<vmem>>, %arg4: memref<32x10x784xf32, #tpu.memory_space<vmem>>, %arg5: memref<1x10xf32, #tpu.memory_space<vmem>>, %arg6: memref<2x10xf32, #tpu.memory_space<vmem>>, %arg7: memref<2x32x784xf32, #tpu.memory_space<vmem>>) attributes {dimension_semantics = [#tpu.dimension_semantics<parallel>], iteration_bounds = array<i64: 1>, scalar_prefetch = 0 : i64, scratch_operands = 1 : i64, tpu.core_type = #tpu.core_type<tc>, window_params = [{transform_indices = @transform_0, window_bounds = array<i64: 2, 25, 784>}, {pipeline_mode = #tpu.pipeline_mode<synchronous>, transform_indices = @transform_1, window_bounds = array<i64: 32, 25>}, {pipeline_mode = #tpu.pipeline_mode<synchronous>, transform_indices = @transform_2, window_bounds = array<i64: 32, 1>}, {pipeline_mode = #tpu.pipeline_mode<synchronous>, transform_indices = @transform_3, window_bounds = array<i64: 32, 10, 784>}, {pipeline_mode = #tpu.pipeline_mode<synchronous>, transform_indices = @transform_4, window_bounds = array<i64: 1, 10>}, {transform_indices = @transform_5, window_bounds = array<i64: 2, 10>}]} {
    %c0 = arith.constant 0 : index
    %c0_0 = arith.constant 0 : index
    %0 = vector.load %arg2[%c0, %c0_0] : memref<32x25xf32, #tpu.memory_space<vmem>>, vector<32x25xf32>
    %c0_1 = arith.constant 0 : index
    %c0_2 = arith.constant 0 : index
    %1 = vector.load %arg3[%c0_1, %c0_2] : memref<32x1xf32, #tpu.memory_space<vmem>>, vector<32x1xf32>
    %c0_3 = arith.constant 0 : index
    %c0_4 = arith.constant 0 : index
    %c0_5 = arith.constant 0 : index
    %2 = vector.load %arg1[%c0_3, %c0_4, %c0_5] : memref<2x25x784xf32, #tpu.memory_space<vmem>>, vector<1x25x784xf32>
    %3 = vector.shape_cast %2 : vector<1x25x784xf32> to vector<25x784xf32>
    %cst = arith.constant dense<0.000000e+00> : vector<32x784xf32>
    %4 = tpu.matmul %0, %3, %cst {dimension_numbers = #tpu.dot_dimension_numbers<[1], [0], [0], [1], [0, 0, 1, 1], [], []>} : vector<32x25xf32>, vector<25x784xf32>, vector<32x784xf32> -> vector<32x784xf32>
    %5 = vector.broadcast %1 : vector<32x1xf32> to vector<32x784xf32>
    %6 = arith.addf %4, %5 : vector<32x784xf32>
    %cst_6 = arith.constant 0.000000e+00 : f32
    %7 = vector.broadcast %cst_6 : f32 to vector<32x784xf32>
    %8 = arith.maximumf %6, %7 : vector<32x784xf32>
    %c0_7 = arith.constant 0 : index
    %c0_8 = arith.constant 0 : index
    %c0_9 = arith.constant 0 : index
    %9 = vector.load %arg7[%c0_7, %c0_8, %c0_9] : memref<2x32x784xf32, #tpu.memory_space<vmem>>, vector<1x32x784xf32>
    %10 = vector.shape_cast %9 : vector<1x32x784xf32> to vector<32x784xf32>
    %11 = vector.shape_cast %8 : vector<32x784xf32> to vector<1x32x784xf32>
    tpu.vector_store %arg7[%c0_7, %c0_8, %c0_9], %11 {strides = array<i32>} : memref<2x32x784xf32, #tpu.memory_space<vmem>>, vector<1x32x784xf32>,
    %c1 = arith.constant 1 : index
    %c0_10 = arith.constant 0 : index
    %c0_11 = arith.constant 0 : index
    %12 = vector.load %arg1[%c1, %c0_10, %c0_11] : memref<2x25x784xf32, #tpu.memory_space<vmem>>, vector<1x25x784xf32>
    %13 = vector.shape_cast %12 : vector<1x25x784xf32> to vector<25x784xf32>
    %cst_12 = arith.constant dense<0.000000e+00> : vector<32x784xf32>
    %14 = tpu.matmul %0, %13, %cst_12 {dimension_numbers = #tpu.dot_dimension_numbers<[1], [0], [0], [1], [0, 0, 1, 1], [], []>} : vector<32x25xf32>, vector<25x784xf32>, vector<32x784xf32> -> vector<32x784xf32>
    %15 = vector.broadcast %1 : vector<32x1xf32> to vector<32x784xf32>
    %16 = arith.addf %14, %15 : vector<32x784xf32>
    %cst_13 = arith.constant 0.000000e+00 : f32
    %17 = vector.broadcast %cst_13 : f32 to vector<32x784xf32>
    %18 = arith.maximumf %16, %17 : vector<32x784xf32>
    %c1_14 = arith.constant 1 : index
    %c0_15 = arith.constant 0 : index
    %c0_16 = arith.constant 0 : index
    %19 = vector.load %arg7[%c1_14, %c0_15, %c0_16] : memref<2x32x784xf32, #tpu.memory_space<vmem>>, vector<1x32x784xf32>
    %20 = vector.shape_cast %19 : vector<1x32x784xf32> to vector<32x784xf32>
    %21 = vector.shape_cast %18 : vector<32x784xf32> to vector<1x32x784xf32>
    tpu.vector_store %arg7[%c1_14, %c0_15, %c0_16], %21 {strides = array<i32>} : memref<2x32x784xf32, #tpu.memory_space<vmem>>, vector<1x32x784xf32>,
    %cst_17 = arith.constant 0.000000e+00 : f32
    %22 = vector.broadcast %cst_17 : f32 to vector<2x10xf32>
    %c0_18 = arith.constant 0 : index
    %c0_19 = arith.constant 0 : index
    %c0_20 = arith.constant 0 : index
    %23 = vector.load %arg7[%c0_18, %c0_19, %c0_20] : memref<2x32x784xf32, #tpu.memory_space<vmem>>, vector<2x1x784xf32>
    %24 = vector.shape_cast %23 : vector<2x1x784xf32> to vector<2x784xf32>
    %c0_21 = arith.constant 0 : index
    %c0_22 = arith.constant 0 : index
    %c0_23 = arith.constant 0 : index
    %25 = vector.load %arg4[%c0_21, %c0_22, %c0_23] : memref<32x10x784xf32, #tpu.memory_space<vmem>>, vector<1x10x784xf32>
    %26 = vector.shape_cast %25 : vector<1x10x784xf32> to vector<10x784xf32>
    %cst_24 = arith.constant dense<0.000000e+00> : vector<2x10xf32>
    %27 = tpu.matmul %24, %26, %cst_24 {dimension_numbers = #tpu.dot_dimension_numbers<[1], [1], [0], [0], [0, 0, 1, 0], [], []>} : vector<2x784xf32>, vector<10x784xf32>, vector<2x10xf32> -> vector<2x10xf32>
    %28 = arith.addf %22, %27 : vector<2x10xf32>
    %c0_25 = arith.constant 0 : index
    %c1_26 = arith.constant 1 : index
    %c0_27 = arith.constant 0 : index
    %29 = vector.load %arg7[%c0_25, %c1_26, %c0_27] : memref<2x32x784xf32, #tpu.memory_space<vmem>>, vector<2x1x784xf32>
    %30 = vector.shape_cast %29 : vector<2x1x784xf32> to vector<2x784xf32>
    %c1_28 = arith.constant 1 : index
    %c0_29 = arith.constant 0 : index
    %c0_30 = arith.constant 0 : index
    %31 = vector.load %arg4[%c1_28, %c0_29, %c0_30] : memref<32x10x784xf32, #tpu.memory_space<vmem>>, vector<1x10x784xf32>
    %32 = vector.shape_cast %31 : vector<1x10x784xf32> to vector<10x784xf32>
    %cst_31 = arith.constant dense<0.000000e+00> : vector<2x10xf32>
    %33 = tpu.matmul %30, %32, %cst_31 {dimension_numbers = #tpu.dot_dimension_numbers<[1], [1], [0], [0], [0, 0, 1, 0], [], []>} : vector<2x784xf32>, vector<10x784xf32>, vector<2x10xf32> -> vector<2x10xf32>
    %34 = arith.addf %28, %33 : vector<2x10xf32>
    %c0_32 = arith.constant 0 : index
    %c2 = arith.constant 2 : index
    %c0_33 = arith.constant 0 : index
    %35 = vector.load %arg7[%c0_32, %c2, %c0_33] : memref<2x32x784xf32, #tpu.memory_space<vmem>>, vector<2x1x784xf32>
    %36 = vector.shape_cast %35 : vector<2x1x784xf32> to vector<2x784xf32>
    %c2_34 = arith.constant 2 : index
    %c0_35 = arith.constant 0 : index
    %c0_36 = arith.constant 0 : index
    %37 = vector.load %arg4[%c2_34, %c0_35, %c0_36] : memref<32x10x784xf32, #tpu.memory_space<vmem>>, vector<1x10x784xf32>
    %38 = vector.shape_cast %37 : vector<1x10x784xf32> to vector<10x784xf32>
    %cst_37 = arith.constant dense<0.000000e+00> : vector<2x10xf32>
    %39 = tpu.matmul %36, %38, %cst_37 {dimension_numbers = #tpu.dot_dimension_numbers<[1], [1], [0], [0], [0, 0, 1, 0], [], []>} : vector<2x784xf32>, vector<10x784xf32>, vector<2x10xf32> -> vector<2x10xf32>
    %40 = arith.addf %34, %39 : vector<2x10xf32>
    %c0_38 = arith.constant 0 : index
    %c3 = arith.constant 3 : index
    %c0_39 = arith.constant 0 : index
    %41 = vector.load %arg7[%c0_38, %c3, %c0_39] : memref<2x32x784xf32, #tpu.memory_space<vmem>>, vector<2x1x784xf32>
    %42 = vector.shape_cast %41 : vector<2x1x784xf32> to vector<2x784xf32>
    %c3_40 = arith.constant 3 : index
    %c0_41 = arith.constant 0 : index
    %c0_42 = arith.constant 0 : index
    %43 = vector.load %arg4[%c3_40, %c0_41, %c0_42] : memref<32x10x784xf32, #tpu.memory_space<vmem>>, vector<1x10x784xf32>
    %44 = vector.shape_cast %43 : vector<1x10x784xf32> to vector<10x784xf32>
    %cst_43 = arith.constant dense<0.000000e+00> : vector<2x10xf32>
    %45 = tpu.matmul %42, %44, %cst_43 {dimension_numbers = #tpu.dot_dimension_numbers<[1], [1], [0], [0], [0, 0, 1, 0], [], []>} : vector<2x784xf32>, vector<10x784xf32>, vector<2x10xf32> -> vector<2x10xf32>
    %46 = arith.addf %40, %45 : vector<2x10xf32>
    %c0_44 = arith.constant 0 : index
    %c4 = arith.constant 4 : index
    %c0_45 = arith.constant 0 : index
    %47 = vector.load %arg7[%c0_44, %c4, %c0_45] : memref<2x32x784xf32, #tpu.memory_space<vmem>>, vector<2x1x784xf32>
    %48 = vector.shape_cast %47 : vector<2x1x784xf32> to vector<2x784xf32>
    %c4_46 = arith.constant 4 : index
    %c0_47 = arith.constant 0 : index
    %c0_48 = arith.constant 0 : index
    %49 = vector.load %arg4[%c4_46, %c0_47, %c0_48] : memref<32x10x784xf32, #tpu.memory_space<vmem>>, vector<1x10x784xf32>
    %50 = vector.shape_cast %49 : vector<1x10x784xf32> to vector<10x784xf32>
    %cst_49 = arith.constant dense<0.000000e+00> : vector<2x10xf32>
    %51 = tpu.matmul %48, %50, %cst_49 {dimension_numbers = #tpu.dot_dimension_numbers<[1], [1], [0], [0], [0, 0, 1, 0], [], []>} : vector<2x784xf32>, vector<10x784xf32>, vector<2x10xf32> -> vector<2x10xf32>
    %52 = arith.addf %46, %51 : vector<2x10xf32>
    %c0_50 = arith.constant 0 : index
    %c5 = arith.constant 5 : index
    %c0_51 = arith.constant 0 : index
    %53 = vector.load %arg7[%c0_50, %c5, %c0_51] : memref<2x32x784xf32, #tpu.memory_space<vmem>>, vector<2x1x784xf32>
    %54 = vector.shape_cast %53 : vector<2x1x784xf32> to vector<2x784xf32>
    %c5_52 = arith.constant 5 : index
    %c0_53 = arith.constant 0 : index
    %c0_54 = arith.constant 0 : index
    %55 = vector.load %arg4[%c5_52, %c0_53, %c0_54] : memref<32x10x784xf32, #tpu.memory_space<vmem>>, vector<1x10x784xf32>
    %56 = vector.shape_cast %55 : vector<1x10x784xf32> to vector<10x784xf32>
    %cst_55 = arith.constant dense<0.000000e+00> : vector<2x10xf32>
    %57 = tpu.matmul %54, %56, %cst_55 {dimension_numbers = #tpu.dot_dimension_numbers<[1], [1], [0], [0], [0, 0, 1, 0], [], []>} : vector<2x784xf32>, vector<10x784xf32>, vector<2x10xf32> -> vector<2x10xf32>
    %58 = arith.addf %52, %57 : vector<2x10xf32>
    %c0_56 = arith.constant 0 : index
    %c6 = arith.constant 6 : index
    %c0_57 = arith.constant 0 : index
    %59 = vector.load %arg7[%c0_56, %c6, %c0_57] : memref<2x32x784xf32, #tpu.memory_space<vmem>>, vector<2x1x784xf32>
    %60 = vector.shape_cast %59 : vector<2x1x784xf32> to vector<2x784xf32>
    %c6_58 = arith.constant 6 : index
    %c0_59 = arith.constant 0 : index
    %c0_60 = arith.constant 0 : index
    %61 = vector.load %arg4[%c6_58, %c0_59, %c0_60] : memref<32x10x784xf32, #tpu.memory_space<vmem>>, vector<1x10x784xf32>
    %62 = vector.shape_cast %61 : vector<1x10x784xf32> to vector<10x784xf32>
    %cst_61 = arith.constant dense<0.000000e+00> : vector<2x10xf32>
    %63 = tpu.matmul %60, %62, %cst_61 {dimension_numbers = #tpu.dot_dimension_numbers<[1], [1], [0], [0], [0, 0, 1, 0], [], []>} : vector<2x784xf32>, vector<10x784xf32>, vector<2x10xf32> -> vector<2x10xf32>
    %64 = arith.addf %58, %63 : vector<2x10xf32>
    %c0_62 = arith.constant 0 : index
    %c7 = arith.constant 7 : index
    %c0_63 = arith.constant 0 : index
    %65 = vector.load %arg7[%c0_62, %c7, %c0_63] : memref<2x32x784xf32, #tpu.memory_space<vmem>>, vector<2x1x784xf32>
    %66 = vector.shape_cast %65 : vector<2x1x784xf32> to vector<2x784xf32>
    %c7_64 = arith.constant 7 : index
    %c0_65 = arith.constant 0 : index
    %c0_66 = arith.constant 0 : index
    %67 = vector.load %arg4[%c7_64, %c0_65, %c0_66] : memref<32x10x784xf32, #tpu.memory_space<vmem>>, vector<1x10x784xf32>
    %68 = vector.shape_cast %67 : vector<1x10x784xf32> to vector<10x784xf32>
    %cst_67 = arith.constant dense<0.000000e+00> : vector<2x10xf32>
    %69 = tpu.matmul %66, %68, %cst_67 {dimension_numbers = #tpu.dot_dimension_numbers<[1], [1], [0], [0], [0, 0, 1, 0], [], []>} : vector<2x784xf32>, vector<10x784xf32>, vector<2x10xf32> -> vector<2x10xf32>
    %70 = arith.addf %64, %69 : vector<2x10xf32>
    %c0_68 = arith.constant 0 : index
    %c8 = arith.constant 8 : index
    %c0_69 = arith.constant 0 : index
    %71 = vector.load %arg7[%c0_68, %c8, %c0_69] : memref<2x32x784xf32, #tpu.memory_space<vmem>>, vector<2x1x784xf32>
    %72 = vector.shape_cast %71 : vector<2x1x784xf32> to vector<2x784xf32>
    %c8_70 = arith.constant 8 : index
    %c0_71 = arith.constant 0 : index
    %c0_72 = arith.constant 0 : index
    %73 = vector.load %arg4[%c8_70, %c0_71, %c0_72] : memref<32x10x784xf32, #tpu.memory_space<vmem>>, vector<1x10x784xf32>
    %74 = vector.shape_cast %73 : vector<1x10x784xf32> to vector<10x784xf32>
    %cst_73 = arith.constant dense<0.000000e+00> : vector<2x10xf32>
    %75 = tpu.matmul %72, %74, %cst_73 {dimension_numbers = #tpu.dot_dimension_numbers<[1], [1], [0], [0], [0, 0, 1, 0], [], []>} : vector<2x784xf32>, vector<10x784xf32>, vector<2x10xf32> -> vector<2x10xf32>
    %76 = arith.addf %70, %75 : vector<2x10xf32>
    %c0_74 = arith.constant 0 : index
    %c9 = arith.constant 9 : index
    %c0_75 = arith.constant 0 : index
    %77 = vector.load %arg7[%c0_74, %c9, %c0_75] : memref<2x32x784xf32, #tpu.memory_space<vmem>>, vector<2x1x784xf32>
    %78 = vector.shape_cast %77 : vector<2x1x784xf32> to vector<2x784xf32>
    %c9_76 = arith.constant 9 : index
    %c0_77 = arith.constant 0 : index
    %c0_78 = arith.constant 0 : index
    %79 = vector.load %arg4[%c9_76, %c0_77, %c0_78] : memref<32x10x784xf32, #tpu.memory_space<vmem>>, vector<1x10x784xf32>
    %80 = vector.shape_cast %79 : vector<1x10x784xf32> to vector<10x784xf32>
    %cst_79 = arith.constant dense<0.000000e+00> : vector<2x10xf32>
    %81 = tpu.matmul %78, %80, %cst_79 {dimension_numbers = #tpu.dot_dimension_numbers<[1], [1], [0], [0], [0, 0, 1, 0], [], []>} : vector<2x784xf32>, vector<10x784xf32>, vector<2x10xf32> -> vector<2x10xf32>
    %82 = arith.addf %76, %81 : vector<2x10xf32>
    %c0_80 = arith.constant 0 : index
    %c10 = arith.constant 10 : index
    %c0_81 = arith.constant 0 : index
    %83 = vector.load %arg7[%c0_80, %c10, %c0_81] : memref<2x32x784xf32, #tpu.memory_space<vmem>>, vector<2x1x784xf32>
    %84 = vector.shape_cast %83 : vector<2x1x784xf32> to vector<2x784xf32>
    %c10_82 = arith.constant 10 : index
    %c0_83 = arith.constant 0 : index
    %c0_84 = arith.constant 0 : index
    %85 = vector.load %arg4[%c10_82, %c0_83, %c0_84] : memref<32x10x784xf32, #tpu.memory_space<vmem>>, vector<1x10x784xf32>
    %86 = vector.shape_cast %85 : vector<1x10x784xf32> to vector<10x784xf32>
    %cst_85 = arith.constant dense<0.000000e+00> : vector<2x10xf32>
    %87 = tpu.matmul %84, %86, %cst_85 {dimension_numbers = #tpu.dot_dimension_numbers<[1], [1], [0], [0], [0, 0, 1, 0], [], []>} : vector<2x784xf32>, vector<10x784xf32>, vector<2x10xf32> -> vector<2x10xf32>
    %88 = arith.addf %82, %87 : vector<2x10xf32>
    %c0_86 = arith.constant 0 : index
    %c11 = arith.constant 11 : index
    %c0_87 = arith.constant 0 : index
    %89 = vector.load %arg7[%c0_86, %c11, %c0_87] : memref<2x32x784xf32, #tpu.memory_space<vmem>>, vector<2x1x784xf32>
    %90 = vector.shape_cast %89 : vector<2x1x784xf32> to vector<2x784xf32>
    %c11_88 = arith.constant 11 : index
    %c0_89 = arith.constant 0 : index
    %c0_90 = arith.constant 0 : index
    %91 = vector.load %arg4[%c11_88, %c0_89, %c0_90] : memref<32x10x784xf32, #tpu.memory_space<vmem>>, vector<1x10x784xf32>
    %92 = vector.shape_cast %91 : vector<1x10x784xf32> to vector<10x784xf32>
    %cst_91 = arith.constant dense<0.000000e+00> : vector<2x10xf32>
    %93 = tpu.matmul %90, %92, %cst_91 {dimension_numbers = #tpu.dot_dimension_numbers<[1], [1], [0], [0], [0, 0, 1, 0], [], []>} : vector<2x784xf32>, vector<10x784xf32>, vector<2x10xf32> -> vector<2x10xf32>
    %94 = arith.addf %88, %93 : vector<2x10xf32>
    %c0_92 = arith.constant 0 : index
    %c12 = arith.constant 12 : index
    %c0_93 = arith.constant 0 : index
    %95 = vector.load %arg7[%c0_92, %c12, %c0_93] : memref<2x32x784xf32, #tpu.memory_space<vmem>>, vector<2x1x784xf32>
    %96 = vector.shape_cast %95 : vector<2x1x784xf32> to vector<2x784xf32>
    %c12_94 = arith.constant 12 : index
    %c0_95 = arith.constant 0 : index
    %c0_96 = arith.constant 0 : index
    %97 = vector.load %arg4[%c12_94, %c0_95, %c0_96] : memref<32x10x784xf32, #tpu.memory_space<vmem>>, vector<1x10x784xf32>
    %98 = vector.shape_cast %97 : vector<1x10x784xf32> to vector<10x784xf32>
    %cst_97 = arith.constant dense<0.000000e+00> : vector<2x10xf32>
    %99 = tpu.matmul %96, %98, %cst_97 {dimension_numbers = #tpu.dot_dimension_numbers<[1], [1], [0], [0], [0, 0, 1, 0], [], []>} : vector<2x784xf32>, vector<10x784xf32>, vector<2x10xf32> -> vector<2x10xf32>
    %100 = arith.addf %94, %99 : vector<2x10xf32>
    %c0_98 = arith.constant 0 : index
    %c13 = arith.constant 13 : index
    %c0_99 = arith.constant 0 : index
    %101 = vector.load %arg7[%c0_98, %c13, %c0_99] : memref<2x32x784xf32, #tpu.memory_space<vmem>>, vector<2x1x784xf32>
    %102 = vector.shape_cast %101 : vector<2x1x784xf32> to vector<2x784xf32>
    %c13_100 = arith.constant 13 : index
    %c0_101 = arith.constant 0 : index
    %c0_102 = arith.constant 0 : index
    %103 = vector.load %arg4[%c13_100, %c0_101, %c0_102] : memref<32x10x784xf32, #tpu.memory_space<vmem>>, vector<1x10x784xf32>
    %104 = vector.shape_cast %103 : vector<1x10x784xf32> to vector<10x784xf32>
    %cst_103 = arith.constant dense<0.000000e+00> : vector<2x10xf32>
    %105 = tpu.matmul %102, %104, %cst_103 {dimension_numbers = #tpu.dot_dimension_numbers<[1], [1], [0], [0], [0, 0, 1, 0], [], []>} : vector<2x784xf32>, vector<10x784xf32>, vector<2x10xf32> -> vector<2x10xf32>
    %106 = arith.addf %100, %105 : vector<2x10xf32>
    %c0_104 = arith.constant 0 : index
    %c14 = arith.constant 14 : index
    %c0_105 = arith.constant 0 : index
    %107 = vector.load %arg7[%c0_104, %c14, %c0_105] : memref<2x32x784xf32, #tpu.memory_space<vmem>>, vector<2x1x784xf32>
    %108 = vector.shape_cast %107 : vector<2x1x784xf32> to vector<2x784xf32>
    %c14_106 = arith.constant 14 : index
    %c0_107 = arith.constant 0 : index
    %c0_108 = arith.constant 0 : index
    %109 = vector.load %arg4[%c14_106, %c0_107, %c0_108] : memref<32x10x784xf32, #tpu.memory_space<vmem>>, vector<1x10x784xf32>
    %110 = vector.shape_cast %109 : vector<1x10x784xf32> to vector<10x784xf32>
    %cst_109 = arith.constant dense<0.000000e+00> : vector<2x10xf32>
    %111 = tpu.matmul %108, %110, %cst_109 {dimension_numbers = #tpu.dot_dimension_numbers<[1], [1], [0], [0], [0, 0, 1, 0], [], []>} : vector<2x784xf32>, vector<10x784xf32>, vector<2x10xf32> -> vector<2x10xf32>
    %112 = arith.addf %106, %111 : vector<2x10xf32>
    %c0_110 = arith.constant 0 : index
    %c15 = arith.constant 15 : index
    %c0_111 = arith.constant 0 : index
    %113 = vector.load %arg7[%c0_110, %c15, %c0_111] : memref<2x32x784xf32, #tpu.memory_space<vmem>>, vector<2x1x784xf32>
    %114 = vector.shape_cast %113 : vector<2x1x784xf32> to vector<2x784xf32>
    %c15_112 = arith.constant 15 : index
    %c0_113 = arith.constant 0 : index
    %c0_114 = arith.constant 0 : index
    %115 = vector.load %arg4[%c15_112, %c0_113, %c0_114] : memref<32x10x784xf32, #tpu.memory_space<vmem>>, vector<1x10x784xf32>
    %116 = vector.shape_cast %115 : vector<1x10x784xf32> to vector<10x784xf32>
    %cst_115 = arith.constant dense<0.000000e+00> : vector<2x10xf32>
    %117 = tpu.matmul %114, %116, %cst_115 {dimension_numbers = #tpu.dot_dimension_numbers<[1], [1], [0], [0], [0, 0, 1, 0], [], []>} : vector<2x784xf32>, vector<10x784xf32>, vector<2x10xf32> -> vector<2x10xf32>
    %118 = arith.addf %112, %117 : vector<2x10xf32>
    %c0_116 = arith.constant 0 : index
    %c16 = arith.constant 16 : index
    %c0_117 = arith.constant 0 : index
    %119 = vector.load %arg7[%c0_116, %c16, %c0_117] : memref<2x32x784xf32, #tpu.memory_space<vmem>>, vector<2x1x784xf32>
    %120 = vector.shape_cast %119 : vector<2x1x784xf32> to vector<2x784xf32>
    %c16_118 = arith.constant 16 : index
    %c0_119 = arith.constant 0 : index
    %c0_120 = arith.constant 0 : index
    %121 = vector.load %arg4[%c16_118, %c0_119, %c0_120] : memref<32x10x784xf32, #tpu.memory_space<vmem>>, vector<1x10x784xf32>
    %122 = vector.shape_cast %121 : vector<1x10x784xf32> to vector<10x784xf32>
    %cst_121 = arith.constant dense<0.000000e+00> : vector<2x10xf32>
    %123 = tpu.matmul %120, %122, %cst_121 {dimension_numbers = #tpu.dot_dimension_numbers<[1], [1], [0], [0], [0, 0, 1, 0], [], []>} : vector<2x784xf32>, vector<10x784xf32>, vector<2x10xf32> -> vector<2x10xf32>
    %124 = arith.addf %118, %123 : vector<2x10xf32>
    %c0_122 = arith.constant 0 : index
    %c17 = arith.constant 17 : index
    %c0_123 = arith.constant 0 : index
    %125 = vector.load %arg7[%c0_122, %c17, %c0_123] : memref<2x32x784xf32, #tpu.memory_space<vmem>>, vector<2x1x784xf32>
    %126 = vector.shape_cast %125 : vector<2x1x784xf32> to vector<2x784xf32>
    %c17_124 = arith.constant 17 : index
    %c0_125 = arith.constant 0 : index
    %c0_126 = arith.constant 0 : index
    %127 = vector.load %arg4[%c17_124, %c0_125, %c0_126] : memref<32x10x784xf32, #tpu.memory_space<vmem>>, vector<1x10x784xf32>
    %128 = vector.shape_cast %127 : vector<1x10x784xf32> to vector<10x784xf32>
    %cst_127 = arith.constant dense<0.000000e+00> : vector<2x10xf32>
    %129 = tpu.matmul %126, %128, %cst_127 {dimension_numbers = #tpu.dot_dimension_numbers<[1], [1], [0], [0], [0, 0, 1, 0], [], []>} : vector<2x784xf32>, vector<10x784xf32>, vector<2x10xf32> -> vector<2x10xf32>
    %130 = arith.addf %124, %129 : vector<2x10xf32>
    %c0_128 = arith.constant 0 : index
    %c18 = arith.constant 18 : index
    %c0_129 = arith.constant 0 : index
    %131 = vector.load %arg7[%c0_128, %c18, %c0_129] : memref<2x32x784xf32, #tpu.memory_space<vmem>>, vector<2x1x784xf32>
    %132 = vector.shape_cast %131 : vector<2x1x784xf32> to vector<2x784xf32>
    %c18_130 = arith.constant 18 : index
    %c0_131 = arith.constant 0 : index
    %c0_132 = arith.constant 0 : index
    %133 = vector.load %arg4[%c18_130, %c0_131, %c0_132] : memref<32x10x784xf32, #tpu.memory_space<vmem>>, vector<1x10x784xf32>
    %134 = vector.shape_cast %133 : vector<1x10x784xf32> to vector<10x784xf32>
    %cst_133 = arith.constant dense<0.000000e+00> : vector<2x10xf32>
    %135 = tpu.matmul %132, %134, %cst_133 {dimension_numbers = #tpu.dot_dimension_numbers<[1], [1], [0], [0], [0, 0, 1, 0], [], []>} : vector<2x784xf32>, vector<10x784xf32>, vector<2x10xf32> -> vector<2x10xf32>
    %136 = arith.addf %130, %135 : vector<2x10xf32>
    %c0_134 = arith.constant 0 : index
    %c19 = arith.constant 19 : index
    %c0_135 = arith.constant 0 : index
    %137 = vector.load %arg7[%c0_134, %c19, %c0_135] : memref<2x32x784xf32, #tpu.memory_space<vmem>>, vector<2x1x784xf32>
    %138 = vector.shape_cast %137 : vector<2x1x784xf32> to vector<2x784xf32>
    %c19_136 = arith.constant 19 : index
    %c0_137 = arith.constant 0 : index
    %c0_138 = arith.constant 0 : index
    %139 = vector.load %arg4[%c19_136, %c0_137, %c0_138] : memref<32x10x784xf32, #tpu.memory_space<vmem>>, vector<1x10x784xf32>
    %140 = vector.shape_cast %139 : vector<1x10x784xf32> to vector<10x784xf32>
    %cst_139 = arith.constant dense<0.000000e+00> : vector<2x10xf32>
    %141 = tpu.matmul %138, %140, %cst_139 {dimension_numbers = #tpu.dot_dimension_numbers<[1], [1], [0], [0], [0, 0, 1, 0], [], []>} : vector<2x784xf32>, vector<10x784xf32>, vector<2x10xf32> -> vector<2x10xf32>
    %142 = arith.addf %136, %141 : vector<2x10xf32>
    %c0_140 = arith.constant 0 : index
    %c20 = arith.constant 20 : index
    %c0_141 = arith.constant 0 : index
    %143 = vector.load %arg7[%c0_140, %c20, %c0_141] : memref<2x32x784xf32, #tpu.memory_space<vmem>>, vector<2x1x784xf32>
    %144 = vector.shape_cast %143 : vector<2x1x784xf32> to vector<2x784xf32>
    %c20_142 = arith.constant 20 : index
    %c0_143 = arith.constant 0 : index
    %c0_144 = arith.constant 0 : index
    %145 = vector.load %arg4[%c20_142, %c0_143, %c0_144] : memref<32x10x784xf32, #tpu.memory_space<vmem>>, vector<1x10x784xf32>
    %146 = vector.shape_cast %145 : vector<1x10x784xf32> to vector<10x784xf32>
    %cst_145 = arith.constant dense<0.000000e+00> : vector<2x10xf32>
    %147 = tpu.matmul %144, %146, %cst_145 {dimension_numbers = #tpu.dot_dimension_numbers<[1], [1], [0], [0], [0, 0, 1, 0], [], []>} : vector<2x784xf32>, vector<10x784xf32>, vector<2x10xf32> -> vector<2x10xf32>
    %148 = arith.addf %142, %147 : vector<2x10xf32>
    %c0_146 = arith.constant 0 : index
    %c21 = arith.constant 21 : index
    %c0_147 = arith.constant 0 : index
    %149 = vector.load %arg7[%c0_146, %c21, %c0_147] : memref<2x32x784xf32, #tpu.memory_space<vmem>>, vector<2x1x784xf32>
    %150 = vector.shape_cast %149 : vector<2x1x784xf32> to vector<2x784xf32>
    %c21_148 = arith.constant 21 : index
    %c0_149 = arith.constant 0 : index
    %c0_150 = arith.constant 0 : index
    %151 = vector.load %arg4[%c21_148, %c0_149, %c0_150] : memref<32x10x784xf32, #tpu.memory_space<vmem>>, vector<1x10x784xf32>
    %152 = vector.shape_cast %151 : vector<1x10x784xf32> to vector<10x784xf32>
    %cst_151 = arith.constant dense<0.000000e+00> : vector<2x10xf32>
    %153 = tpu.matmul %150, %152, %cst_151 {dimension_numbers = #tpu.dot_dimension_numbers<[1], [1], [0], [0], [0, 0, 1, 0], [], []>} : vector<2x784xf32>, vector<10x784xf32>, vector<2x10xf32> -> vector<2x10xf32>
    %154 = arith.addf %148, %153 : vector<2x10xf32>
    %c0_152 = arith.constant 0 : index
    %c22 = arith.constant 22 : index
    %c0_153 = arith.constant 0 : index
    %155 = vector.load %arg7[%c0_152, %c22, %c0_153] : memref<2x32x784xf32, #tpu.memory_space<vmem>>, vector<2x1x784xf32>
    %156 = vector.shape_cast %155 : vector<2x1x784xf32> to vector<2x784xf32>
    %c22_154 = arith.constant 22 : index
    %c0_155 = arith.constant 0 : index
    %c0_156 = arith.constant 0 : index
    %157 = vector.load %arg4[%c22_154, %c0_155, %c0_156] : memref<32x10x784xf32, #tpu.memory_space<vmem>>, vector<1x10x784xf32>
    %158 = vector.shape_cast %157 : vector<1x10x784xf32> to vector<10x784xf32>
    %cst_157 = arith.constant dense<0.000000e+00> : vector<2x10xf32>
    %159 = tpu.matmul %156, %158, %cst_157 {dimension_numbers = #tpu.dot_dimension_numbers<[1], [1], [0], [0], [0, 0, 1, 0], [], []>} : vector<2x784xf32>, vector<10x784xf32>, vector<2x10xf32> -> vector<2x10xf32>
    %160 = arith.addf %154, %159 : vector<2x10xf32>
    %c0_158 = arith.constant 0 : index
    %c23 = arith.constant 23 : index
    %c0_159 = arith.constant 0 : index
    %161 = vector.load %arg7[%c0_158, %c23, %c0_159] : memref<2x32x784xf32, #tpu.memory_space<vmem>>, vector<2x1x784xf32>
    %162 = vector.shape_cast %161 : vector<2x1x784xf32> to vector<2x784xf32>
    %c23_160 = arith.constant 23 : index
    %c0_161 = arith.constant 0 : index
    %c0_162 = arith.constant 0 : index
    %163 = vector.load %arg4[%c23_160, %c0_161, %c0_162] : memref<32x10x784xf32, #tpu.memory_space<vmem>>, vector<1x10x784xf32>
    %164 = vector.shape_cast %163 : vector<1x10x784xf32> to vector<10x784xf32>
    %cst_163 = arith.constant dense<0.000000e+00> : vector<2x10xf32>
    %165 = tpu.matmul %162, %164, %cst_163 {dimension_numbers = #tpu.dot_dimension_numbers<[1], [1], [0], [0], [0, 0, 1, 0], [], []>} : vector<2x784xf32>, vector<10x784xf32>, vector<2x10xf32> -> vector<2x10xf32>
    %166 = arith.addf %160, %165 : vector<2x10xf32>
    %c0_164 = arith.constant 0 : index
    %c24 = arith.constant 24 : index
    %c0_165 = arith.constant 0 : index
    %167 = vector.load %arg7[%c0_164, %c24, %c0_165] : memref<2x32x784xf32, #tpu.memory_space<vmem>>, vector<2x1x784xf32>
    %168 = vector.shape_cast %167 : vector<2x1x784xf32> to vector<2x784xf32>
    %c24_166 = arith.constant 24 : index
    %c0_167 = arith.constant 0 : index
    %c0_168 = arith.constant 0 : index
    %169 = vector.load %arg4[%c24_166, %c0_167, %c0_168] : memref<32x10x784xf32, #tpu.memory_space<vmem>>, vector<1x10x784xf32>
    %170 = vector.shape_cast %169 : vector<1x10x784xf32> to vector<10x784xf32>
    %cst_169 = arith.constant dense<0.000000e+00> : vector<2x10xf32>
    %171 = tpu.matmul %168, %170, %cst_169 {dimension_numbers = #tpu.dot_dimension_numbers<[1], [1], [0], [0], [0, 0, 1, 0], [], []>} : vector<2x784xf32>, vector<10x784xf32>, vector<2x10xf32> -> vector<2x10xf32>
    %172 = arith.addf %166, %171 : vector<2x10xf32>
    %c0_170 = arith.constant 0 : index
    %c25 = arith.constant 25 : index
    %c0_171 = arith.constant 0 : index
    %173 = vector.load %arg7[%c0_170, %c25, %c0_171] : memref<2x32x784xf32, #tpu.memory_space<vmem>>, vector<2x1x784xf32>
    %174 = vector.shape_cast %173 : vector<2x1x784xf32> to vector<2x784xf32>
    %c25_172 = arith.constant 25 : index
    %c0_173 = arith.constant 0 : index
    %c0_174 = arith.constant 0 : index
    %175 = vector.load %arg4[%c25_172, %c0_173, %c0_174] : memref<32x10x784xf32, #tpu.memory_space<vmem>>, vector<1x10x784xf32>
    %176 = vector.shape_cast %175 : vector<1x10x784xf32> to vector<10x784xf32>
    %cst_175 = arith.constant dense<0.000000e+00> : vector<2x10xf32>
    %177 = tpu.matmul %174, %176, %cst_175 {dimension_numbers = #tpu.dot_dimension_numbers<[1], [1], [0], [0], [0, 0, 1, 0], [], []>} : vector<2x784xf32>, vector<10x784xf32>, vector<2x10xf32> -> vector<2x10xf32>
    %178 = arith.addf %172, %177 : vector<2x10xf32>
    %c0_176 = arith.constant 0 : index
    %c26 = arith.constant 26 : index
    %c0_177 = arith.constant 0 : index
    %179 = vector.load %arg7[%c0_176, %c26, %c0_177] : memref<2x32x784xf32, #tpu.memory_space<vmem>>, vector<2x1x784xf32>
    %180 = vector.shape_cast %179 : vector<2x1x784xf32> to vector<2x784xf32>
    %c26_178 = arith.constant 26 : index
    %c0_179 = arith.constant 0 : index
    %c0_180 = arith.constant 0 : index
    %181 = vector.load %arg4[%c26_178, %c0_179, %c0_180] : memref<32x10x784xf32, #tpu.memory_space<vmem>>, vector<1x10x784xf32>
    %182 = vector.shape_cast %181 : vector<1x10x784xf32> to vector<10x784xf32>
    %cst_181 = arith.constant dense<0.000000e+00> : vector<2x10xf32>
    %183 = tpu.matmul %180, %182, %cst_181 {dimension_numbers = #tpu.dot_dimension_numbers<[1], [1], [0], [0], [0, 0, 1, 0], [], []>} : vector<2x784xf32>, vector<10x784xf32>, vector<2x10xf32> -> vector<2x10xf32>
    %184 = arith.addf %178, %183 : vector<2x10xf32>
    %c0_182 = arith.constant 0 : index
    %c27 = arith.constant 27 : index
    %c0_183 = arith.constant 0 : index
    %185 = vector.load %arg7[%c0_182, %c27, %c0_183] : memref<2x32x784xf32, #tpu.memory_space<vmem>>, vector<2x1x784xf32>
    %186 = vector.shape_cast %185 : vector<2x1x784xf32> to vector<2x784xf32>
    %c27_184 = arith.constant 27 : index
    %c0_185 = arith.constant 0 : index
    %c0_186 = arith.constant 0 : index
    %187 = vector.load %arg4[%c27_184, %c0_185, %c0_186] : memref<32x10x784xf32, #tpu.memory_space<vmem>>, vector<1x10x784xf32>
    %188 = vector.shape_cast %187 : vector<1x10x784xf32> to vector<10x784xf32>
    %cst_187 = arith.constant dense<0.000000e+00> : vector<2x10xf32>
    %189 = tpu.matmul %186, %188, %cst_187 {dimension_numbers = #tpu.dot_dimension_numbers<[1], [1], [0], [0], [0, 0, 1, 0], [], []>} : vector<2x784xf32>, vector<10x784xf32>, vector<2x10xf32> -> vector<2x10xf32>
    %190 = arith.addf %184, %189 : vector<2x10xf32>
    %c0_188 = arith.constant 0 : index
    %c28 = arith.constant 28 : index
    %c0_189 = arith.constant 0 : index
    %191 = vector.load %arg7[%c0_188, %c28, %c0_189] : memref<2x32x784xf32, #tpu.memory_space<vmem>>, vector<2x1x784xf32>
    %192 = vector.shape_cast %191 : vector<2x1x784xf32> to vector<2x784xf32>
    %c28_190 = arith.constant 28 : index
    %c0_191 = arith.constant 0 : index
    %c0_192 = arith.constant 0 : index
    %193 = vector.load %arg4[%c28_190, %c0_191, %c0_192] : memref<32x10x784xf32, #tpu.memory_space<vmem>>, vector<1x10x784xf32>
    %194 = vector.shape_cast %193 : vector<1x10x784xf32> to vector<10x784xf32>
    %cst_193 = arith.constant dense<0.000000e+00> : vector<2x10xf32>
    %195 = tpu.matmul %192, %194, %cst_193 {dimension_numbers = #tpu.dot_dimension_numbers<[1], [1], [0], [0], [0, 0, 1, 0], [], []>} : vector<2x784xf32>, vector<10x784xf32>, vector<2x10xf32> -> vector<2x10xf32>
    %196 = arith.addf %190, %195 : vector<2x10xf32>
    %c0_194 = arith.constant 0 : index
    %c29 = arith.constant 29 : index
    %c0_195 = arith.constant 0 : index
    %197 = vector.load %arg7[%c0_194, %c29, %c0_195] : memref<2x32x784xf32, #tpu.memory_space<vmem>>, vector<2x1x784xf32>
    %198 = vector.shape_cast %197 : vector<2x1x784xf32> to vector<2x784xf32>
    %c29_196 = arith.constant 29 : index
    %c0_197 = arith.constant 0 : index
    %c0_198 = arith.constant 0 : index
    %199 = vector.load %arg4[%c29_196, %c0_197, %c0_198] : memref<32x10x784xf32, #tpu.memory_space<vmem>>, vector<1x10x784xf32>
    %200 = vector.shape_cast %199 : vector<1x10x784xf32> to vector<10x784xf32>
    %cst_199 = arith.constant dense<0.000000e+00> : vector<2x10xf32>
    %201 = tpu.matmul %198, %200, %cst_199 {dimension_numbers = #tpu.dot_dimension_numbers<[1], [1], [0], [0], [0, 0, 1, 0], [], []>} : vector<2x784xf32>, vector<10x784xf32>, vector<2x10xf32> -> vector<2x10xf32>
    %202 = arith.addf %196, %201 : vector<2x10xf32>
    %c0_200 = arith.constant 0 : index
    %c30 = arith.constant 30 : index
    %c0_201 = arith.constant 0 : index
    %203 = vector.load %arg7[%c0_200, %c30, %c0_201] : memref<2x32x784xf32, #tpu.memory_space<vmem>>, vector<2x1x784xf32>
    %204 = vector.shape_cast %203 : vector<2x1x784xf32> to vector<2x784xf32>
    %c30_202 = arith.constant 30 : index
    %c0_203 = arith.constant 0 : index
    %c0_204 = arith.constant 0 : index
    %205 = vector.load %arg4[%c30_202, %c0_203, %c0_204] : memref<32x10x784xf32, #tpu.memory_space<vmem>>, vector<1x10x784xf32>
    %206 = vector.shape_cast %205 : vector<1x10x784xf32> to vector<10x784xf32>
    %cst_205 = arith.constant dense<0.000000e+00> : vector<2x10xf32>
    %207 = tpu.matmul %204, %206, %cst_205 {dimension_numbers = #tpu.dot_dimension_numbers<[1], [1], [0], [0], [0, 0, 1, 0], [], []>} : vector<2x784xf32>, vector<10x784xf32>, vector<2x10xf32> -> vector<2x10xf32>
    %208 = arith.addf %202, %207 : vector<2x10xf32>
    %c0_206 = arith.constant 0 : index
    %c31 = arith.constant 31 : index
    %c0_207 = arith.constant 0 : index
    %209 = vector.load %arg7[%c0_206, %c31, %c0_207] : memref<2x32x784xf32, #tpu.memory_space<vmem>>, vector<2x1x784xf32>
    %210 = vector.shape_cast %209 : vector<2x1x784xf32> to vector<2x784xf32>
    %c31_208 = arith.constant 31 : index
    %c0_209 = arith.constant 0 : index
    %c0_210 = arith.constant 0 : index
    %211 = vector.load %arg4[%c31_208, %c0_209, %c0_210] : memref<32x10x784xf32, #tpu.memory_space<vmem>>, vector<1x10x784xf32>
    %212 = vector.shape_cast %211 : vector<1x10x784xf32> to vector<10x784xf32>
    %cst_211 = arith.constant dense<0.000000e+00> : vector<2x10xf32>
    %213 = tpu.matmul %210, %212, %cst_211 {dimension_numbers = #tpu.dot_dimension_numbers<[1], [1], [0], [0], [0, 0, 1, 0], [], []>} : vector<2x784xf32>, vector<10x784xf32>, vector<2x10xf32> -> vector<2x10xf32>
    %214 = arith.addf %208, %213 : vector<2x10xf32>
    %c0_212 = arith.constant 0 : index
    %c0_213 = arith.constant 0 : index
    %215 = vector.load %arg5[%c0_212, %c0_213] : memref<1x10xf32, #tpu.memory_space<vmem>>, vector<1x10xf32>
    %216 = vector.broadcast %215 : vector<1x10xf32> to vector<2x10xf32>
    %217 = arith.addf %214, %216 : vector<2x10xf32>
    %c0_214 = arith.constant 0 : index
    %c0_215 = arith.constant 0 : index
    %218 = vector.load %arg6[%c0_214, %c0_215] : memref<2x10xf32, #tpu.memory_space<vmem>>, vector<2x10xf32>
    tpu.vector_store %arg6[%c0_214, %c0_215], %217 {strides = array<i32>} : memref<2x10xf32, #tpu.memory_space<vmem>>, vector<2x10xf32>,
    return
  }
  func.func @transform_0(%arg0: i32) -> (i32, i32, i32) {
    %c0_i32 = arith.constant 0 : i32
    %c0_i32_0 = arith.constant 0 : i32
    %c0_i32_1 = arith.constant 0 : i32
    return %arg0, %c0_i32, %c0_i32_0 : i32, i32, i32
  }
  func.func @transform_1(%arg0: i32) -> (i32, i32) {
    %c0_i32 = arith.constant 0 : i32
    %c0_i32_0 = arith.constant 0 : i32
    %c0_i32_1 = arith.constant 0 : i32
    return %c0_i32, %c0_i32_0 : i32, i32
  }
  func.func @transform_2(%arg0: i32) -> (i32, i32) {
    %c0_i32 = arith.constant 0 : i32
    %c0_i32_0 = arith.constant 0 : i32
    %c0_i32_1 = arith.constant 0 : i32
    return %c0_i32, %c0_i32_0 : i32, i32
  }
  func.func @transform_3(%arg0: i32) -> (i32, i32, i32) {
    %c0_i32 = arith.constant 0 : i32
    %c0_i32_0 = arith.constant 0 : i32
    %c0_i32_1 = arith.constant 0 : i32
    %c0_i32_2 = arith.constant 0 : i32
    return %c0_i32, %c0_i32_0, %c0_i32_1 : i32, i32, i32
  }
  func.func @transform_4(%arg0: i32) -> (i32, i32) {
    %c0_i32 = arith.constant 0 : i32
    %c0_i32_0 = arith.constant 0 : i32
    %c0_i32_1 = arith.constant 0 : i32
    return %c0_i32, %c0_i32_0 : i32, i32
  }
  func.func @transform_5(%arg0: i32) -> (i32, i32) {
    %c0_i32 = arith.constant 0 : i32
    %c0_i32_0 = arith.constant 0 : i32
    return %arg0, %c0_i32 : i32, i32
  }
}

</mosaic_0001>

<bundles_post_ra>
// kernel: tpu_custom_call.1
= control target key start
LH: loop header
LB: loop body
LE: loop exit
PB: predicated region body
PF: predicated region fallthrough
CT: control target
= control target key end

     0   :  { %vm90_vm0 = vcmask 1040384   ;;  %v14402_v7 = vmov 0.0   ;;  %v14403_v13 = vmov 0   ;;  %vm14404_vm1 = vmmov 1   ;;  %s16772_s0 = inlined_call_operand.vmem [shape: f32[2,25,784], index: 0, kind: input, shape index: {}]   ;;  %s16773_s1 = inlined_call_operand.vmem [shape: f32[32,25], index: 1, kind: input, shape index: {}]   ;;  %s16774_s2 = inlined_call_operand.vmem [shape: f32[32,1], index: 2, kind: input, shape index: {}]   ;;  %s16775_s3 = inlined_call_operand.vmem [shape: f32[32,10,784], index: 3, kind: input, shape index: {}]   ;;  %s16776_s4 = inlined_call_operand.vmem [shape: f32[1,10], index: 4, kind: input, shape index: {}]   ;;  %s16777_s5 = inlined_call_operand.hbm [shape: f32[2,10], index: 5, kind: output, shape index: {}]  }
   0x1   :  { %v30_v0 = vld [vmem:[%s16772_s0 + $0x8] sm:$0xff]  ;;  %v37_v1 = vld [vmem:[%s16772_s0 + $0x40] sm:$0xff]  ;;  %v32_v2 = vld [vmem:[%s16772_s0 + $0x18] sm:$0xff]  ;;  %176 = vmatprep.mubr.f32.mxu0 %v14402_v7  ;;  %265 = vmatprep.mubr.f32.mxu1 %v14402_v7  ;;  %vm77_vm3 = vcmask 203776  }
   0x2   :  { %v13777_v3 = vpack.c.bf16 %v37_v1, %v30_v0  ;;  %v39_v4 = vld [vmem:[%s16772_s0 + $0x50] sm:$0xff]  ;;  %v29_v5 = vld [vmem:[%s16772_s0] sm:$0xff]  ;;  %v36_v6 = vld [vmem:[%s16772_s0 + $0x38] sm:$0xff]  ;;  %14376 = vset.pattern.permute.xlu0 %v14403_v13  ;;  %14377 = vset.pattern.permute.xlu1 %v14403_v13 }
   0x3   :  { %v13787_v8 = vpack.c.bf16 %v39_v4, %v32_v2  ;;  %v13779_v9 = vpack.c.bf16 %v36_v6, %v29_v5  ;;  %v31_v10 = vld [vmem:[%s16772_s0 + $0x10] sm:$0xff]  ;;  %v38_v11 = vld [vmem:[%s16772_s0 + $0x48] sm:$0xff]  ;;  %v44_v12 = vld [vmem:[%s16772_s0 + $0x78] sm:$0xff] }
   0x4   :  { %13778 = vmatprep.subr.bf16.mxu0 %v13777_v3  ;;  %v13789_v14 = vpack.c.bf16 %v38_v11, %v31_v10  ;;  %v51_v15 = vld [vmem:[%s16772_s0 + $0xb0] sm:$0x1]  ;;  %vm14472_vm2 = vmpackc.low %vm90_vm0, %vm14404_vm1  ;;  %v46_v17 = vld [vmem:[%s16772_s0 + $0x88] sm:$0xff] }
   0x5   :  { %13788 = vmatprep.subr.bf16.mxu1 %v13787_v8  ;;  %13780 = vmatpush1.bf16.msra.mxu0 %v13779_v9  ;;  %v13781_v18 = vpack.c.bf16 %v51_v15, %v44_v12  ;;  %v53_v19 = vld [vmem:[%s16772_s0 + $0xc0] sm:$0x1]  ;;  %v43_v20 = vld [vmem:[%s16772_s0 + $0x70] sm:$0xff]  ;;  %v50_v21 = vld [vmem:[%s16772_s0 + $0xa8] sm:$0x1] }
   0x6   :  { %13790 = vmatpush1.bf16.msra.mxu1 %v13789_v14  ;;  %v13791_v22 = vpack.c.bf16 %v53_v19, %v46_v17  ;;  %v13784_v23 = vpack.c.bf16 %v50_v21, %v43_v20  ;;  %v45_v24 = vld [vmem:[%s16772_s0 + $0x80] sm:$0xff]  ;;  %v52_v25 = vld [vmem:[%s16772_s0 + $0xb8] sm:$0x1]  ;;  %v34_v27 = vld [vmem:[%s16772_s0 + $0x28] sm:$0xff] }
   0x7   :  { %13783 = vmatprep.subr.msk.bf16.mxu0 %vm14472_vm2, %v13781_v18  ;;  %v13794_v26 = vpack.c.bf16 %v52_v25, %v45_v24  ;;  %v41_v28 = vld [vmem:[%s16772_s0 + $0x60] sm:$0xff]  ;;  %v40_v32 = vld [vmem:[%s16772_s0 + $0x58] sm:$0xff]  ;;  %v55_v35 = vld [vmem:[%s16772_s0 + $0xd0] sm:$0x1] }
   0x8   :  { %v33_v29 = vld [vmem:[%s16772_s0 + $0x20] sm:$0xff]  ;;  %13793 = vmatprep.subr.msk.bf16.mxu1 %vm14472_vm2, %v13791_v22  ;;  %v13797_v31 = vpack.c.bf16 %v41_v28, %v34_v27  ;;  %v48_v34 = vld [vmem:[%s16772_s0 + $0x98] sm:$0xff]  ;;  %v35_v36 = vld [vmem:[%s16772_s0 + $0x30] sm:$0xff] }
   0x9   :  { %v14510_v30 = vld [vmem:[%s16773_s1] sm:$0xff]  ;;  %13786 = vmatpush1.bf16.msk.msra.mxu0 %vm14472_vm2, %v13784_v23  ;;  %v13799_v33 = vpack.c.bf16 %v40_v32, %v33_v29  ;;  %v42_v37 = vld [vmem:[%s16772_s0 + $0x68] sm:$0xff]  ;;  %v13801_v38 = vpack.c.bf16 %v55_v35, %v48_v34  ;;  %v47_v40 = vld [vmem:[%s16772_s0 + $0x90] sm:$0xff] }
   0xa   :  { %13796 = vmatpush1.bf16.msk.msra.mxu1 %vm14472_vm2, %v13794_v26  ;;  %13798 = vmatprep.subr.bf16.mxu0 %v13797_v31  ;;  %v13807_v39 = vpack.c.bf16 %v42_v37, %v35_v36  ;;  %v54_v41 = vld [vmem:[%s16772_s0 + $0xc8] sm:$0x1]  ;;  %v49_v42 = vld [vmem:[%s16772_s0 + $0xa0] sm:$0xff]  ;;  %v56_v43 = vld [vmem:[%s16772_s0 + $0xd8] sm:$0x1] }
   0xb   :  { %v12834_v44 = vld [vmem:[%s16772_s0 + $0xf8] sm:$0xff]  ;;  %v14553_v45 = vld [vmem:[%s16773_s1 + $0x8] sm:$0xff]  ;;  %v12841_v46 = vld [vmem:[%s16772_s0 + $0x130] sm:$0xff]  ;;  %v13804_v47 = vpack.c.bf16 %v54_v41, %v47_v40  ;;  %v13811_v48 = vpack.c.bf16 %v56_v43, %v49_v42 }
   0xc   :  { %12810 = vmatmul.mubr.msk.f32.vlgmr.msra.gmra.mrb[0].mxu0 %vm77_vm3, %v14510_v30  ;;  %13808 = vmatprep.subr.bf16.mxu1 %v13807_v39  ;;  %v12832_v49 = vld [vmem:[%s16772_s0 + $0xe8] sm:$0xff]  ;;  %v12839_v50 = vld [vmem:[%s16772_s0 + $0x120] sm:$0xff]  ;;  %v13827_v51 = vpack.c.bf16 %v12841_v46, %v12834_v44  ;;  %v14576_v52 = vld [vmem:[%s16773_s1 + $0x10] sm:$0xff] }
   0xd   :  { %12816 = vmatmul.mubr.msk.f32.vlgmr.msra.gmra.mrb[0].mxu1 %vm77_vm3, %v14510_v30  ;;  %13800 = vmatpush1.bf16.msra.mxu0 %v13799_v33  ;;  %v13817_v53 = vpack.c.bf16 %v12839_v50, %v12832_v49  ;;  %v14593_v54 = vld [vmem:[%s16773_s1 + $0x18] sm:$0xff]  ;;  %v12833_v55 = vld [vmem:[%s16772_s0 + $0xf0] sm:$0xff]  ;;  %v25_v56 = vld [vmem:[%s16774_s2] sm:$0xff] }
   0xe   :  { %182 = vmatprep.mubr.f32.mxu0 %v14402_v7  ;;  %271 = vmatprep.mubr.f32.mxu1 %v14402_v7  ;;  %v12840_v57 = vld [vmem:[%s16772_s0 + $0x128] sm:$0xff]  ;;  %v27_v58 = vld [vmem:[%s16774_s2 + $0x10] sm:$0xff] }
   0xf   :  { %13803 = vmatprep.subr.msk.bf16.mxu0 %vm14472_vm2, %v13801_v38  ;;  %13810 = vmatpush3.bf16.msra.mxu1 %v13807_v39 }
  0x10   :  { %12811 = vmatmul.mubr.msk.f32.gmra.mrb[2].mxu0 %vm77_vm3, %v14553_v45  ;;  %13813 = vmatprep.subr.msk.bf16.mxu1 %vm14472_vm2, %v13811_v48 }
  0x11   :  { %12817 = vmatmul.mubr.msk.f32.gmra.mrb[2].mxu1 %vm77_vm3, %v14553_v45  ;;  %188 = vmatprep.mubr.f32.mxu0 %v14402_v7 }
  0x12   :  { %277 = vmatprep.mubr.f32.mxu1 %v14402_v7  ;;  %13806 = vmatpush1.bf16.msk.msra.mxu0 %vm14472_vm2, %v13804_v47 }
  0x13   :  { %13828 = vmatprep.subr.bf16.mxu0 %v13827_v51  ;;  %13816 = vmatpush3.bf16.msk.msra.mxu1 %vm14472_vm2, %v13811_v48 }
  0x14   :  { %12812 = vmatmul.mubr.msk.f32.gmra.mrb[4].mxu0 %vm77_vm3, %v14576_v52  ;;  %13818 = vmatprep.subr.bf16.mxu1 %v13817_v53 }
  0x15   :  { %12818 = vmatmul.mubr.msk.f32.gmra.mrb[4].mxu1 %vm77_vm3, %v14576_v52  ;;  %194 = vmatprep.mubr.f32.mxu0 %v14402_v7 }
  0x16   :  { %283 = vmatprep.mubr.f32.mxu1 %v14402_v7 }
  0x17   :  { %10 = vsyncpa [#allocation4], 0  ;;  %v12831_v59 = vld [vmem:[%s16772_s0 + $0xe0] sm:$0xff]  ;;  %v12838_v60 = vld [vmem:[%s16772_s0 + $0x118] sm:$0xff]  ;;  %59 = vperm.xlu0 %14376, %v25_v56   ;;  %69 = vperm.xlu1 %14377, %v27_v58   ;;  %v13829_v1 = vpack.c.bf16 %v12840_v57, %v12833_v55  ;;  %v14405_v47 = vmov 0.0|0.0   ;;  %vm498_vm4 = vcmask 130048  }
  0x18   :  { %v12846_v61 = vld [vmem:[%s16772_s0 + $0x158] sm:$0xff]  ;;  %12813 = vmatmul.mubr.msk.f32.gmra.mrb[6].mxu0 %vm77_vm3, %v14593_v54  ;;  %v12853_v62 = vld [vmem:[%s16772_s0 + $0x190] sm:$0x1]  ;;  %v26_v63 = vld [vmem:[%s16774_s2 + $0x8] sm:$0xff]  ;;  %v13819_v4 = vpack.c.bf16 %v12838_v60, %v12831_v59  ;;  %vm14407_vm6 = vmmov 0   ;;  %s14408_s17 = smov [#allocation3]  }
  0x19   :  { %v28_v0 = vld [vmem:[%s16774_s2 + $0x18] sm:$0xff]  ;;  %12819 = vmatmul.mubr.msk.f32.gmra.mrb[6].mxu1 %vm77_vm3, %v14593_v54  ;;  %354 = vmatprep.mubr.f32.mxu0 %v14402_v7  ;;  %v12848_v2 = vld [vmem:[%s16772_s0 + $0x168] sm:$0xff]  ;;  %v12855_v3 = vld [vmem:[%s16772_s0 + $0x1a0] sm:$0x1]  ;;  %v13821_v5 = vpack.c.bf16 %v12853_v62, %v12846_v61  ;;  %s12800_s18 = sshll.u32 %s14408_s17, 4  ;;  %vm12792_vm7 = vcmask 74752   ;;  %s12801_s18 = int_to_ptr.vmem [resolvable:$true] %s12800_s18 }
  0x1a   :  { %13533 = vmatprep.mubr.msk.f32.mxu1 %vm77_vm3, %v14510_v30  ;;  %v12845_v6 = vld [vmem:[%s16772_s0 + $0x150] sm:$0xff]  ;;  %v12852_v8 = vld [vmem:[%s16772_s0 + $0x188] sm:$0x1]  ;;  %v12847_v9 = vld [vmem:[%s16772_s0 + $0x160] sm:$0xff]  ;;  %v13831_v10 = vpack.c.bf16 %v12855_v3, %v12848_v2  ;;  %s14378_s19 = scalar_lea.vmem %s12801_s18, 32  ;;  %p14383_p1 = scmp.lt.s32.totalorder %s12801_s18, %s12801_s18 }
  0x1b   :  { %64 = vperm.xlu0 %14376, %v26_v63   ;;  %74 = vperm.xlu1 %14377, %v28_v0   ;;  %v12854_v11 = vld [vmem:[%s16772_s0 + $0x198] sm:$0x1]  ;;  %v12836_v12 = vld [vmem:[%s16772_s0 + $0x108] sm:$0xff]  ;;  %v12843_v13 = vld [vmem:[%s16772_s0 + $0x140] sm:$0xff]  ;;  %v13824_v17 = vpack.c.bf16 %v12852_v8, %v12845_v6  ;;  %p14379_p0 = scmp.ne.s32.totalorder %s12801_s18, %s14378_s19  ;;  %p14384_p2 = scmp.lt.s32.totalorder %s14378_s19, %s14378_s19 }
  0x1c   :  { %12822 = vmatmul.mubr.msk.f32.vlgmr.msra.gmra.mrb[8].mxu0 %vm77_vm3, %v14510_v30  ;;  %v12837_v14 = vld [vmem:[%s16772_s0 + $0x110] sm:$0xff]  ;;  %v12844_v15 = vld [vmem:[%s16772_s0 + $0x148] sm:$0xff]  ;;  %v13834_v18 = vpack.c.bf16 %v12854_v11, %v12847_v9  ;;  %v13837_v19 = vpack.c.bf16 %v12843_v13, %v12836_v12  ;;  %v12835_v20 = vld [vmem:[%s16772_s0 + $0x100] sm:$0xff] }
  0x1d   :  { %13534 = vmatmul.mubr.msk.f32.vlgmr.msra.gmra.mrb[8].mxu1 %vm77_vm3, %v14553_v45  ;;  %13830 = vmatpush1.bf16.msra.mxu0 %v13829_v1  ;;  %v12842_v21 = vld [vmem:[%s16772_s0 + $0x138] sm:$0xff]  ;;  %v13847_v22 = vpack.c.bf16 %v12844_v15, %v12837_v14  ;;  %v12857_v24 = vld [vmem:[%s16772_s0 + $0x1b0] sm:$0x1]  ;;  %v12856_v28 = vld [vmem:[%s16772_s0 + $0x1a8] sm:$0x1]  ;;  %p14385_p3 = por %p14384_p2, %p14383_p1 }
  0x1e   :  { %13820 = vmatpush1.bf16.msra.mxu1 %v13819_v4  ;;  %360 = vmatprep.mubr.f32.mxu0 %v14402_v7  ;;  %v12850_v23 = vld [vmem:[%s16772_s0 + $0x178] sm:$0xff]  ;;  %v13839_v25 = vpack.c.bf16 %v12842_v21, %v12835_v20  ;;  %v12849_v27 = vld [vmem:[%s16772_s0 + $0x170] sm:$0xff]  ;;  %v12851_v31 = vld [vmem:[%s16772_s0 + $0x180] sm:$0xff] }
  0x1f   :  { %13536 = vmatprep.mubr.msk.f32.mxu1 %vm77_vm3, %v14576_v52  ;;  %13823 = vmatprep.subr.msk.bf16.mxu1 %vm14472_vm2, %v13821_v5  ;;  %v13841_v26 = vpack.c.bf16 %v12857_v24, %v12850_v23  ;;  %v13844_v29 = vpack.c.bf16 %v12856_v28, %v12849_v27  ;;  %v12858_v32 = vld [vmem:[%s16772_s0 + $0x1b8] sm:$0x1]  ;;  %v12885_v16 = vld [vmem:[%s16775_s3 + $0x88] sm:$0xff]  ;;  %v12884_v34 = vld [vmem:[%s16775_s3 + $0x80] sm:$0xff]  ;;  %p14386_p4 = pnand %p14385_p3, %p14379_p0 }
  0x20   :  { %12823 = vmatmul.mubr.msk.f32.gmra.mrb[10].mxu0 %vm77_vm3, %v14553_v45  ;;  %13833 = vmatprep.subr.msk.bf16.mxu0 %vm14472_vm2, %v13831_v10  ;;  %v13851_v33 = vpack.c.bf16 %v12858_v32, %v12851_v31  ;;  %v12891_v36 = vld [vmem:[%s16775_s3 + $0xb8] sm:$0x3]  ;;  %v12890_v38 = vld [vmem:[%s16775_s3 + $0xb0] sm:$0x3]  ;;  %v12889_v42 = vld [vmem:[%s16775_s3 + $0xa8] sm:$0x3] }
  0x21   :  { %13537 = vmatmul.mubr.msk.f32.gmra.mrb[10].mxu1 %vm77_vm3, %v14593_v54  ;;  %366 = vmatprep.mubr.f32.mxu0 %v14402_v7  ;;  %v12883_v37 = vld [vmem:[%s16775_s3 + $0x78] sm:$0xff]  ;;  %v13863_v39 = vpack.c.bf16 %v12891_v36, %v12884_v34  ;;  %v12882_v41 = vld [vmem:[%s16775_s3 + $0x70] sm:$0xff]  ;;  %vm14901_vm5 = vmpackc.low %vm498_vm4, %vm498_vm4 }
  0x22   :  { %13826 = vmatpush1.bf16.msk.msra.mxu1 %vm14472_vm2, %v13824_v17  ;;  %635 = vmatprep.mubr.f32.mxu1 %v14402_v7  ;;  %v13857_v40 = vpack.c.bf16 %v12890_v38, %v12883_v37  ;;  %v13859_v43 = vpack.c.bf16 %v12889_v42, %v12882_v41  ;;  %v12887_v44 = vld [vmem:[%s16775_s3 + $0x98] sm:$0xff] }
  0x23   :  { %13836 = vmatpush1.bf16.msk.msra.mxu0 %vm14472_vm2, %v13834_v18  ;;  %13838 = vmatprep.subr.bf16.mxu1 %v13837_v19 }
  0x24   :  { %12824 = vmatmul.mubr.msk.f32.gmra.mrb[12].mxu0 %vm77_vm3, %v14576_v52  ;;  %13848 = vmatprep.subr.bf16.mxu0 %v13847_v22 }
  0x25   :  { %12861 = vmatmul.mubr.msk.f32.vlgmr.msra.gmra.mrb[12].mxu1 %vm77_vm3, %v14510_v30  ;;  %372 = vmatprep.mubr.f32.mxu0 %v14402_v7 }
  0x26   :  { %641 = vmatprep.mubr.f32.mxu1 %v14402_v7  ;;  %13840 = vmatpush1.bf16.msra.mxu1 %v13839_v25 }
  0x27   :  { %13843 = vmatprep.subr.msk.bf16.mxu1 %vm14472_vm2, %v13841_v26 }
  0x28   :  { %12825 = vmatmul.mubr.msk.f32.gmra.mrb[14].mxu0 %vm77_vm3, %v14593_v54 }
  0x29   :  { %12862 = vmatmul.mubr.msk.f32.gmra.mrb[14].mxu1 %vm77_vm3, %v14553_v45  ;;  %724 = vmatprep.mubr.f32.mxu0 %v14402_v7 }
  0x2a   :  { %647 = vmatprep.mubr.f32.mxu1 %v14402_v7  ;;  %13846 = vmatpush1.bf16.msk.msra.mxu1 %vm14472_vm2, %v13844_v29 }
  0x2c   :  { %12867 = vmatmul.mubr.msk.f32.vlgmr.msra.gmra.mrb[16].mxu0 %vm77_vm3, %v14510_v30 }
  0x2d   :  { %12863 = vmatmul.mubr.msk.f32.gmra.mrb[16].mxu1 %vm77_vm3, %v14576_v52  ;;  %13850 = vmatpush3.bf16.msra.mxu0 %v13847_v22 }
  0x2e   :  { %653 = vmatprep.mubr.f32.mxu1 %v14402_v7  ;;  %730 = vmatprep.mubr.f32.mxu0 %v14402_v7 }
  0x2f   :  { %13853 = vmatprep.subr.msk.bf16.mxu0 %vm14472_vm2, %v13851_v33 }
  0x30   :  { %12868 = vmatmul.mubr.msk.f32.gmra.mrb[18].mxu0 %vm77_vm3, %v14553_v45 }
  0x31   :  { %12864 = vmatmul.mubr.msk.f32.gmra.mrb[18].mxu1 %vm77_vm3, %v14593_v54  ;;  %736 = vmatprep.mubr.f32.mxu0 %v14402_v7 }
  0x32   :  { %813 = vmatprep.mubr.f32.mxu1 %v14402_v7  ;;  %13856 = vmatpush3.bf16.msk.msra.mxu0 %vm14472_vm2, %v13851_v33 }
  0x33   :  { %13858 = vmatprep.subr.bf16.mxu0 %v13857_v40 }
  0x34   :  { %12869 = vmatmul.mubr.msk.f32.gmra.mrb[20].mxu0 %vm77_vm3, %v14576_v52 }
  0x35   :  { %12873 = vmatmul.mubr.msk.f32.vlgmr.msra.gmra.mrb[20].mxu1 %vm77_vm3, %v14510_v30  ;;  %742 = vmatprep.mubr.f32.mxu0 %v14402_v7 }
  0x36   :  { %819 = vmatprep.mubr.f32.mxu1 %v14402_v7 }
  0x38   :  { %12870 = vmatmul.mubr.msk.f32.gmra.mrb[22].mxu0 %vm77_vm3, %v14593_v54 }
  0x39   :  { %12874 = vmatmul.mubr.msk.f32.gmra.mrb[22].mxu1 %vm77_vm3, %v14553_v45  ;;  %13547 = vmatprep.mubr.msk.f32.mxu0 %vm77_vm3, %v14510_v30  ;;  %v12892_v30 = vld [vmem:[%s16775_s3 + $0xc0] sm:$0x3] }
  0x3a   :  { %825 = vmatprep.mubr.f32.mxu1 %v14402_v7  ;;  %v13861_v35 = vpack.c.bf16 %v12892_v30, %v12885_v16 }
  0x3c   :  { %13548 = vmatmul.mubr.msk.f32.vlgmr.msra.gmra.mrb[24].mxu0 %vm77_vm3, %v14553_v45  ;;  %13862 = vmatprep.subr.bf16.mxu1 %v13861_v35  ;;  %v12894_v45 = vld [vmem:[%s16775_s3 + $0xd0] sm:$0x3] }
  0x3d   :  { %12875 = vmatmul.mubr.msk.f32.gmra.mrb[24].mxu1 %vm77_vm3, %v14576_v52  ;;  %13550 = vmatprep.mubr.msk.f32.mxu0 %vm77_vm3, %v14576_v52  ;;  %v13865_v46 = vpack.c.bf16 %v12894_v45, %v12887_v44 }
  0x3e   :  { %831 = vmatprep.mubr.f32.mxu1 %v14402_v7  ;;  %13864 = vmatpush1.bf16.xpose.msra.mxu1 %v13863_v39 }
  0x3f   :  { %13860 = vmatpush1.bf16.xpose.msra.mxu0 %v13859_v43  ;;  %13869 = vmatprep.subr.bf16.mxu1 %v14405_v47 }
  0x40   :  { %13551 = vmatmul.mubr.msk.f32.gmra.mrb[26].mxu0 %vm77_vm3, %v14593_v54  ;;  %13866 = vmatprep.subr.bf16.mxu0 %v13865_v46 }
  0x41   :  { %12876 = vmatmul.mubr.msk.f32.gmra.mrb[26].mxu1 %vm77_vm3, %v14593_v54 }
  0x96   :  { %v14795_v48 = vpop.permute.xlu0 %59  ;;  %v14803_v61 = vpop.permute.xlu1 %69 }
  0x9a   :  { %v14799_v55 = vpop.permute.xlu0 %64  ;;  %v14811_v19 = vpop.permute.xlu1 %74 }
  0xdf   :  { %v178_v49 = vpop.f32.mrb[0].mxu0 }
  0xe0   :  { %v267_v50 = vpop.f32.mrb[0].mxu1  ;;  %v180_v51 = vpop.f32.mrb[1].mxu0  ;;  %v179_v52 = vadd.f32 %v178_v49, %v14795_v48 }
  0xe1   :  { %v181_v53 = vadd.f32 %v180_v51, %v14795_v48  ;;  %v269_v54 = vpop.f32.mrb[1].mxu1  ;;  %v268_v56 = vadd.f32 %v267_v50, %v14795_v48 }
  0xe2   :  { %v270_v57 = vadd.f32 %v269_v54, %v14795_v48  ;;  %v464_v58 = vmax.f32 %v179_v52, 0.0 }
  0xe3   :  { %v465_v59 = vmax.f32 %v181_v53, 0.0  ;;  %v184_v60 = vpop.f32.mrb[2].mxu0  ;;  %v466_v62 = vmax.f32 %v268_v56, 0.0 }
  0xe4   :  { %v467_v63 = vmax.f32 %v270_v57, 0.0  ;;  %v273_v0 = vpop.f32.mrb[2].mxu1  ;;  %v186_v1 = vpop.f32.mrb[3].mxu0  ;;  %492 = vst [vmem:[#allocation2] sm:$0xff] %v464_v58  ;;  %v185_v2 = vadd.f32 %v184_v60, %v14799_v55 }
  0xe5   :  { %493 = vst [vmem:[#allocation2 + $0x8] sm:$0xff] %v465_v59  ;;  %v187_v3 = vadd.f32 %v186_v1, %v14799_v55  ;;  %v275_v4 = vpop.f32.mrb[3].mxu1  ;;  %494 = vst [vmem:[#allocation2 + $0x10] sm:$0xff] %v466_v62  ;;  %v274_v5 = vadd.f32 %v273_v0, %v14799_v55 }
  0xe6   :  { %495 = vst [vmem:[#allocation2 + $0x18] sm:$0xff] %v467_v63  ;;  %v276_v6 = vadd.f32 %v275_v4, %v14799_v55  ;;  %v471_v8 = vmax.f32 %v185_v2, 0.0 }
  0xe7   :  { %v472_v9 = vmax.f32 %v187_v3, 0.0  ;;  %v190_v10 = vpop.f32.mrb[4].mxu0  ;;  %v473_v11 = vmax.f32 %v274_v5, 0.0 }
  0xe8   :  { %v474_v12 = vmax.f32 %v276_v6, 0.0  ;;  %v279_v13 = vpop.f32.mrb[4].mxu1  ;;  %v192_v14 = vpop.f32.mrb[5].mxu0  ;;  %500 = vst [vmem:[#allocation2 + $0x38] sm:$0xff] %v471_v8  ;;  %v191_v15 = vadd.f32 %v190_v10, %v14803_v61 }
  0xe9   :  { %501 = vst [vmem:[#allocation2 + $0x40] sm:$0xff] %v472_v9  ;;  %v193_v17 = vadd.f32 %v192_v14, %v14803_v61  ;;  %v281_v18 = vpop.f32.mrb[5].mxu1  ;;  %502 = vst [vmem:[#allocation2 + $0x48] sm:$0xff] %v473_v11  ;;  %v280_v20 = vadd.f32 %v279_v13, %v14803_v61 }
  0xea   :  { %503 = vst [vmem:[#allocation2 + $0x50] sm:$0xff] %v474_v12  ;;  %v282_v21 = vadd.f32 %v281_v18, %v14803_v61  ;;  %v478_v22 = vmax.f32 %v191_v15, 0.0 }
  0xeb   :  { %v479_v23 = vmax.f32 %v193_v17, 0.0  ;;  %v196_v24 = vpop.f32.mrb[6].mxu0  ;;  %v480_v25 = vmax.f32 %v280_v20, 0.0 }
  0xec   :  { %v481_v26 = vmax.f32 %v282_v21, 0.0  ;;  %v285_v27 = vpop.f32.mrb[6].mxu1  ;;  %v198_v28 = vpop.f32.mrb[7].mxu0  ;;  %507 = vst [vmem:[#allocation2 + $0x70] sm:$0xff] %v478_v22  ;;  %v197_v29 = vadd.f32 %v196_v24, %v14811_v19 }
  0xed   :  { %508 = vst [vmem:[#allocation2 + $0x78] sm:$0xff] %v479_v23  ;;  %v199_v31 = vadd.f32 %v198_v28, %v14811_v19  ;;  %v287_v32 = vpop.f32.mrb[7].mxu1  ;;  %509 = vst [vmem:[#allocation2 + $0x80] sm:$0xff] %v480_v25  ;;  %v286_v33 = vadd.f32 %v285_v27, %v14811_v19 }
  0xee   :  { %510 = vst [vmem:[#allocation2 + $0x88] sm:$0xff] %v481_v26  ;;  %v288_v16 = vadd.f32 %v287_v32, %v14811_v19  ;;  %v485_v35 = vmax.f32 %v197_v29, 0.0 }
  0xef   :  { %v486_v30 = vmax.f32 %v199_v31, 0.0  ;;  %v356_v34 = vpop.f32.mrb[8].mxu0  ;;  %v487_v43 = vmax.f32 %v286_v33, 0.0 }
  0xf0   :  { %v488_v36 = vmax.f32 %v288_v16, 0.0  ;;  %v357_v37 = vadd.f32 %v356_v34, %v14795_v48  ;;  %v13535_v38 = vpop.f32.mrb[8].mxu1  ;;  %v358_v39 = vpop.f32.mrb[9].mxu0  ;;  %514 = vst [vmem:[#allocation2 + $0xa8] sm:$0xff] %v485_v35 }
  0xf1   :  { %515 = vst [vmem:[#allocation2 + $0xb0] sm:$0xff] %v486_v30  ;;  %v451_v40 = vadd.f32 %v13535_v38, %v14799_v55  ;;  %v359_v41 = vadd.f32 %v358_v39, %v14795_v48  ;;  %v445_v42 = vpop.f32.mrb[9].mxu1  ;;  %516 = vst [vmem:[#allocation2 + $0xb8] sm:$0xff] %v487_v43 }
  0xf2   :  { %517 = vst [vmem:[#allocation2 + $0xc0] sm:$0xff] %v488_v36  ;;  %v468_v44 = vmax.f32 %v357_v37, 0.0  ;;  %v446_v45 = vadd.f32 %v445_v42, %v14795_v48 }
  0xf3   :  { %v477_v46 = vmax.f32 %v451_v40, 0.0  ;;  %v469_v49 = vmax.f32 %v359_v41, 0.0  ;;  %v362_v50 = vpop.f32.mrb[10].mxu0 }
  0xf4   :  { %496 = vst [vmem:[#allocation2 + $0x20] sm:$0xff] %v468_v44  ;;  %v470_v51 = vmax.f32 %v446_v45, 0.0  ;;  %v363_v52 = vadd.f32 %v362_v50, %v14799_v55  ;;  %v364_v53 = vpop.f32.mrb[11].mxu0  ;;  %v13538_v54 = vpop.f32.mrb[10].mxu1 }
  0xf5   :  { %506 = vst.msk [vmem:[#allocation2 + $0x68] sm:$0xff] %vm498_vm4, %v477_v46  ;;  %497 = vst [vmem:[#allocation2 + $0x28] sm:$0xff] %v469_v49  ;;  %v365_v56 = vadd.f32 %v364_v53, %v14799_v55  ;;  %v461_v57 = vadd.f32 %v13538_v54, %v14811_v19  ;;  %v455_v58 = vpop.f32.mrb[11].mxu1 }
  0xf6   :  { %499 = vst.msk [vmem:[#allocation2 + $0x30] sm:$0xff] %vm498_vm4, %v470_v51  ;;  %v475_v59 = vmax.f32 %v363_v52, 0.0  ;;  %v456_v60 = vadd.f32 %v455_v58, %v14803_v61 }
  0xf7   :  { %v476_v62 = vmax.f32 %v365_v56, 0.0  ;;  %v368_v63 = vpop.f32.mrb[12].mxu0  ;;  %v491_v0 = vmax.f32 %v461_v57, 0.0 }
  0xf8   :  { %504 = vst [vmem:[#allocation2 + $0x58] sm:$0xff] %v475_v59  ;;  %v369_v1 = vadd.f32 %v368_v63, %v14803_v61  ;;  %v370_v2 = vpop.f32.mrb[13].mxu0  ;;  %v484_v3 = vmax.f32 %v456_v60, 0.0  ;;  %v637_v4 = vpop.f32.mrb[12].mxu1 }
  0xf9   :  { %505 = vst [vmem:[#allocation2 + $0x60] sm:$0xff] %v476_v62  ;;  %520 = vst.msk [vmem:[#allocation2 + $0xd8] sm:$0xff] %vm498_vm4, %v491_v0  ;;  %v371_v5 = vadd.f32 %v370_v2, %v14803_v61  ;;  %v638_v6 = vadd.f32 %v637_v4, %v14795_v48  ;;  %v639_v8 = vpop.f32.mrb[13].mxu1 }
  0xfa   :  { %v482_v9 = vmax.f32 %v369_v1, 0.0  ;;  %513 = vst.msk [vmem:[#allocation2 + $0xa0] sm:$0xff] %vm498_vm4, %v484_v3  ;;  %v640_v10 = vadd.f32 %v639_v8, %v14795_v48 }
  0xfb   :  { %v483_v11 = vmax.f32 %v371_v5, 0.0  ;;  %v374_v12 = vpop.f32.mrb[14].mxu0  ;;  %v923_v13 = vmax.f32 %v638_v6, 0.0 }
  0xfc   :  { %511 = vst [vmem:[#allocation2 + $0x90] sm:$0xff] %v482_v9  ;;  %v375_v14 = vadd.f32 %v374_v12, %v14811_v19  ;;  %v376_v15 = vpop.f32.mrb[15].mxu0  ;;  %v924_v17 = vmax.f32 %v640_v10, 0.0  ;;  %v643_v18 = vpop.f32.mrb[14].mxu1 }
  0xfd   :  { %512 = vst [vmem:[#allocation2 + $0x98] sm:$0xff] %v483_v11  ;;  %v377_v20 = vadd.f32 %v376_v15, %v14811_v19  ;;  %952 = vst [vmem:[#allocation2 + $0xe0] sm:$0xff] %v923_v13  ;;  %v644_v21 = vadd.f32 %v643_v18, %v14799_v55  ;;  %v645_v22 = vpop.f32.mrb[15].mxu1 }
  0xfe   :  { %v489_v23 = vmax.f32 %v375_v14, 0.0  ;;  %953 = vst [vmem:[#allocation2 + $0xe8] sm:$0xff] %v924_v17  ;;  %v646_v24 = vadd.f32 %v645_v22, %v14799_v55 }
  0xff   :  { %v490_v25 = vmax.f32 %v377_v20, 0.0  ;;  %v726_v26 = vpop.f32.mrb[16].mxu0  ;;  %v930_v27 = vmax.f32 %v644_v21, 0.0 }
 0x100   :  { %518 = vst [vmem:[#allocation2 + $0xc8] sm:$0xff] %v489_v23  ;;  %v727_v28 = vadd.f32 %v726_v26, %v14795_v48  ;;  %v728_v29 = vpop.f32.mrb[17].mxu0  ;;  %v931_v31 = vmax.f32 %v646_v24, 0.0  ;;  %v649_v32 = vpop.f32.mrb[16].mxu1 }
 0x101   :  { %519 = vst [vmem:[#allocation2 + $0xd0] sm:$0xff] %v490_v25  ;;  %v729_v33 = vadd.f32 %v728_v29, %v14795_v48  ;;  %959 = vst [vmem:[#allocation2 + $0x118] sm:$0xff] %v930_v27  ;;  %v650_v16 = vadd.f32 %v649_v32, %v14803_v61  ;;  %v651_v30 = vpop.f32.mrb[17].mxu1 }
 0x102   :  { %v925_v34 = vmax.f32 %v727_v28, 0.0  ;;  %960 = vst [vmem:[#allocation2 + $0x120] sm:$0xff] %v931_v31  ;;  %v652_v35 = vadd.f32 %v651_v30, %v14803_v61 }
 0x103   :  { %v926_v36 = vmax.f32 %v729_v33, 0.0  ;;  %v732_v37 = vpop.f32.mrb[18].mxu0  ;;  %v937_v38 = vmax.f32 %v650_v16, 0.0 }
 0x104   :  { %954 = vst [vmem:[#allocation2 + $0xf0] sm:$0xff] %v925_v34  ;;  %v733_v39 = vadd.f32 %v732_v37, %v14799_v55  ;;  %v734_v40 = vpop.f32.mrb[19].mxu0  ;;  %v938_v41 = vmax.f32 %v652_v35, 0.0  ;;  %v655_v42 = vpop.f32.mrb[18].mxu1  ;;  %v14406_v34 = vmov 1966171168  }
 0x105   :  { %955 = vst [vmem:[#allocation2 + $0xf8] sm:$0xff] %v926_v36  ;;  %v735_v43 = vadd.f32 %v734_v40, %v14799_v55  ;;  %966 = vst [vmem:[#allocation2 + $0x150] sm:$0xff] %v937_v38  ;;  %v656_v44 = vadd.f32 %v655_v42, %v14811_v19  ;;  %v657_v45 = vpop.f32.mrb[19].mxu1  ;;  %v1029_v35 = vunpack.c.l.s4 %v14406_v34  ;;  %v1031_v36 = vlaneseq }
 0x106   :  { %v932_v46 = vmax.f32 %v733_v39, 0.0  ;;  %967 = vst [vmem:[#allocation2 + $0x158] sm:$0xff] %v938_v41  ;;  %v658_v49 = vadd.f32 %v657_v45, %v14811_v19  ;;  %v981_v45 = vld [vmem:[#allocation2] ss:$8 sm:$0x70] }
 0x107   :  { %v933_v50 = vmax.f32 %v735_v43, 0.0  ;;  %v738_v51 = vpop.f32.mrb[20].mxu0  ;;  %v944_v52 = vmax.f32 %v656_v44, 0.0  ;;  %v1030_v42 = vunpack.c.0.s8 %v1029_v35  ;;  %v1032_v43 = vshrl.u32 %v1031_v36, 7 }
 0x108   :  { %961 = vst [vmem:[#allocation2 + $0x128] sm:$0xff] %v932_v46  ;;  %v739_v53 = vadd.f32 %v738_v51, %v14803_v61  ;;  %v740_v54 = vpop.f32.mrb[21].mxu0  ;;  %v945_v56 = vmax.f32 %v658_v49, 0.0  ;;  %v815_v57 = vpop.f32.mrb[20].mxu1 }
 0x109   :  { %962 = vst [vmem:[#allocation2 + $0x130] sm:$0xff] %v933_v50  ;;  %v741_v58 = vadd.f32 %v740_v54, %v14803_v61  ;;  %973 = vst [vmem:[#allocation2 + $0x188] sm:$0xff] %v944_v52  ;;  %v816_v59 = vadd.f32 %v815_v57, %v14795_v48  ;;  %v817_v60 = vpop.f32.mrb[21].mxu1  ;;  %v1002_v44 = vld [vmem:[#allocation2 + $0x1] ss:$8 sm:$0xf] }
 0x10a   :  { %v939_v62 = vmax.f32 %v739_v53, 0.0  ;;  %974 = vst [vmem:[#allocation2 + $0x190] sm:$0xff] %v945_v56  ;;  %v818_v63 = vadd.f32 %v817_v60, %v14795_v48  ;;  %v14867_v53 = vsub.s32 %v1030_v42, %v1032_v43  ;;  %v980_v56 = vld [vmem:[#allocation2] ss:$8 sm:$0xf] }
 0x10b   :  { %v940_v0 = vmax.f32 %v741_v58, 0.0  ;;  %v744_v1 = vpop.f32.mrb[22].mxu0  ;;  %v927_v2 = vmax.f32 %v816_v59, 0.0  ;;  %v982_v59 = vor.u32 %v981_v45, %v980_v56  ;;  %v12905_v56 = vld [vmem:[%s16775_s3 + $0xf8] sm:$0xff] }
 0x10c   :  { %968 = vst [vmem:[#allocation2 + $0x160] sm:$0xff] %v939_v62  ;;  %v745_v3 = vadd.f32 %v744_v1, %v14811_v19  ;;  %v746_v4 = vpop.f32.mrb[23].mxu0  ;;  %v928_v5 = vmax.f32 %v818_v63, 0.0  ;;  %v821_v6 = vpop.f32.mrb[22].mxu1  ;;  %v12893_v1 = vld [vmem:[%s16775_s3 + $0xc8] sm:$0x3] }
 0x10d   :  { %969 = vst [vmem:[#allocation2 + $0x168] sm:$0xff] %v940_v0  ;;  %v747_v8 = vadd.f32 %v746_v4, %v14811_v19  ;;  %956 = vst [vmem:[#allocation2 + $0x100] sm:$0xff] %v927_v2  ;;  %v822_v9 = vadd.f32 %v821_v6, %v14799_v55  ;;  %v823_v10 = vpop.f32.mrb[23].mxu1  ;;  %v1006_v46 = vld [vmem:[#allocation2 + $0xe1] ss:$8 sm:$0xf] }
 0x10e   :  { %v946_v11 = vmax.f32 %v745_v3, 0.0  ;;  %957 = vst [vmem:[#allocation2 + $0x108] sm:$0xff] %v928_v5  ;;  %v824_v12 = vadd.f32 %v823_v10, %v14799_v55  ;;  %v984_v49 = vld [vmem:[#allocation2 + $0xe0] ss:$8 sm:$0xf] }
 0x10f   :  { %v947_v13 = vmax.f32 %v747_v8, 0.0  ;;  %v934_v14 = vmax.f32 %v822_v9, 0.0  ;;  %v13549_v15 = vpop.f32.mrb[24].mxu0  ;;  %v12886_v0 = vld [vmem:[%s16775_s3 + $0x90] sm:$0xff]  ;;  %v12888_v3 = vld [vmem:[%s16775_s3 + $0xa0] sm:$0xff]  ;;  %v988_v8 = vld [vmem:[%s16775_s3 + $0x8] sm:$0xff] }
 0x110   :  { %975 = vst [vmem:[#allocation2 + $0x198] sm:$0xff] %v946_v11  ;;  %v935_v17 = vmax.f32 %v824_v12, 0.0  ;;  %v910_v18 = vadd.f32 %v13549_v15, %v14799_v55  ;;  %v904_v20 = vpop.f32.mrb[25].mxu0  ;;  %v827_v21 = vpop.f32.mrb[24].mxu1  ;;  %v12895_v6 = vld [vmem:[%s16775_s3 + $0xd8] sm:$0x3]  ;;  %v13867_v11 = vpack.c.bf16 %v12893_v1, %v12886_v0 }
 0x111   :  { %976 = vst [vmem:[#allocation2 + $0x1a0] sm:$0xff] %v947_v13  ;;  %963 = vst [vmem:[#allocation2 + $0x138] sm:$0xff] %v934_v14  ;;  %v905_v22 = vadd.f32 %v904_v20, %v14795_v48  ;;  %v828_v23 = vadd.f32 %v827_v21, %v14803_v61  ;;  %v829_v24 = vpop.f32.mrb[25].mxu1  ;;  %v995_v9 = vld [vmem:[%s16775_s3 + $0x40] sm:$0x3]  ;;  %v990_v13 = vld [vmem:[%s16775_s3 + $0x18] sm:$0xff] }
 0x112   :  { %964 = vst [vmem:[#allocation2 + $0x140] sm:$0xff] %v935_v17  ;;  %v936_v25 = vmax.f32 %v910_v18, 0.0  ;;  %v830_v26 = vadd.f32 %v829_v24, %v14803_v61  ;;  %v997_v14 = vld [vmem:[%s16775_s3 + $0x50] sm:$0x3]  ;;  %v13870_v17 = vpack.c.bf16 %v12895_v6, %v12888_v3  ;;  %v13873_v18 = vpack.c.bf16 %v995_v9, %v988_v8  ;;  %v987_v24 = vld [vmem:[%s16775_s3] sm:$0xff]  ;;  %v12907_v6 = vld [vmem:[%s16775_s3 + $0x108] sm:$0xff] }
 0x113   :  { %v929_v27 = vmax.f32 %v905_v22, 0.0  ;;  %v941_v28 = vmax.f32 %v828_v23, 0.0  ;;  %v13552_v29 = vpop.f32.mrb[26].mxu0  ;;  %v13877_v23 = vpack.c.bf16 %v997_v14, %v990_v13  ;;  %v12902_v0 = vld [vmem:[%s16775_s3 + $0xe0] sm:$0xff]  ;;  %v12904_v3 = vld [vmem:[%s16775_s3 + $0xf0] sm:$0xff] }
 0x114   :  { %965 = vst.msk [vmem:[#allocation2 + $0x148] sm:$0xff] %vm498_vm4, %v936_v25  ;;  %v942_v31 = vmax.f32 %v830_v26, 0.0  ;;  %v833_v55 = vpop.f32.mrb[26].mxu1  ;;  %v920_v32 = vadd.f32 %v13552_v29, %v14811_v19  ;;  %v914_v33 = vpop.f32.mrb[27].mxu0  ;;  %v994_v26 = vld [vmem:[%s16775_s3 + $0x38] sm:$0x3] }
 0x115   :  { %958 = vst.msk [vmem:[#allocation2 + $0x110] sm:$0xff] %vm498_vm4, %v929_v27  ;;  %970 = vst [vmem:[#allocation2 + $0x170] sm:$0xff] %v941_v28  ;;  %v834_v48 = vadd.f32 %v833_v55, %v14811_v19  ;;  %v835_v16 = vpop.f32.mrb[27].mxu1  ;;  %v915_v30 = vadd.f32 %v914_v33, %v14803_v61  ;;  %v1003_v61 = vld [vmem:[#allocation2 + $0x1] ss:$8 sm:$0x70] }
 0x116   :  { %971 = vst [vmem:[#allocation2 + $0x178] sm:$0xff] %v942_v31  ;;  %v950_v37 = vmax.f32 %v920_v32, 0.0  ;;  %v836_v38 = vadd.f32 %v835_v16, %v14811_v19  ;;  %v1004_v52 = vor.u32 %v1003_v61, %v1002_v44  ;;  %v989_v27 = vld [vmem:[%s16775_s3 + $0x10] sm:$0xff]  ;;  %v996_v29 = vld [vmem:[%s16775_s3 + $0x48] sm:$0x3]  ;;  %v991_v44 = vld [vmem:[%s16775_s3 + $0x20] sm:$0xff] }
 0x117   :  { %v948_v39 = vmax.f32 %v834_v48, 0.0  ;;  %v943_v40 = vmax.f32 %v915_v30, 0.0  ;;  %v992_v31 = vld [vmem:[%s16775_s3 + $0x28] sm:$0xff]  ;;  %v999_v55 = vld [vmem:[%s16775_s3 + $0x60] sm:$0x3]  ;;  %v13875_v30 = vpack.c.bf16 %v994_v26, %v987_v24 }
 0x118   :  { %979 = vst.msk [vmem:[#allocation2 + $0x1b8] sm:$0xff] %vm498_vm4, %v950_v37  ;;  %v949_v41 = vmax.f32 %v836_v38, 0.0  ;;  %v1716_v48 = vld [vmem:[#allocation2 + $0x2] ss:$8 sm:$0x70]  ;;  %v13881_v36 = vpack.c.bf16 %v999_v55, %v992_v31  ;;  %v13879_v38 = vpack.c.bf16 %v996_v29, %v989_v27  ;;  %v12920_v31 = vld [vmem:[%s16775_s3 + $0x158] sm:$0xff] }
 0x119   :  { %977 = vst [vmem:[#allocation2 + $0x1a8] sm:$0xff] %v948_v39  ;;  %972 = vst.msk [vmem:[#allocation2 + $0x180] sm:$0xff] %vm498_vm4, %v943_v40  ;;  %v1719_v16 = vld [vmem:[#allocation2 + $0xe2] ss:$8 sm:$0xf] }
 0x11a   :  { %978 = vst [vmem:[#allocation2 + $0x1b0] sm:$0xff] %v949_v41  ;;  %v1715_v37 = vld [vmem:[#allocation2 + $0x2] ss:$8 sm:$0xf]  ;;  %v998_v61 = vld [vmem:[%s16775_s3 + $0x58] sm:$0x3] }
 0x11b   :  { %v1717_v40 = vor.u32 %v1716_v48, %v1715_v37  ;;  %v12914_v8 = vld [vmem:[%s16775_s3 + $0x140] sm:$0x3]  ;;  %v12927_v55 = vld [vmem:[%s16775_s3 + $0x190] sm:$0x3]  ;;  %v12915_v48 = vld [vmem:[%s16775_s3 + $0x148] sm:$0x3] }
 0x11c   :  { %v1007_v50 = vld [vmem:[#allocation2 + $0xe1] ss:$8 sm:$0x70]  ;;  %v985_v51 = vld [vmem:[#allocation2 + $0xe0] ss:$8 sm:$0x70] }
 0x11d   :  { %v1008_v19 = vor.u32 %v1007_v50, %v1006_v46  ;;  %v986_v54 = vor.u32 %v985_v51, %v984_v49  ;;  %v1720_v28 = vld [vmem:[#allocation2 + $0xe2] ss:$8 sm:$0x70]  ;;  %v12910_v49 = vld [vmem:[%s16775_s3 + $0x120] sm:$0x3] }
 0x11e   :  { %v1721_v35 = vor.u32 %v1720_v28, %v1719_v16  ;;  %v12903_v46 = vld [vmem:[%s16775_s3 + $0xe8] sm:$0xff]  ;;  %v993_v51 = vld [vmem:[%s16775_s3 + $0x30] sm:$0xff]  ;;  %v12906_v27 = vld [vmem:[%s16775_s3 + $0x100] sm:$0xff] }
 0x11f   :  { %v1026_v57 = vcombine.low %v1004_v52, %v1008_v19  ;;  %v1027_v58 = vcombine.high %v1004_v52, %v1008_v19  ;;  %v1371_v63 = vcombine.low %v982_v59, %v986_v54  ;;  %v1372_v32 = vcombine.high %v982_v59, %v986_v54  ;;  %v1000_v52 = vld [vmem:[%s16775_s3 + $0x68] sm:$0x3]  ;;  %v12913_v28 = vld [vmem:[%s16775_s3 + $0x138] sm:$0x3] }
 0x120   :  { %v1739_v43 = vcombine.low %v1717_v40, %v1721_v35  ;;  %v13883_v19 = vpack.c.bf16 %v998_v61, %v991_v44  ;;  %v1740_v9 = vcombine.high %v1717_v40, %v1721_v35  ;;  %v13899_v16 = vpack.c.bf16 %v12913_v28, %v12906_v27  ;;  %v12929_v35 = vld [vmem:[%s16775_s3 + $0x1a0] sm:$0x3]  ;;  %v2458_v61 = vld [vmem:[#allocation2 + $0xe4] ss:$8 sm:$0x70] }
 0x121   :  { %v1034_v60 = vrot.slane %v1026_v57, %v14867_v53  ;;  %v1041_v62 = vrot.slane %v1027_v58, %v14867_v53  ;;  %v1379_v12 = vrot.slane %v1371_v63, %v14867_v53  ;;  %v1386_v39 = vrot.slane %v1372_v32, %v14867_v53  ;;  %v12912_v57 = vld [vmem:[%s16775_s3 + $0x130] sm:$0x3]  ;;  %v12921_v44 = vld [vmem:[%s16775_s3 + $0x160] sm:$0xff] }
 0x122   :  { %v1747_v54 = vrot.slane %v1739_v43, %v14867_v53  ;;  %v13889_v58 = vpack.c.bf16 %v12910_v49, %v12903_v46  ;;  %v13893_v63 = vpack.c.bf16 %v12912_v57, %v12905_v56  ;;  %v12926_v43 = vld [vmem:[%s16775_s3 + $0x188] sm:$0x3]  ;;  %v12924_v46 = vld [vmem:[%s16775_s3 + $0x178] sm:$0xff]  ;;  %v12931_v49 = vld [vmem:[%s16775_s3 + $0x1b0] sm:$0x3] }
 0x123   :  { %v1042_v2 = vcombine.high %v1034_v60, %v1034_v60  ;;  %v1050_v4 = vrot.slane %v1034_v60, %v14867_v53  ;;  %v1043_v5 = vcombine.high %v1041_v62, %v1041_v62  ;;  %v1387_v25 = vcombine.high %v1379_v12, %v1379_v12  ;;  %v12938_v27 = vld [vmem:[%s16775_s3 + $0x1d0] sm:$0xff] }
 0x124   :  { %v1057_v33 = vrot.slane %v1041_v62, %v14867_v53  ;;  %v1388_v45 = vcombine.high %v1386_v39, %v1386_v39  ;;  %v1395_v50 = vrot.slane %v1379_v12, %v14867_v53  ;;  %v13886_v60 = vpack.c.bf16 %v1000_v52, %v993_v51  ;;  %v2088_v12 = vld [vmem:[#allocation2 + $0xe3] ss:$8 sm:$0xf]  ;;  %v2454_v52 = vld [vmem:[#allocation2 + $0x4] ss:$8 sm:$0x70] }
 0x125   :  { %v1064_v10 = vrot.slane %v1042_v2, %v14867_v53  ;;  %v1071_v20 = vrot.slane %v1043_v5, %v14867_v53  ;;  %v1072_v21 = vcombine.high %v1050_v4, %v1050_v4  ;;  %v1409_v34 = vrot.slane %v1387_v25, %v14867_v53  ;;  %v12909_v2 = vld [vmem:[%s16775_s3 + $0x118] sm:$0x3]  ;;  %v12911_v5 = vld [vmem:[%s16775_s3 + $0x128] sm:$0x3] }
 0x126   :  { %v1073_v41 = vcombine.high %v1057_v33, %v1057_v33  ;;  %v1416_v59 = vrot.slane %v1388_v45, %v14867_v53  ;;  %v1417_v62 = vcombine.high %v1395_v50, %v1395_v50  ;;  %v1755_v1 = vcombine.high %v1747_v54, %v1747_v54  ;;  %v12928_v45 = vld [vmem:[%s16775_s3 + $0x198] sm:$0x3]  ;;  %v2827_v28 = vld [vmem:[#allocation2 + $0xe5] ss:$8 sm:$0x70] }
 0x127   :  { %1153 = vmatprep.mubr.f32.mxu0 %v1064_v10  ;;  %v1074_v15 = vcombine.high %v1064_v10, %v1064_v10  ;;  %v1419_v42 = vcombine.high %v1409_v34, %v1409_v34  ;;  %v1402_v10 = vrot.slane %v1386_v39, %v14867_v53  ;;  %v13891_v13 = vpack.c.bf16 %v12909_v2, %v12902_v0 }
 0x128   :  { %1154 = vmatmul.mubr.f32.vlgmr.msra.gmra.mrb[28].mxu0 %v1050_v4  ;;  %v2089_v4 = vld [vmem:[#allocation2 + $0xe3] ss:$8 sm:$0x70]  ;;  %v1777_v14 = vrot.slane %v1755_v1, %v14867_v53  ;;  %v1763_v32 = vrot.slane %v1747_v54, %v14867_v53 }
 0x129   :  { %13868 = vmatpush1.bf16.xpose.msra.mxu0 %v13867_v11  ;;  %1223 = vmatprep.mubr.f32.mxu1 %v1074_v15  ;;  %v2085_v11 = vld [vmem:[#allocation2 + $0x3] ss:$8 sm:$0x70]  ;;  %v2090_v15 = vor.u32 %v2089_v4, %v2088_v12  ;;  %v1418_v24 = vcombine.high %v1402_v10, %v1402_v10  ;;  %v12930_v4 = vld [vmem:[%s16775_s3 + $0x1a8] sm:$0x3] }
 0x12a   :  { %1293 = vmatprep.mubr.f32.mxu0 %v1071_v20  ;;  %1224 = vmatmul.mubr.f32.vlgmr.msra.gmra.mrb[28].mxu1 %v1072_v21  ;;  %v13895_v20 = vpack.c.bf16 %v12911_v5, %v12904_v3  ;;  %v1754_v21 = vrot.slane %v1740_v9, %v14867_v53  ;;  %v1787_v25 = vcombine.high %v1777_v14, %v1777_v14  ;;  %v12923_v3 = vld [vmem:[%s16775_s3 + $0x170] sm:$0xff] }
 0x12b   :  { %13872 = vmatpush3.bf16.xpose.msk.msra.mxu1 %vm14901_vm5, %v13870_v17  ;;  %13874 = vmatprep.subr.bf16.mxu0 %v13873_v18  ;;  %v13897_v17 = vpack.c.bf16 %v12914_v8, %v12907_v6  ;;  %v2084_v18 = vld [vmem:[#allocation2 + $0x3] ss:$8 sm:$0xf]  ;;  %v1785_v39 = vcombine.high %v1763_v32, %v1763_v32  ;;  %v12944_v8 = vld [vmem:[%s16775_s3 + $0x200] sm:$0x3]  ;;  %v13915_v12 = vpack.c.bf16 %v12930_v4, %v12923_v3 }
 0x12c   :  { %13557 = vmatprep.mubr.msk.f32.mxu1 %vm14407_vm6, %v14402_v7  ;;  %13878 = vmatprep.subr.bf16.mxu1 %v13877_v23  ;;  %v2086_v23 = vor.u32 %v2085_v11, %v2084_v18  ;;  %v1756_v29 = vcombine.high %v1754_v21, %v1754_v21  ;;  %v1770_v51 = vrot.slane %v1754_v21, %v14867_v53  ;;  %v12937_v6 = vld [vmem:[%s16775_s3 + $0x1c8] sm:$0xff]  ;;  %v12932_v11 = vld [vmem:[%s16775_s3 + $0x1b8] sm:$0x3]  ;;  %v12955_v3 = vld [vmem:[%s16775_s3 + $0x240] sm:$0xff] }
 0x12d   :  { %v3196_v4 = vld [vmem:[#allocation2 + $0xe6] ss:$8 sm:$0x70] }
 0x12e   :  { %v2108_v26 = vcombine.low %v2086_v23, %v2090_v15  ;;  %v1784_v37 = vrot.slane %v1756_v29, %v14867_v53  ;;  %v1786_v0 = vcombine.high %v1770_v51, %v1770_v51  ;;  %v12945_v29 = vld [vmem:[%s16775_s3 + $0x208] sm:$0x3] }
 0x130   :  { %1294 = vmatmul.mubr.f32.vlgmr.msra.gmra.mrb[30].mxu0 %v1057_v33  ;;  %v12908_v33 = vld [vmem:[%s16775_s3 + $0x110] sm:$0xff] }
 0x131   :  { %13876 = vmatpush1.bf16.xpose.msra.mxu0 %v13875_v30  ;;  %1498 = vmatprep.mubr.f32.mxu0 %v1409_v34  ;;  %v2116_v30 = vrot.slane %v2108_v26, %v14867_v53  ;;  %v12922_v34 = vld [vmem:[%s16775_s3 + $0x168] sm:$0xff]  ;;  %v12943_v26 = vld [vmem:[%s16775_s3 + $0x1f8] sm:$0x3] }
 0x132   :  { %13558 = vmatmul.mubr.msk.f32.vlgmr.msra.gmra.mrb[30].mxu1 %vm498_vm4, %v1073_v41  ;;  %13882 = vmatprep.subr.bf16.mxu0 %v13881_v36  ;;  %v13905_v36 = vpack.c.bf16 %v12927_v55, %v12920_v31  ;;  %v13909_v40 = vpack.c.bf16 %v12929_v35, %v12922_v34  ;;  %v12919_v41 = vld [vmem:[%s16775_s3 + $0x150] sm:$0xff]  ;;  %v12941_v31 = vld [vmem:[%s16775_s3 + $0x1e8] sm:$0xff]  ;;  %v12948_v55 = vld [vmem:[%s16775_s3 + $0x220] sm:$0x3] }
 0x133   :  { %13880 = vmatpush1.bf16.xpose.msra.mxu1 %v13879_v38  ;;  %1568 = vmatprep.mubr.f32.mxu1 %v1419_v42  ;;  %v13902_v38 = vpack.c.bf16 %v12915_v48, %v12908_v33  ;;  %v2124_v42 = vcombine.high %v2116_v30, %v2116_v30  ;;  %v13907_v54 = vpack.c.bf16 %v12926_v43, %v12919_v41  ;;  %v2823_v48 = vld [vmem:[#allocation2 + $0x5] ss:$8 sm:$0x70] }
 0x134   :  { %13885 = vmatprep.subr.bf16.mxu1 %v14405_v47  ;;  %v2132_v9 = vrot.slane %v2116_v30, %v14867_v53 }
 0x135   :  { %v2146_v56 = vrot.slane %v2124_v42, %v14867_v53 }
 0x136   :  { %v2154_v21 = vcombine.high %v2132_v9, %v2132_v9 }
 0x137   :  { %v2156_v1 = vcombine.high %v2146_v56, %v2146_v56 }
 0x138   :  { %1499 = vmatmul.mubr.f32.vlgmr.msra.gmra.mrb[32].mxu0 %v1395_v50  ;;  %v2109_v50 = vcombine.high %v2086_v23, %v2090_v15  ;;  %v12946_v15 = vld [vmem:[%s16775_s3 + $0x210] sm:$0x3] }
 0x139   :  { %13884 = vmatpush1.bf16.xpose.msra.mxu0 %v13883_v19  ;;  %1638 = vmatprep.mubr.f32.mxu0 %v1416_v59  ;;  %v2457_v19 = vld [vmem:[#allocation2 + $0xe4] ss:$8 sm:$0xf] }
 0x13a   :  { %1569 = vmatmul.mubr.f32.vlgmr.msra.gmra.mrb[32].mxu1 %v1417_v62  ;;  %13890 = vmatprep.subr.bf16.mxu0 %v13889_v58  ;;  %v2459_v57 = vor.u32 %v2458_v61, %v2457_v19  ;;  %v13913_v58 = vpack.c.bf16 %v12931_v49, %v12924_v46  ;;  %v2453_v59 = vld [vmem:[#allocation2 + $0x4] ss:$8 sm:$0xf]  ;;  %v2123_v62 = vrot.slane %v2109_v50, %v14867_v53  ;;  %v12947_v61 = vld [vmem:[%s16775_s3 + $0x218] sm:$0x3] }
 0x13b   :  { %13888 = vmatpush3.bf16.xpose.msk.msra.mxu1 %vm14901_vm5, %v13886_v60  ;;  %13564 = vmatprep.mubr.msk.f32.mxu1 %vm14407_vm6, %v14402_v7  ;;  %v13911_v60 = vpack.c.bf16 %v12928_v45, %v12921_v44  ;;  %v12940_v44 = vld [vmem:[%s16775_s3 + $0x1e0] sm:$0xff]  ;;  %v12954_v46 = vld [vmem:[%s16775_s3 + $0x238] sm:$0xff]  ;;  %v12961_v49 = vld [vmem:[%s16775_s3 + $0x270] sm:$0x3] }
 0x13c   :  { %13894 = vmatprep.subr.bf16.mxu1 %v13893_v63  ;;  %v2455_v63 = vor.u32 %v2454_v52, %v2453_v59  ;;  %v2125_v5 = vcombine.high %v2123_v62, %v2123_v62  ;;  %v2139_v33 = vrot.slane %v2123_v62, %v14867_v53  ;;  %v12949_v52 = vld [vmem:[%s16775_s3 + $0x228] sm:$0x3]  ;;  %v13931_v19 = vpack.c.bf16 %v12947_v61, %v12940_v44  ;;  %v12972_v44 = vld [vmem:[%s16775_s3 + $0x2b0] sm:$0xff] }
 0x13d   :  { %v3565_v61 = vld [vmem:[#allocation2 + $0xe7] ss:$8 sm:$0x70] }
 0x13e   :  { %v2477_v2 = vcombine.low %v2455_v63, %v2459_v57  ;;  %v2153_v18 = vrot.slane %v2125_v5, %v14867_v53  ;;  %v2155_v41 = vcombine.high %v2139_v33, %v2139_v33  ;;  %v12962_v5 = vld [vmem:[%s16775_s3 + $0x278] sm:$0x3] }
 0x140   :  { %1639 = vmatmul.mubr.f32.vlgmr.msra.gmra.mrb[34].mxu0 %v1402_v10  ;;  %v12925_v10 = vld [vmem:[%s16775_s3 + $0x180] sm:$0xff] }
 0x141   :  { %13892 = vmatpush1.bf16.xpose.msra.mxu0 %v13891_v13  ;;  %1866 = vmatprep.mubr.f32.mxu0 %v1777_v14  ;;  %v2485_v13 = vrot.slane %v2477_v2, %v14867_v53  ;;  %v12939_v14 = vld [vmem:[%s16775_s3 + $0x1d8] sm:$0xff]  ;;  %v12960_v2 = vld [vmem:[%s16775_s3 + $0x268] sm:$0x3] }
 0x142   :  { %13565 = vmatmul.mubr.msk.f32.vlgmr.msra.gmra.mrb[34].mxu1 %vm498_vm4, %v1418_v24  ;;  %13898 = vmatprep.subr.bf16.mxu0 %v13897_v17  ;;  %v13921_v17 = vpack.c.bf16 %v12944_v8, %v12937_v6  ;;  %v13925_v23 = vpack.c.bf16 %v12946_v15, %v12939_v14  ;;  %v12936_v24 = vld [vmem:[%s16775_s3 + $0x1c0] sm:$0xff]  ;;  %v12958_v6 = vld [vmem:[%s16775_s3 + $0x258] sm:$0xff]  ;;  %v12965_v8 = vld [vmem:[%s16775_s3 + $0x290] sm:$0x3] }
 0x143   :  { %13896 = vmatpush1.bf16.xpose.msra.mxu1 %v13895_v20  ;;  %1936 = vmatprep.mubr.f32.mxu1 %v1787_v25  ;;  %v13918_v20 = vpack.c.bf16 %v12932_v11, %v12925_v10  ;;  %v2493_v25 = vcombine.high %v2485_v13, %v2485_v13  ;;  %v13923_v30 = vpack.c.bf16 %v12943_v26, %v12936_v24  ;;  %v3192_v11 = vld [vmem:[#allocation2 + $0x6] ss:$8 sm:$0x70] }
 0x144   :  { %13901 = vmatprep.subr.bf16.mxu1 %v14405_v47  ;;  %v2501_v50 = vrot.slane %v2485_v13, %v14867_v53 }
 0x145   :  { %v2515_v34 = vrot.slane %v2493_v25, %v14867_v53 }
 0x146   :  { %v2523_v62 = vcombine.high %v2501_v50, %v2501_v50 }
 0x147   :  { %v2525_v42 = vcombine.high %v2515_v34, %v2515_v34 }
 0x148   :  { %1867 = vmatmul.mubr.f32.vlgmr.msra.gmra.mrb[36].mxu0 %v1763_v32  ;;  %v2478_v32 = vcombine.high %v2455_v63, %v2459_v57  ;;  %v12963_v57 = vld [vmem:[%s16775_s3 + $0x280] sm:$0x3] }
 0x149   :  { %13900 = vmatpush1.bf16.xpose.msra.mxu0 %v13899_v16  ;;  %2006 = vmatprep.mubr.f32.mxu0 %v1784_v37  ;;  %v2826_v16 = vld [vmem:[#allocation2 + $0xe5] ss:$8 sm:$0xf] }
 0x14a   :  { %1937 = vmatmul.mubr.f32.vlgmr.msra.gmra.mrb[36].mxu1 %v1785_v39  ;;  %13906 = vmatprep.subr.bf16.mxu0 %v13905_v36  ;;  %v2828_v35 = vor.u32 %v2827_v28, %v2826_v16  ;;  %v13929_v36 = vpack.c.bf16 %v12948_v55, %v12941_v31  ;;  %v2822_v37 = vld [vmem:[#allocation2 + $0x5] ss:$8 sm:$0xf]  ;;  %v2492_v39 = vrot.slane %v2478_v32, %v14867_v53  ;;  %v12964_v28 = vld [vmem:[%s16775_s3 + $0x288] sm:$0x3] }
 0x14b   :  { %13904 = vmatpush3.bf16.xpose.msk.msra.mxu1 %vm14901_vm5, %v13902_v38  ;;  %13571 = vmatprep.mubr.msk.f32.mxu1 %vm14407_vm6, %v14402_v7  ;;  %v13927_v38 = vpack.c.bf16 %v12945_v29, %v12938_v27  ;;  %v12957_v27 = vld [vmem:[%s16775_s3 + $0x250] sm:$0xff]  ;;  %v12971_v31 = vld [vmem:[%s16775_s3 + $0x2a8] sm:$0xff]  ;;  %v12978_v55 = vld [vmem:[%s16775_s3 + $0x2e0] sm:$0x3] }
 0x14c   :  { %13910 = vmatprep.subr.bf16.mxu1 %v13909_v40  ;;  %v2824_v40 = vor.u32 %v2823_v48, %v2822_v37  ;;  %v2494_v45 = vcombine.high %v2492_v39, %v2492_v39  ;;  %v2508_v10 = vrot.slane %v2492_v39, %v14867_v53  ;;  %v12966_v48 = vld [vmem:[%s16775_s3 + $0x298] sm:$0x3]  ;;  %v13947_v16 = vpack.c.bf16 %v12964_v28, %v12957_v27 }
 0x14d   :  { %v3934_v27 = vld [vmem:[#allocation2 + $0x118] ss:$8 sm:$0x70] }
 0x14e   :  { %v2846_v43 = vcombine.low %v2824_v40, %v2828_v35  ;;  %v2522_v59 = vrot.slane %v2494_v45, %v14867_v53  ;;  %v2524_v24 = vcombine.high %v2508_v10, %v2508_v10  ;;  %v12979_v45 = vld [vmem:[%s16775_s3 + $0x2e8] sm:$0x3]  ;;  %v12992_v28 = vld [vmem:[%s16775_s3 + $0x338] sm:$0xff] }
 0x150   :  { %2007 = vmatmul.mubr.f32.vlgmr.msra.gmra.mrb[38].mxu0 %v1770_v51  ;;  %v12942_v51 = vld [vmem:[%s16775_s3 + $0x1f0] sm:$0xff] }
 0x151   :  { %13908 = vmatpush1.bf16.xpose.msra.mxu0 %v13907_v54  ;;  %2235 = vmatprep.mubr.f32.mxu0 %v2146_v56  ;;  %v2854_v54 = vrot.slane %v2846_v43, %v14867_v53  ;;  %v12956_v56 = vld [vmem:[%s16775_s3 + $0x248] sm:$0xff]  ;;  %v12977_v43 = vld [vmem:[%s16775_s3 + $0x2d8] sm:$0x3] }
 0x152   :  { %13572 = vmatmul.mubr.msk.f32.vlgmr.msra.gmra.mrb[38].mxu1 %vm498_vm4, %v1786_v0  ;;  %13914 = vmatprep.subr.bf16.mxu0 %v13913_v58  ;;  %v13937_v58 = vpack.c.bf16 %v12961_v49, %v12954_v46  ;;  %v13941_v63 = vpack.c.bf16 %v12963_v57, %v12956_v56  ;;  %v12953_v0 = vld [vmem:[%s16775_s3 + $0x230] sm:$0xff]  ;;  %v12975_v46 = vld [vmem:[%s16775_s3 + $0x2c8] sm:$0xff]  ;;  %v12982_v49 = vld [vmem:[%s16775_s3 + $0x300] sm:$0x3] }
 0x153   :  { %13912 = vmatpush1.bf16.xpose.msra.mxu1 %v13911_v60  ;;  %2305 = vmatprep.mubr.f32.mxu1 %v2156_v1  ;;  %v13934_v60 = vpack.c.bf16 %v12949_v52, %v12942_v51  ;;  %v2862_v1 = vcombine.high %v2854_v54, %v2854_v54  ;;  %v13939_v13 = vpack.c.bf16 %v12960_v2, %v12953_v0  ;;  %v3561_v52 = vld [vmem:[#allocation2 + $0x7] ss:$8 sm:$0x70] }
 0x154   :  { %13917 = vmatprep.subr.bf16.mxu1 %v14405_v47  ;;  %v2870_v32 = vrot.slane %v2854_v54, %v14867_v53 }
 0x155   :  { %v2884_v14 = vrot.slane %v2862_v1, %v14867_v53 }
 0x156   :  { %v2892_v39 = vcombine.high %v2870_v32, %v2870_v32 }
 0x157   :  { %v2894_v25 = vcombine.high %v2884_v14, %v2884_v14 }
 0x158   :  { %2236 = vmatmul.mubr.f32.vlgmr.msra.gmra.mrb[40].mxu0 %v2132_v9  ;;  %v2847_v9 = vcombine.high %v2824_v40, %v2828_v35  ;;  %v12980_v35 = vld [vmem:[%s16775_s3 + $0x2f0] sm:$0x3] }
 0x159   :  { %13916 = vmatpush1.bf16.xpose.msra.mxu0 %v13915_v12  ;;  %2375 = vmatprep.mubr.f32.mxu0 %v2153_v18  ;;  %v3195_v12 = vld [vmem:[#allocation2 + $0xe6] ss:$8 sm:$0xf] }
 0x15a   :  { %2306 = vmatmul.mubr.f32.vlgmr.msra.gmra.mrb[40].mxu1 %v2154_v21  ;;  %13922 = vmatprep.subr.bf16.mxu0 %v13921_v17  ;;  %v3197_v15 = vor.u32 %v3196_v4, %v3195_v12  ;;  %v13945_v17 = vpack.c.bf16 %v12965_v8, %v12958_v6  ;;  %v3191_v18 = vld [vmem:[#allocation2 + $0x6] ss:$8 sm:$0xf]  ;;  %v2861_v21 = vrot.slane %v2847_v9, %v14867_v53  ;;  %v12981_v4 = vld [vmem:[%s16775_s3 + $0x2f8] sm:$0x3] }
 0x15b   :  { %13920 = vmatpush3.bf16.xpose.msk.msra.mxu1 %vm14901_vm5, %v13918_v20  ;;  %13578 = vmatprep.mubr.msk.f32.mxu1 %vm14407_vm6, %v14402_v7  ;;  %v13943_v20 = vpack.c.bf16 %v12962_v5, %v12955_v3  ;;  %v12974_v3 = vld [vmem:[%s16775_s3 + $0x2c0] sm:$0xff]  ;;  %v12988_v6 = vld [vmem:[%s16775_s3 + $0x318] sm:$0xff]  ;;  %v12995_v8 = vld [vmem:[%s16775_s3 + $0x350] sm:$0x3] }
 0x15c   :  { %13926 = vmatprep.subr.bf16.mxu1 %v13925_v23  ;;  %v3193_v23 = vor.u32 %v3192_v11, %v3191_v18  ;;  %v2863_v29 = vcombine.high %v2861_v21, %v2861_v21  ;;  %v2877_v51 = vrot.slane %v2861_v21, %v14867_v53  ;;  %v12983_v11 = vld [vmem:[%s16775_s3 + $0x308] sm:$0x3]  ;;  %v13963_v12 = vpack.c.bf16 %v12981_v4, %v12974_v3 }
 0x15d   :  { %v4303_v3 = vld [vmem:[#allocation2 + $0x119] ss:$8 sm:$0x70] }
 0x15e   :  { %v3215_v26 = vcombine.low %v3193_v23, %v3197_v15  ;;  %v2891_v37 = vrot.slane %v2863_v29, %v14867_v53  ;;  %v2893_v0 = vcombine.high %v2877_v51, %v2877_v51  ;;  %v12999_v29 = vld [vmem:[%s16775_s3 + $0x370] sm:$0x3]  ;;  %v13009_v4 = vld [vmem:[%s16775_s3 + $0x3a8] sm:$0xff] }
 0x160   :  { %2376 = vmatmul.mubr.f32.vlgmr.msra.gmra.mrb[42].mxu0 %v2139_v33  ;;  %v12959_v33 = vld [vmem:[%s16775_s3 + $0x260] sm:$0xff] }
 0x161   :  { %13924 = vmatpush1.bf16.xpose.msra.mxu0 %v13923_v30  ;;  %2604 = vmatprep.mubr.f32.mxu0 %v2515_v34  ;;  %v3223_v30 = vrot.slane %v3215_v26, %v14867_v53  ;;  %v12973_v34 = vld [vmem:[%s16775_s3 + $0x2b8] sm:$0xff]  ;;  %v12994_v26 = vld [vmem:[%s16775_s3 + $0x348] sm:$0x3] }
 0x162   :  { %13579 = vmatmul.mubr.msk.f32.vlgmr.msra.gmra.mrb[42].mxu1 %vm498_vm4, %v2155_v41  ;;  %13930 = vmatprep.subr.bf16.mxu0 %v13929_v36  ;;  %v13953_v36 = vpack.c.bf16 %v12978_v55, %v12971_v31  ;;  %v13957_v40 = vpack.c.bf16 %v12980_v35, %v12973_v34  ;;  %v12970_v41 = vld [vmem:[%s16775_s3 + $0x2a0] sm:$0xff] }
 0x163   :  { %13928 = vmatpush1.bf16.xpose.msra.mxu1 %v13927_v38  ;;  %2674 = vmatprep.mubr.f32.mxu1 %v2525_v42  ;;  %v13950_v38 = vpack.c.bf16 %v12966_v48, %v12959_v33  ;;  %v3231_v42 = vcombine.high %v3223_v30, %v3223_v30  ;;  %v13955_v54 = vpack.c.bf16 %v12977_v43, %v12970_v41  ;;  %v3930_v55 = vld [vmem:[#allocation2 + $0x38] ss:$8 sm:$0x70] }
 0x164   :  { %13933 = vmatprep.subr.bf16.mxu1 %v14405_v47  ;;  %v3239_v9 = vrot.slane %v3223_v30, %v14867_v53  ;;  %v12989_v33 = vld [vmem:[%s16775_s3 + $0x320] sm:$0xff]  ;;  %v12996_v48 = vld [vmem:[%s16775_s3 + $0x358] sm:$0x3] }
 0x165   :  { %v3253_v56 = vrot.slane %v3231_v42, %v14867_v53 }
 0x166   :  { %v3261_v21 = vcombine.high %v3239_v9, %v3239_v9 }
 0x167   :  { %v3263_v1 = vcombine.high %v3253_v56, %v3253_v56 }
 0x168   :  { %2605 = vmatmul.mubr.f32.vlgmr.msra.gmra.mrb[44].mxu0 %v2501_v50  ;;  %v3216_v50 = vcombine.high %v3193_v23, %v3197_v15  ;;  %v12997_v15 = vld [vmem:[%s16775_s3 + $0x360] sm:$0x3] }
 0x169   :  { %13932 = vmatpush1.bf16.xpose.msra.mxu0 %v13931_v19  ;;  %2744 = vmatprep.mubr.f32.mxu0 %v2522_v59  ;;  %v3564_v19 = vld [vmem:[#allocation2 + $0xe7] ss:$8 sm:$0xf] }
 0x16a   :  { %2675 = vmatmul.mubr.f32.vlgmr.msra.gmra.mrb[44].mxu1 %v2523_v62  ;;  %13938 = vmatprep.subr.bf16.mxu0 %v13937_v58  ;;  %v3566_v57 = vor.u32 %v3565_v61, %v3564_v19  ;;  %v13961_v58 = vpack.c.bf16 %v12982_v49, %v12975_v46  ;;  %v3560_v59 = vld [vmem:[#allocation2 + $0x7] ss:$8 sm:$0xf]  ;;  %v3230_v62 = vrot.slane %v3216_v50, %v14867_v53  ;;  %v12998_v61 = vld [vmem:[%s16775_s3 + $0x368] sm:$0x3] }
 0x16b   :  { %13936 = vmatpush3.bf16.xpose.msk.msra.mxu1 %vm14901_vm5, %v13934_v60  ;;  %13585 = vmatprep.mubr.msk.f32.mxu1 %vm14407_vm6, %v14402_v7  ;;  %v13959_v60 = vpack.c.bf16 %v12979_v45, %v12972_v44  ;;  %v12991_v44 = vld [vmem:[%s16775_s3 + $0x330] sm:$0xff]  ;;  %v13005_v46 = vld [vmem:[%s16775_s3 + $0x388] sm:$0xff]  ;;  %v13012_v49 = vld [vmem:[%s16775_s3 + $0x3c0] sm:$0x3] }
 0x16c   :  { %13942 = vmatprep.subr.bf16.mxu1 %v13941_v63  ;;  %v3562_v63 = vor.u32 %v3561_v52, %v3560_v59  ;;  %v3232_v5 = vcombine.high %v3230_v62, %v3230_v62  ;;  %v13000_v52 = vld [vmem:[%s16775_s3 + $0x378] sm:$0x3]  ;;  %v13979_v19 = vpack.c.bf16 %v12998_v61, %v12991_v44  ;;  %v4672_v44 = vld [vmem:[#allocation2 + $0x11a] ss:$8 sm:$0x70] }
 0x16d   :  { %v13026_v61 = vld [vmem:[%s16775_s3 + $0x418] sm:$0xff] }
 0x16e   :  { %v3584_v2 = vcombine.low %v3562_v63, %v3566_v57  ;;  %v3260_v18 = vrot.slane %v3232_v5, %v14867_v53  ;;  %v3585_v31 = vcombine.high %v3562_v63, %v3566_v57  ;;  %v13014_v57 = vld [vmem:[%s16775_s3 + $0x3d0] sm:$0x3]  ;;  %v13016_v5 = vld [vmem:[%s16775_s3 + $0x3e0] sm:$0x3] }
 0x170   :  { %2745 = vmatmul.mubr.f32.vlgmr.msra.gmra.mrb[46].mxu0 %v2508_v10  ;;  %v12976_v10 = vld [vmem:[%s16775_s3 + $0x2d0] sm:$0xff] }
 0x171   :  { %13940 = vmatpush1.bf16.xpose.msra.mxu0 %v13939_v13  ;;  %2973 = vmatprep.mubr.f32.mxu0 %v2884_v14  ;;  %v3592_v13 = vrot.slane %v3584_v2, %v14867_v53  ;;  %v12990_v14 = vld [vmem:[%s16775_s3 + $0x328] sm:$0xff]  ;;  %v13011_v2 = vld [vmem:[%s16775_s3 + $0x3b8] sm:$0x3] }
 0x172   :  { %13586 = vmatmul.mubr.msk.f32.vlgmr.msra.gmra.mrb[46].mxu1 %vm498_vm4, %v2524_v24  ;;  %13946 = vmatprep.subr.bf16.mxu0 %v13945_v17  ;;  %v13969_v17 = vpack.c.bf16 %v12995_v8, %v12988_v6  ;;  %v13973_v23 = vpack.c.bf16 %v12997_v15, %v12990_v14  ;;  %v4299_v8 = vld [vmem:[#allocation2 + $0x39] ss:$8 sm:$0x70] }
 0x173   :  { %13944 = vmatpush1.bf16.xpose.msra.mxu1 %v13943_v20  ;;  %3043 = vmatprep.mubr.f32.mxu1 %v2894_v25  ;;  %v13966_v20 = vpack.c.bf16 %v12983_v11, %v12976_v10  ;;  %v3600_v24 = vcombine.high %v3592_v13, %v3592_v13  ;;  %v12987_v25 = vld [vmem:[%s16775_s3 + $0x310] sm:$0xff]  ;;  %v3608_v50 = vrot.slane %v3592_v13, %v14867_v53  ;;  %v13013_v11 = vld [vmem:[%s16775_s3 + $0x3c8] sm:$0x3] }
 0x174   :  { %13949 = vmatprep.subr.bf16.mxu1 %v14405_v47  ;;  %v13971_v30 = vpack.c.bf16 %v12994_v26, %v12987_v25  ;;  %v13006_v10 = vld [vmem:[%s16775_s3 + $0x390] sm:$0xff] }
 0x175   :  { %v3622_v34 = vrot.slane %v3600_v24, %v14867_v53 }
 0x177   :  { %v3632_v42 = vcombine.high %v3622_v34, %v3622_v34 }
 0x178   :  { %2974 = vmatmul.mubr.f32.vlgmr.msra.gmra.mrb[48].mxu0 %v2870_v32  ;;  %v3246_v32 = vrot.slane %v3230_v62, %v14867_v53  ;;  %v3630_v62 = vcombine.high %v3608_v50, %v3608_v50 }
 0x179   :  { %13948 = vmatpush1.bf16.xpose.msra.mxu0 %v13947_v16  ;;  %3113 = vmatprep.mubr.f32.mxu0 %v2891_v37  ;;  %v3933_v16 = vld [vmem:[#allocation2 + $0x118] ss:$8 sm:$0xf] }
 0x17a   :  { %3044 = vmatmul.mubr.f32.vlgmr.msra.gmra.mrb[48].mxu1 %v2892_v39  ;;  %13954 = vmatprep.subr.bf16.mxu0 %v13953_v36  ;;  %v3935_v35 = vor.u32 %v3934_v27, %v3933_v16  ;;  %v13977_v36 = vpack.c.bf16 %v12999_v29, %v12992_v28  ;;  %v3929_v37 = vld [vmem:[#allocation2 + $0x38] ss:$8 sm:$0xf]  ;;  %v3599_v39 = vrot.slane %v3585_v31, %v14867_v53 }
 0x17b   :  { %13952 = vmatpush3.bf16.xpose.msk.msra.mxu1 %vm14901_vm5, %v13950_v38  ;;  %13592 = vmatprep.mubr.msk.f32.mxu1 %vm14407_vm6, %v14402_v7  ;;  %v13975_v38 = vpack.c.bf16 %v12996_v48, %v12989_v33  ;;  %v3262_v41 = vcombine.high %v3246_v32, %v3246_v32  ;;  %v13008_v27 = vld [vmem:[%s16775_s3 + $0x3a0] sm:$0xff]  ;;  %v13015_v28 = vld [vmem:[%s16775_s3 + $0x3d8] sm:$0x3]  ;;  %v13010_v33 = vld [vmem:[%s16775_s3 + $0x3b0] sm:$0xff] }
 0x17c   :  { %13958 = vmatprep.subr.bf16.mxu1 %v13957_v40  ;;  %v3931_v40 = vor.u32 %v3930_v55, %v3929_v37  ;;  %v3601_v45 = vcombine.high %v3599_v39, %v3599_v39  ;;  %v13022_v31 = vld [vmem:[%s16775_s3 + $0x3f8] sm:$0xff]  ;;  %v13029_v55 = vld [vmem:[%s16775_s3 + $0x430] sm:$0x3]  ;;  %v13017_v48 = vld [vmem:[%s16775_s3 + $0x3e8] sm:$0x3]  ;;  %v13995_v16 = vpack.c.bf16 %v13015_v28, %v13008_v27 }
 0x17d   :  { %v5041_v27 = vld [vmem:[#allocation2 + $0x11b] ss:$8 sm:$0x70] }
 0x17e   :  { %v3953_v43 = vcombine.low %v3931_v40, %v3935_v35  ;;  %v3629_v59 = vrot.slane %v3601_v45, %v14867_v53  ;;  %v3954_v6 = vcombine.high %v3931_v40, %v3935_v35  ;;  %v13031_v35 = vld [vmem:[%s16775_s3 + $0x440] sm:$0x3]  ;;  %v13033_v45 = vld [vmem:[%s16775_s3 + $0x450] sm:$0x3]  ;;  %v13043_v28 = vld [vmem:[%s16775_s3 + $0x488] sm:$0xff] }
 0x180   :  { %3114 = vmatmul.mubr.f32.vlgmr.msra.gmra.mrb[50].mxu0 %v2877_v51  ;;  %v12993_v51 = vld [vmem:[%s16775_s3 + $0x340] sm:$0xff] }
 0x181   :  { %13956 = vmatpush1.bf16.xpose.msra.mxu0 %v13955_v54  ;;  %3342 = vmatprep.mubr.f32.mxu0 %v3253_v56  ;;  %v3961_v54 = vrot.slane %v3953_v43, %v14867_v53  ;;  %v13007_v56 = vld [vmem:[%s16775_s3 + $0x398] sm:$0xff]  ;;  %v13028_v43 = vld [vmem:[%s16775_s3 + $0x428] sm:$0x3] }
 0x182   :  { %13593 = vmatmul.mubr.msk.f32.vlgmr.msra.gmra.mrb[50].mxu1 %vm498_vm4, %v2893_v0  ;;  %13962 = vmatprep.subr.bf16.mxu0 %v13961_v58  ;;  %v13985_v58 = vpack.c.bf16 %v13012_v49, %v13005_v46  ;;  %v13989_v63 = vpack.c.bf16 %v13014_v57, %v13007_v56  ;;  %v4668_v49 = vld [vmem:[#allocation2 + $0x3a] ss:$8 sm:$0x70] }
 0x183   :  { %13960 = vmatpush1.bf16.xpose.msra.mxu1 %v13959_v60  ;;  %3412 = vmatprep.mubr.f32.mxu1 %v3263_v1  ;;  %v13982_v60 = vpack.c.bf16 %v13000_v52, %v12993_v51  ;;  %v3969_v0 = vcombine.high %v3961_v54, %v3961_v54  ;;  %v13004_v1 = vld [vmem:[%s16775_s3 + $0x380] sm:$0xff]  ;;  %v13030_v52 = vld [vmem:[%s16775_s3 + $0x438] sm:$0x3] }
 0x184   :  { %13965 = vmatprep.subr.bf16.mxu1 %v14405_v47  ;;  %v13987_v13 = vpack.c.bf16 %v13011_v2, %v13004_v1  ;;  %v13023_v51 = vld [vmem:[%s16775_s3 + $0x400] sm:$0xff] }
 0x185   :  { %v3991_v14 = vrot.slane %v3969_v0, %v14867_v53 }
 0x187   :  { %v4001_v25 = vcombine.high %v3991_v14, %v3991_v14 }
 0x188   :  { %3343 = vmatmul.mubr.f32.vlgmr.msra.gmra.mrb[52].mxu0 %v3239_v9  ;;  %v3615_v9 = vrot.slane %v3599_v39, %v14867_v53 }
 0x189   :  { %13964 = vmatpush1.bf16.xpose.msra.mxu0 %v13963_v12  ;;  %3482 = vmatprep.mubr.f32.mxu0 %v3260_v18  ;;  %v4302_v12 = vld [vmem:[#allocation2 + $0x119] ss:$8 sm:$0xf] }
 0x18a   :  { %3413 = vmatmul.mubr.f32.vlgmr.msra.gmra.mrb[52].mxu1 %v3261_v21  ;;  %13970 = vmatprep.subr.bf16.mxu0 %v13969_v17  ;;  %v4304_v15 = vor.u32 %v4303_v3, %v4302_v12  ;;  %v13993_v17 = vpack.c.bf16 %v13016_v5, %v13009_v4  ;;  %v4298_v18 = vld [vmem:[#allocation2 + $0x39] ss:$8 sm:$0xf]  ;;  %v3968_v21 = vrot.slane %v3954_v6, %v14867_v53 }
 0x18b   :  { %13968 = vmatpush3.bf16.xpose.msk.msra.mxu1 %vm14901_vm5, %v13966_v20  ;;  %13599 = vmatprep.mubr.msk.f32.mxu1 %vm14407_vm6, %v14402_v7  ;;  %v13991_v20 = vpack.c.bf16 %v13013_v11, %v13006_v10  ;;  %v3631_v24 = vcombine.high %v3615_v9, %v3615_v9  ;;  %v13025_v3 = vld [vmem:[%s16775_s3 + $0x410] sm:$0xff]  ;;  %v13032_v4 = vld [vmem:[%s16775_s3 + $0x448] sm:$0x3]  ;;  %v13027_v10 = vld [vmem:[%s16775_s3 + $0x420] sm:$0xff] }
 0x18c   :  { %13974 = vmatprep.subr.bf16.mxu1 %v13973_v23  ;;  %v4300_v23 = vor.u32 %v4299_v8, %v4298_v18  ;;  %v3970_v29 = vcombine.high %v3968_v21, %v3968_v21  ;;  %v13039_v6 = vld [vmem:[%s16775_s3 + $0x468] sm:$0xff]  ;;  %v13046_v8 = vld [vmem:[%s16775_s3 + $0x4a0] sm:$0x3]  ;;  %v13034_v11 = vld [vmem:[%s16775_s3 + $0x458] sm:$0x3]  ;;  %v14011_v12 = vpack.c.bf16 %v13032_v4, %v13025_v3 }
 0x18d   :  { %v5410_v3 = vld [vmem:[#allocation2 + $0x11c] ss:$8 sm:$0x70] }
 0x18e   :  { %v4322_v26 = vcombine.low %v4300_v23, %v4304_v15  ;;  %v3998_v37 = vrot.slane %v3970_v29, %v14867_v53  ;;  %v4323_v46 = vcombine.high %v4300_v23, %v4304_v15  ;;  %v13048_v15 = vld [vmem:[%s16775_s3 + $0x4b0] sm:$0x3]  ;;  %v13050_v29 = vld [vmem:[%s16775_s3 + $0x4c0] sm:$0x3]  ;;  %v13060_v4 = vld [vmem:[%s16775_s3 + $0x4f8] sm:$0xff] }
 0x190   :  { %3483 = vmatmul.mubr.f32.vlgmr.msra.gmra.mrb[54].mxu0 %v3246_v32  ;;  %v3977_v32 = vrot.slane %v3961_v54, %v14867_v53 }
 0x191   :  { %13972 = vmatpush1.bf16.xpose.msra.mxu0 %v13971_v30  ;;  %3711 = vmatprep.mubr.f32.mxu0 %v3622_v34  ;;  %v4330_v30 = vrot.slane %v4322_v26, %v14867_v53  ;;  %v13024_v34 = vld [vmem:[%s16775_s3 + $0x408] sm:$0xff]  ;;  %v13045_v26 = vld [vmem:[%s16775_s3 + $0x498] sm:$0x3] }
 0x192   :  { %13600 = vmatmul.mubr.msk.f32.vlgmr.msra.gmra.mrb[54].mxu1 %vm498_vm4, %v3262_v41  ;;  %13978 = vmatprep.subr.bf16.mxu0 %v13977_v36  ;;  %v14001_v36 = vpack.c.bf16 %v13029_v55, %v13022_v31  ;;  %v3999_v39 = vcombine.high %v3977_v32, %v3977_v32  ;;  %v14005_v40 = vpack.c.bf16 %v13031_v35, %v13024_v34  ;;  %v5037_v55 = vld [vmem:[#allocation2 + $0x3b] ss:$8 sm:$0x70] }
 0x193   :  { %13976 = vmatpush1.bf16.xpose.msra.mxu1 %v13975_v38  ;;  %3781 = vmatprep.mubr.f32.mxu1 %v3632_v42  ;;  %v13998_v38 = vpack.c.bf16 %v13017_v48, %v13010_v33  ;;  %v4338_v41 = vcombine.high %v4330_v30, %v4330_v30  ;;  %v13021_v42 = vld [vmem:[%s16775_s3 + $0x3f0] sm:$0xff]  ;;  %v13047_v48 = vld [vmem:[%s16775_s3 + $0x4a8] sm:$0x3] }
 0x194   :  { %13981 = vmatprep.subr.bf16.mxu1 %v14405_v47  ;;  %v14003_v54 = vpack.c.bf16 %v13028_v43, %v13021_v42  ;;  %v13040_v33 = vld [vmem:[%s16775_s3 + $0x470] sm:$0xff] }
 0x195   :  { %v4360_v56 = vrot.slane %v4338_v41, %v14867_v53 }
 0x197   :  { %v4370_v1 = vcombine.high %v4360_v56, %v4360_v56 }
 0x198   :  { %3712 = vmatmul.mubr.f32.vlgmr.msra.gmra.mrb[56].mxu0 %v3608_v50  ;;  %v3984_v50 = vrot.slane %v3968_v21, %v14867_v53 }
 0x199   :  { %13980 = vmatpush1.bf16.xpose.msra.mxu0 %v13979_v19  ;;  %3851 = vmatprep.mubr.f32.mxu0 %v3629_v59  ;;  %v4671_v19 = vld [vmem:[#allocation2 + $0x11a] ss:$8 sm:$0xf] }
 0x19a   :  { %3782 = vmatmul.mubr.f32.vlgmr.msra.gmra.mrb[56].mxu1 %v3630_v62  ;;  %13986 = vmatprep.subr.bf16.mxu0 %v13985_v58  ;;  %v4673_v57 = vor.u32 %v4672_v44, %v4671_v19  ;;  %v14009_v58 = vpack.c.bf16 %v13033_v45, %v13026_v61  ;;  %v4667_v59 = vld [vmem:[#allocation2 + $0x3a] ss:$8 sm:$0xf]  ;;  %v4337_v62 = vrot.slane %v4323_v46, %v14867_v53  ;;  %v13049_v61 = vld [vmem:[%s16775_s3 + $0x4b8] sm:$0x3] }
 0x19b   :  { %13984 = vmatpush3.bf16.xpose.msk.msra.mxu1 %vm14901_vm5, %v13982_v60  ;;  %13606 = vmatprep.mubr.msk.f32.mxu1 %vm14407_vm6, %v14402_v7  ;;  %v14007_v60 = vpack.c.bf16 %v13030_v52, %v13023_v51  ;;  %v4000_v0 = vcombine.high %v3984_v50, %v3984_v50  ;;  %v13042_v44 = vld [vmem:[%s16775_s3 + $0x480] sm:$0xff]  ;;  %v13056_v46 = vld [vmem:[%s16775_s3 + $0x4d8] sm:$0xff]  ;;  %v13044_v51 = vld [vmem:[%s16775_s3 + $0x490] sm:$0xff] }
 0x19c   :  { %13990 = vmatprep.subr.bf16.mxu1 %v13989_v63  ;;  %v4669_v63 = vor.u32 %v4668_v49, %v4667_v59  ;;  %v4339_v5 = vcombine.high %v4337_v62, %v4337_v62  ;;  %v13063_v49 = vld [vmem:[%s16775_s3 + $0x510] sm:$0x3]  ;;  %v13051_v52 = vld [vmem:[%s16775_s3 + $0x4c8] sm:$0x3]  ;;  %v14027_v19 = vpack.c.bf16 %v13049_v61, %v13042_v44 }
 0x19d   :  { %v5779_v44 = vld [vmem:[#allocation2 + $0x11d] ss:$8 sm:$0x70] }
 0x19e   :  { %v4691_v2 = vcombine.low %v4669_v63, %v4673_v57  ;;  %v4367_v18 = vrot.slane %v4339_v5, %v14867_v53  ;;  %v4692_v31 = vcombine.high %v4669_v63, %v4673_v57  ;;  %v13065_v57 = vld [vmem:[%s16775_s3 + $0x520] sm:$0x3]  ;;  %v13067_v5 = vld [vmem:[%s16775_s3 + $0x530] sm:$0x3]  ;;  %v13077_v61 = vld [vmem:[%s16775_s3 + $0x568] sm:$0xff] }
 0x1a0   :  { %3852 = vmatmul.mubr.f32.vlgmr.msra.gmra.mrb[58].mxu0 %v3615_v9  ;;  %v4346_v9 = vrot.slane %v4330_v30, %v14867_v53 }
 0x1a1   :  { %13988 = vmatpush1.bf16.xpose.msra.mxu0 %v13987_v13  ;;  %4080 = vmatprep.mubr.f32.mxu0 %v3991_v14  ;;  %v4699_v13 = vrot.slane %v4691_v2, %v14867_v53  ;;  %v13041_v14 = vld [vmem:[%s16775_s3 + $0x478] sm:$0xff]  ;;  %v13062_v2 = vld [vmem:[%s16775_s3 + $0x508] sm:$0x3] }
 0x1a2   :  { %13607 = vmatmul.mubr.msk.f32.vlgmr.msra.gmra.mrb[58].mxu1 %vm498_vm4, %v3631_v24  ;;  %13994 = vmatprep.subr.bf16.mxu0 %v13993_v17  ;;  %v14017_v17 = vpack.c.bf16 %v13046_v8, %v13039_v6  ;;  %v4368_v21 = vcombine.high %v4346_v9, %v4346_v9  ;;  %v14021_v23 = vpack.c.bf16 %v13048_v15, %v13041_v14  ;;  %v5406_v8 = vld [vmem:[#allocation2 + $0x3c] ss:$8 sm:$0x70] }
 0x1a3   :  { %13992 = vmatpush1.bf16.xpose.msra.mxu1 %v13991_v20  ;;  %4150 = vmatprep.mubr.f32.mxu1 %v4001_v25  ;;  %v14014_v20 = vpack.c.bf16 %v13034_v11, %v13027_v10  ;;  %v4707_v24 = vcombine.high %v4699_v13, %v4699_v13  ;;  %v13038_v25 = vld [vmem:[%s16775_s3 + $0x460] sm:$0xff]  ;;  %v13064_v11 = vld [vmem:[%s16775_s3 + $0x518] sm:$0x3] }
 0x1a4   :  { %13997 = vmatprep.subr.bf16.mxu1 %v14405_v47  ;;  %v14019_v30 = vpack.c.bf16 %v13045_v26, %v13038_v25  ;;  %v13057_v10 = vld [vmem:[%s16775_s3 + $0x4e0] sm:$0xff] }
 0x1a5   :  { %v4729_v34 = vrot.slane %v4707_v24, %v14867_v53 }
 0x1a7   :  { %v4739_v42 = vcombine.high %v4729_v34, %v4729_v34 }
 0x1a8   :  { %4081 = vmatmul.mubr.f32.vlgmr.msra.gmra.mrb[60].mxu0 %v3977_v32  ;;  %v4353_v32 = vrot.slane %v4337_v62, %v14867_v53 }
 0x1a9   :  { %13996 = vmatpush1.bf16.xpose.msra.mxu0 %v13995_v16  ;;  %4220 = vmatprep.mubr.f32.mxu0 %v3998_v37  ;;  %v5040_v16 = vld [vmem:[#allocation2 + $0x11b] ss:$8 sm:$0xf] }
 0x1aa   :  { %4151 = vmatmul.mubr.f32.vlgmr.msra.gmra.mrb[60].mxu1 %v3999_v39  ;;  %14002 = vmatprep.subr.bf16.mxu0 %v14001_v36  ;;  %v5042_v35 = vor.u32 %v5041_v27, %v5040_v16  ;;  %v14025_v36 = vpack.c.bf16 %v13050_v29, %v13043_v28  ;;  %v5036_v37 = vld [vmem:[#allocation2 + $0x3b] ss:$8 sm:$0xf]  ;;  %v4706_v39 = vrot.slane %v4692_v31, %v14867_v53  ;;  %v13066_v28 = vld [vmem:[%s16775_s3 + $0x528] sm:$0x3] }
 0x1ab   :  { %14000 = vmatpush3.bf16.xpose.msk.msra.mxu1 %vm14901_vm5, %v13998_v38  ;;  %13613 = vmatprep.mubr.msk.f32.mxu1 %vm14407_vm6, %v14402_v7  ;;  %v14023_v38 = vpack.c.bf16 %v13047_v48, %v13040_v33  ;;  %v4369_v41 = vcombine.high %v4353_v32, %v4353_v32  ;;  %v13059_v27 = vld [vmem:[%s16775_s3 + $0x4f0] sm:$0xff]  ;;  %v13073_v31 = vld [vmem:[%s16775_s3 + $0x548] sm:$0xff]  ;;  %v13061_v33 = vld [vmem:[%s16775_s3 + $0x500] sm:$0xff] }
 0x1ac   :  { %14006 = vmatprep.subr.bf16.mxu1 %v14005_v40  ;;  %v5038_v40 = vor.u32 %v5037_v55, %v5036_v37  ;;  %v4708_v45 = vcombine.high %v4706_v39, %v4706_v39  ;;  %v13080_v55 = vld [vmem:[%s16775_s3 + $0x580] sm:$0x3]  ;;  %v13068_v48 = vld [vmem:[%s16775_s3 + $0x538] sm:$0x3]  ;;  %v14043_v16 = vpack.c.bf16 %v13066_v28, %v13059_v27 }
 0x1ad   :  { %v6148_v27 = vld [vmem:[#allocation2 + $0x11e] ss:$8 sm:$0x70] }
 0x1ae   :  { %v5060_v43 = vcombine.low %v5038_v40, %v5042_v35  ;;  %v4736_v59 = vrot.slane %v4708_v45, %v14867_v53  ;;  %v5061_v6 = vcombine.high %v5038_v40, %v5042_v35  ;;  %v13082_v35 = vld [vmem:[%s16775_s3 + $0x590] sm:$0x3]  ;;  %v13084_v45 = vld [vmem:[%s16775_s3 + $0x5a0] sm:$0x3]  ;;  %v13094_v28 = vld [vmem:[%s16775_s3 + $0x5d8] sm:$0xff] }
 0x1b0   :  { %4221 = vmatmul.mubr.f32.vlgmr.msra.gmra.mrb[62].mxu0 %v3984_v50  ;;  %v4715_v50 = vrot.slane %v4699_v13, %v14867_v53 }
 0x1b1   :  { %14004 = vmatpush1.bf16.xpose.msra.mxu0 %v14003_v54  ;;  %4449 = vmatprep.mubr.f32.mxu0 %v4360_v56  ;;  %v5068_v54 = vrot.slane %v5060_v43, %v14867_v53  ;;  %v13058_v56 = vld [vmem:[%s16775_s3 + $0x4e8] sm:$0xff]  ;;  %v13079_v43 = vld [vmem:[%s16775_s3 + $0x578] sm:$0x3] }
 0x1b2   :  { %13614 = vmatmul.mubr.msk.f32.vlgmr.msra.gmra.mrb[62].mxu1 %vm498_vm4, %v4000_v0  ;;  %14010 = vmatprep.subr.bf16.mxu0 %v14009_v58  ;;  %v14033_v58 = vpack.c.bf16 %v13063_v49, %v13056_v46  ;;  %v4737_v62 = vcombine.high %v4715_v50, %v4715_v50  ;;  %v14037_v63 = vpack.c.bf16 %v13065_v57, %v13058_v56  ;;  %v5775_v49 = vld [vmem:[#allocation2 + $0x3d] ss:$8 sm:$0x70] }
 0x1b3   :  { %14008 = vmatpush1.bf16.xpose.msra.mxu1 %v14007_v60  ;;  %4519 = vmatprep.mubr.f32.mxu1 %v4370_v1  ;;  %v14030_v60 = vpack.c.bf16 %v13051_v52, %v13044_v51  ;;  %v5076_v0 = vcombine.high %v5068_v54, %v5068_v54  ;;  %v13055_v1 = vld [vmem:[%s16775_s3 + $0x4d0] sm:$0xff]  ;;  %v13081_v52 = vld [vmem:[%s16775_s3 + $0x588] sm:$0x3] }
 0x1b4   :  { %14013 = vmatprep.subr.bf16.mxu1 %v14405_v47  ;;  %v14035_v13 = vpack.c.bf16 %v13062_v2, %v13055_v1  ;;  %v13074_v51 = vld [vmem:[%s16775_s3 + $0x550] sm:$0xff] }
 0x1b5   :  { %v5098_v14 = vrot.slane %v5076_v0, %v14867_v53 }
 0x1b7   :  { %v5108_v25 = vcombine.high %v5098_v14, %v5098_v14 }
 0x1b8   :  { %4450 = vmatmul.mubr.f32.vlgmr.msra.gmra.mrb[64].mxu0 %v4346_v9  ;;  %v4722_v9 = vrot.slane %v4706_v39, %v14867_v53 }
 0x1b9   :  { %14012 = vmatpush1.bf16.xpose.msra.mxu0 %v14011_v12  ;;  %4589 = vmatprep.mubr.f32.mxu0 %v4367_v18  ;;  %v5409_v12 = vld [vmem:[#allocation2 + $0x11c] ss:$8 sm:$0xf] }
 0x1ba   :  { %4520 = vmatmul.mubr.f32.vlgmr.msra.gmra.mrb[64].mxu1 %v4368_v21  ;;  %14018 = vmatprep.subr.bf16.mxu0 %v14017_v17  ;;  %v5411_v15 = vor.u32 %v5410_v3, %v5409_v12  ;;  %v14041_v17 = vpack.c.bf16 %v13067_v5, %v13060_v4  ;;  %v5405_v18 = vld [vmem:[#allocation2 + $0x3c] ss:$8 sm:$0xf]  ;;  %v5075_v21 = vrot.slane %v5061_v6, %v14867_v53  ;;  %v13083_v4 = vld [vmem:[%s16775_s3 + $0x598] sm:$0x3] }
 0x1bb   :  { %14016 = vmatpush3.bf16.xpose.msk.msra.mxu1 %vm14901_vm5, %v14014_v20  ;;  %13620 = vmatprep.mubr.msk.f32.mxu1 %vm14407_vm6, %v14402_v7  ;;  %v14039_v20 = vpack.c.bf16 %v13064_v11, %v13057_v10  ;;  %v4738_v24 = vcombine.high %v4722_v9, %v4722_v9  ;;  %v13076_v3 = vld [vmem:[%s16775_s3 + $0x560] sm:$0xff]  ;;  %v13090_v6 = vld [vmem:[%s16775_s3 + $0x5b8] sm:$0xff]  ;;  %v13078_v10 = vld [vmem:[%s16775_s3 + $0x570] sm:$0xff] }
 0x1bc   :  { %14022 = vmatprep.subr.bf16.mxu1 %v14021_v23  ;;  %v5407_v23 = vor.u32 %v5406_v8, %v5405_v18  ;;  %v5077_v29 = vcombine.high %v5075_v21, %v5075_v21  ;;  %v13097_v8 = vld [vmem:[%s16775_s3 + $0x5f0] sm:$0x3]  ;;  %v13085_v11 = vld [vmem:[%s16775_s3 + $0x5a8] sm:$0x3]  ;;  %v14059_v12 = vpack.c.bf16 %v13083_v4, %v13076_v3 }
 0x1bd   :  { %v6513_v3 = vld [vmem:[#allocation2 + $0x3f] ss:$8 sm:$0x70] }
 0x1be   :  { %v5429_v26 = vcombine.low %v5407_v23, %v5411_v15  ;;  %v5105_v37 = vrot.slane %v5077_v29, %v14867_v53  ;;  %v5430_v46 = vcombine.high %v5407_v23, %v5411_v15  ;;  %v13099_v15 = vld [vmem:[%s16775_s3 + $0x600] sm:$0x3]  ;;  %v13101_v29 = vld [vmem:[%s16775_s3 + $0x610] sm:$0x3] }
 0x1bf   :  { %v6516_v4 = vld [vmem:[#allocation2 + $0x11f] ss:$8 sm:$0xf] }
 0x1c0   :  { %4590 = vmatmul.mubr.f32.vlgmr.msra.gmra.mrb[66].mxu0 %v4353_v32  ;;  %v5084_v32 = vrot.slane %v5068_v54, %v14867_v53 }
 0x1c1   :  { %14020 = vmatpush1.bf16.xpose.msra.mxu0 %v14019_v30  ;;  %4818 = vmatprep.mubr.f32.mxu0 %v4729_v34  ;;  %v5437_v30 = vrot.slane %v5429_v26, %v14867_v53  ;;  %v13075_v34 = vld [vmem:[%s16775_s3 + $0x558] sm:$0xff]  ;;  %v13096_v26 = vld [vmem:[%s16775_s3 + $0x5e8] sm:$0x3] }
 0x1c2   :  { %13621 = vmatmul.mubr.msk.f32.vlgmr.msra.gmra.mrb[66].mxu1 %vm498_vm4, %v4369_v41  ;;  %14026 = vmatprep.subr.bf16.mxu0 %v14025_v36  ;;  %v14049_v36 = vpack.c.bf16 %v13080_v55, %v13073_v31  ;;  %v5106_v39 = vcombine.high %v5084_v32, %v5084_v32  ;;  %v14053_v40 = vpack.c.bf16 %v13082_v35, %v13075_v34  ;;  %v6144_v55 = vld [vmem:[#allocation2 + $0x3e] ss:$8 sm:$0x70] }
 0x1c3   :  { %14024 = vmatpush1.bf16.xpose.msra.mxu1 %v14023_v38  ;;  %4888 = vmatprep.mubr.f32.mxu1 %v4739_v42  ;;  %v14046_v38 = vpack.c.bf16 %v13068_v48, %v13061_v33  ;;  %v5445_v41 = vcombine.high %v5437_v30, %v5437_v30  ;;  %v13072_v42 = vld [vmem:[%s16775_s3 + $0x540] sm:$0xff]  ;;  %v13098_v48 = vld [vmem:[%s16775_s3 + $0x5f8] sm:$0x3] }
 0x1c4   :  { %14029 = vmatprep.subr.bf16.mxu1 %v14405_v47  ;;  %v14051_v54 = vpack.c.bf16 %v13079_v43, %v13072_v42  ;;  %v13091_v33 = vld [vmem:[%s16775_s3 + $0x5c0] sm:$0xff] }
 0x1c5   :  { %v5467_v56 = vrot.slane %v5445_v41, %v14867_v53 }
 0x1c7   :  { %v5477_v1 = vcombine.high %v5467_v56, %v5467_v56 }
 0x1c8   :  { %4819 = vmatmul.mubr.f32.vlgmr.msra.gmra.mrb[68].mxu0 %v4715_v50  ;;  %v5091_v50 = vrot.slane %v5075_v21, %v14867_v53 }
 0x1c9   :  { %14028 = vmatpush1.bf16.xpose.msra.mxu0 %v14027_v19  ;;  %4958 = vmatprep.mubr.f32.mxu0 %v4736_v59  ;;  %v5778_v19 = vld [vmem:[#allocation2 + $0x11d] ss:$8 sm:$0xf] }
 0x1ca   :  { %4889 = vmatmul.mubr.f32.vlgmr.msra.gmra.mrb[68].mxu1 %v4737_v62  ;;  %14034 = vmatprep.subr.bf16.mxu0 %v14033_v58  ;;  %v5780_v57 = vor.u32 %v5779_v44, %v5778_v19  ;;  %v14057_v58 = vpack.c.bf16 %v13084_v45, %v13077_v61  ;;  %v5774_v59 = vld [vmem:[#allocation2 + $0x3d] ss:$8 sm:$0xf]  ;;  %v5444_v62 = vrot.slane %v5430_v46, %v14867_v53  ;;  %v13100_v61 = vld [vmem:[%s16775_s3 + $0x608] sm:$0x3] }
 0x1cb   :  { %14032 = vmatpush3.bf16.xpose.msk.msra.mxu1 %vm14901_vm5, %v14030_v60  ;;  %13627 = vmatprep.mubr.msk.f32.mxu1 %vm14407_vm6, %v14402_v7  ;;  %v14055_v60 = vpack.c.bf16 %v13081_v52, %v13074_v51  ;;  %v5107_v0 = vcombine.high %v5091_v50, %v5091_v50  ;;  %v13093_v44 = vld [vmem:[%s16775_s3 + $0x5d0] sm:$0xff]  ;;  %v13107_v46 = vld [vmem:[%s16775_s3 + $0x628] sm:$0xff]  ;;  %v13095_v51 = vld [vmem:[%s16775_s3 + $0x5e0] sm:$0xff] }
 0x1cc   :  { %14038 = vmatprep.subr.bf16.mxu1 %v14037_v63  ;;  %v5776_v63 = vor.u32 %v5775_v49, %v5774_v59  ;;  %v5446_v5 = vcombine.high %v5444_v62, %v5444_v62  ;;  %v13114_v49 = vld [vmem:[%s16775_s3 + $0x660] sm:$0x3]  ;;  %v13102_v52 = vld [vmem:[%s16775_s3 + $0x618] sm:$0x3]  ;;  %v14075_v19 = vpack.c.bf16 %v13100_v61, %v13093_v44 }
 0x1cd   :  { %v13133_v44 = vld [vmem:[%s16775_s3 + $0x6e0] sm:$0x3] }
 0x1ce   :  { %v5798_v2 = vcombine.low %v5776_v63, %v5780_v57  ;;  %v5474_v18 = vrot.slane %v5446_v5, %v14867_v53  ;;  %v5799_v31 = vcombine.high %v5776_v63, %v5780_v57  ;;  %v13116_v57 = vld [vmem:[%s16775_s3 + $0x670] sm:$0x3]  ;;  %v6517_v5 = vld [vmem:[#allocation2 + $0x11f] ss:$8 sm:$0x70] }
 0x1d0   :  { %4959 = vmatmul.mubr.f32.vlgmr.msra.gmra.mrb[70].mxu0 %v4722_v9  ;;  %v5453_v9 = vrot.slane %v5437_v30, %v14867_v53 }
 0x1d1   :  { %14036 = vmatpush1.bf16.xpose.msra.mxu0 %v14035_v13  ;;  %5187 = vmatprep.mubr.f32.mxu0 %v5098_v14  ;;  %v5806_v13 = vrot.slane %v5798_v2, %v14867_v53  ;;  %v13092_v14 = vld [vmem:[%s16775_s3 + $0x5c8] sm:$0xff]  ;;  %v13113_v2 = vld [vmem:[%s16775_s3 + $0x658] sm:$0x3] }
 0x1d2   :  { %13628 = vmatmul.mubr.msk.f32.vlgmr.msra.gmra.mrb[70].mxu1 %vm498_vm4, %v4738_v24  ;;  %14042 = vmatprep.subr.bf16.mxu0 %v14041_v17  ;;  %v14065_v17 = vpack.c.bf16 %v13097_v8, %v13090_v6  ;;  %v5475_v21 = vcombine.high %v5453_v9, %v5453_v9  ;;  %v14069_v23 = vpack.c.bf16 %v13099_v15, %v13092_v14  ;;  %v13111_v8 = vld [vmem:[%s16775_s3 + $0x648] sm:$0xff] }
 0x1d3   :  { %14040 = vmatpush1.bf16.xpose.msra.mxu1 %v14039_v20  ;;  %5257 = vmatprep.mubr.f32.mxu1 %v5108_v25  ;;  %v14062_v20 = vpack.c.bf16 %v13085_v11, %v13078_v10  ;;  %v5814_v24 = vcombine.high %v5806_v13, %v5806_v13  ;;  %v13089_v25 = vld [vmem:[%s16775_s3 + $0x5b0] sm:$0xff]  ;;  %v13115_v14 = vld [vmem:[%s16775_s3 + $0x668] sm:$0x3] }
 0x1d4   :  { %14045 = vmatprep.subr.bf16.mxu1 %v14405_v47  ;;  %v14067_v30 = vpack.c.bf16 %v13096_v26, %v13089_v25  ;;  %v6512_v25 = vld [vmem:[#allocation2 + $0x3f] ss:$8 sm:$0xf] }
 0x1d5   :  { %v5836_v34 = vrot.slane %v5814_v24, %v14867_v53 }
 0x1d7   :  { %v5846_v42 = vcombine.high %v5836_v34, %v5836_v34 }
 0x1d8   :  { %5188 = vmatmul.mubr.f32.vlgmr.msra.gmra.mrb[72].mxu0 %v5084_v32  ;;  %v5460_v32 = vrot.slane %v5444_v62, %v14867_v53 }
 0x1d9   :  { %14044 = vmatpush1.bf16.xpose.msra.mxu0 %v14043_v16  ;;  %5327 = vmatprep.mubr.f32.mxu0 %v5105_v37  ;;  %v6147_v16 = vld [vmem:[#allocation2 + $0x11e] ss:$8 sm:$0xf] }
 0x1da   :  { %5258 = vmatmul.mubr.f32.vlgmr.msra.gmra.mrb[72].mxu1 %v5106_v39  ;;  %14050 = vmatprep.subr.bf16.mxu0 %v14049_v36  ;;  %v15577_v35 = vor.u32 %v6148_v27, %v6147_v16  ;;  %v14073_v36 = vpack.c.bf16 %v13101_v29, %v13094_v28  ;;  %v6143_v37 = vld [vmem:[#allocation2 + $0x3e] ss:$8 sm:$0xf]  ;;  %v5813_v39 = vrot.slane %v5799_v31, %v14867_v53 }
 0x1db   :  { %14048 = vmatpush3.bf16.xpose.msk.msra.mxu1 %vm14901_vm5, %v14046_v38  ;;  %13634 = vmatprep.mubr.msk.f32.mxu1 %vm14407_vm6, %v14402_v7  ;;  %v14071_v38 = vpack.c.bf16 %v13098_v48, %v13091_v33  ;;  %v5476_v41 = vcombine.high %v5460_v32, %v5460_v32  ;;  %v15638_v28 = vor.u32 %v6513_v3, %v6512_v25  ;;  %v13117_v33 = vld [vmem:[%s16775_s3 + $0x678] sm:$0x3]  ;;  %v13134_v25 = vld [vmem:[%s16775_s3 + $0x6e8] sm:$0x3] }
 0x1dc   :  { %14054 = vmatprep.subr.bf16.mxu1 %v14053_v40  ;;  %v6145_v40 = vor.u32 %v6144_v55, %v6143_v37  ;;  %v5815_v45 = vcombine.high %v5813_v39, %v5813_v39 }
 0x1de   :  { %v6167_v43 = vcombine.low %v6145_v40, %v15577_v35  ;;  %v5843_v59 = vrot.slane %v5815_v45, %v14867_v53  ;;  %v6168_v10 = vcombine.high %v6145_v40, %v15577_v35 }
 0x1e0   :  { %5328 = vmatmul.mubr.f32.vlgmr.msra.gmra.mrb[74].mxu0 %v5091_v50  ;;  %v5822_v50 = vrot.slane %v5806_v13, %v14867_v53  ;;  %v13108_v13 = vld [vmem:[%s16775_s3 + $0x630] sm:$0xff]  ;;  %v6182_v27 = vrot.slane %v6168_v10, %v14867_v53 }
 0x1e1   :  { %14052 = vmatpush1.bf16.xpose.msra.mxu0 %v14051_v54  ;;  %5556 = vmatprep.mubr.f32.mxu0 %v5467_v56  ;;  %v6175_v54 = vrot.slane %v6167_v43, %v14867_v53  ;;  %v13109_v56 = vld [vmem:[%s16775_s3 + $0x638] sm:$0xff]  ;;  %v14087_v26 = vpack.c.bf16 %v13115_v14, %v13108_v13  ;;  %v13126_v43 = vld [vmem:[%s16775_s3 + $0x6a8] sm:$0xff] }
 0x1e2   :  { %13635 = vmatmul.mubr.msk.f32.vlgmr.msra.gmra.mrb[74].mxu1 %vm498_vm4, %v5107_v0  ;;  %14058 = vmatprep.subr.bf16.mxu0 %v14057_v58  ;;  %v14081_v58 = vpack.c.bf16 %v13114_v49, %v13107_v46  ;;  %v5844_v62 = vcombine.high %v5822_v50, %v5822_v50  ;;  %v14085_v63 = vpack.c.bf16 %v13116_v57, %v13109_v56  ;;  %v13130_v56 = vld [vmem:[%s16775_s3 + $0x6c8] sm:$0x3]  ;;  %v6882_v57 = vld [vmem:[#allocation2 + $0x70] ss:$8 sm:$0x70] }
 0x1e3   :  { %14056 = vmatpush1.bf16.xpose.msra.mxu1 %v14055_v60  ;;  %5626 = vmatprep.mubr.f32.mxu1 %v5477_v1  ;;  %v14078_v60 = vpack.c.bf16 %v13102_v52, %v13095_v51  ;;  %v6183_v0 = vcombine.high %v6175_v54, %v6175_v54  ;;  %v13106_v1 = vld [vmem:[%s16775_s3 + $0x620] sm:$0xff]  ;;  %v6184_v16 = vcombine.high %v6182_v27, %v6182_v27 }
 0x1e4   :  { %14061 = vmatprep.subr.bf16.mxu1 %v14405_v47  ;;  %v6191_v37 = vrot.slane %v6175_v54, %v14867_v53  ;;  %v14101_v52 = vpack.c.bf16 %v13133_v44, %v13126_v43  ;;  %v13123_v54 = vld [vmem:[%s16775_s3 + $0x690] sm:$0xff]  ;;  %v6198_v3 = vrot.slane %v6182_v27, %v14867_v53 }
 0x1e5   :  { %v6212_v49 = vrot.slane %v6184_v16, %v14867_v53  ;;  %v6881_v14 = vld [vmem:[#allocation2 + $0x70] ss:$8 sm:$0xf] }
 0x1e6   :  { %v6213_v51 = vcombine.high %v6191_v37, %v6191_v37 }
 0x1e8   :  { %5557 = vmatmul.mubr.f32.vlgmr.msra.gmra.mrb[76].mxu0 %v5453_v9  ;;  %v13118_v9 = vld [vmem:[%s16775_s3 + $0x680] sm:$0x3] }
 0x1e9   :  { %14060 = vmatpush1.bf16.xpose.msra.mxu0 %v14059_v12  ;;  %5696 = vmatprep.mubr.f32.mxu0 %v5474_v18  ;;  %v5829_v12 = vrot.slane %v5813_v39, %v14867_v53  ;;  %v6205_v18 = vrot.slane %v6183_v0, %v14867_v53  ;;  %v14089_v24 = vpack.c.bf16 %v13118_v9, %v13111_v8  ;;  %v13119_v39 = vld [vmem:[%s16775_s3 + $0x688] sm:$0x3] }
 0x1ea   :  { %5627 = vmatmul.mubr.f32.vlgmr.msra.gmra.mrb[76].mxu1 %v5475_v21  ;;  %14066 = vmatprep.subr.bf16.mxu0 %v14065_v17  ;;  %v14083_v17 = vpack.c.bf16 %v13113_v2, %v13106_v1  ;;  %v14099_v8 = vpack.c.bf16 %v13130_v56, %v13123_v54 }
 0x1eb   :  { %14064 = vmatpush3.bf16.xpose.msk.msra.mxu1 %vm14901_vm5, %v14062_v20  ;;  %13641 = vmatprep.mubr.msk.f32.mxu1 %vm14407_vm6, %v14402_v7  ;;  %v15635_v20 = vor.u32 %v6517_v5, %v6516_v4  ;;  %v5845_v29 = vcombine.high %v5829_v12, %v5829_v12  ;;  %v6215_v31 = vcombine.high %v6205_v18, %v6205_v18  ;;  %v13125_v4 = vld [vmem:[%s16775_s3 + $0x6a0] sm:$0xff]  ;;  %v13132_v5 = vld [vmem:[%s16775_s3 + $0x6d8] sm:$0x3] }
 0x1ec   :  { %14070 = vmatprep.subr.bf16.mxu1 %v14069_v23 }
 0x1ed   :  { %v6536_v55 = vcombine.low %v15638_v28, %v15635_v20  ;;  %v6537_v0 = vcombine.high %v15638_v28, %v15635_v20  ;;  %v6214_v20 = vcombine.high %v6198_v3, %v6198_v3  ;;  %v13141_v28 = vld [vmem:[%s16775_s3 + $0x708] sm:$0xff] }
 0x1f0   :  { %5697 = vmatmul.mubr.f32.vlgmr.msra.gmra.mrb[78].mxu0 %v5460_v32  ;;  %v13110_v32 = vld [vmem:[%s16775_s3 + $0x640] sm:$0xff] }
 0x1f1   :  { %14068 = vmatpush1.bf16.xpose.msra.mxu0 %v14067_v30  ;;  %5925 = vmatprep.mubr.f32.mxu0 %v5836_v34  ;;  %v13124_v30 = vld [vmem:[%s16775_s3 + $0x698] sm:$0xff]  ;;  %v13131_v34 = vld [vmem:[%s16775_s3 + $0x6d0] sm:$0x3] }
 0x1f2   :  { %13642 = vmatmul.mubr.msk.f32.vlgmr.msra.gmra.mrb[78].mxu1 %vm498_vm4, %v5476_v41  ;;  %14074 = vmatprep.subr.bf16.mxu0 %v14073_v36  ;;  %v14091_v41 = vpack.c.bf16 %v13117_v33, %v13110_v32  ;;  %v14097_v46 = vpack.c.bf16 %v13131_v34, %v13124_v30  ;;  %v13129_v33 = vld [vmem:[%s16775_s3 + $0x6c0] sm:$0xff] }
 0x1f3   :  { %14072 = vmatpush1.bf16.xpose.msra.mxu1 %v14071_v38  ;;  %5995 = vmatprep.mubr.f32.mxu1 %v5846_v42  ;;  %v13112_v38 = vld [vmem:[%s16775_s3 + $0x650] sm:$0xff]  ;;  %v6544_v42 = vrot.slane %v6536_v55, %v14867_v53 }
 0x1f4   :  { %14077 = vmatprep.subr.bf16.mxu1 %v14405_v47 }
 0x1f5   :  { %v6560_v32 = vrot.slane %v6544_v42, %v14867_v53 }
 0x1f8   :  { %5926 = vmatmul.mubr.f32.vlgmr.msra.gmra.mrb[80].mxu0 %v5822_v50  ;;  %v14094_v50 = vpack.c.bf16 %v13119_v39, %v13112_v38 }
 0x1f9   :  { %14076 = vmatpush1.bf16.xpose.msra.mxu0 %v14075_v19  ;;  %6065 = vmatprep.mubr.f32.mxu0 %v5843_v59  ;;  %v6552_v19 = vcombine.high %v6544_v42, %v6544_v42  ;;  %v6886_v59 = vld [vmem:[#allocation2 + $0x150] ss:$8 sm:$0x70]  ;;  %v6582_v42 = vcombine.high %v6560_v32, %v6560_v32 }
 0x1fa   :  { %5996 = vmatmul.mubr.f32.vlgmr.msra.gmra.mrb[80].mxu1 %v5844_v62  ;;  %14082 = vmatprep.subr.bf16.mxu0 %v14081_v58  ;;  %v6885_v58 = vld [vmem:[#allocation2 + $0x150] ss:$8 sm:$0xf] }
 0x1fb   :  { %14080 = vmatpush3.bf16.xpose.msk.msra.mxu1 %vm14901_vm5, %v14078_v60  ;;  %v1155_v6 = vpop.f32.mrb[28].mxu0  ;;  %13648 = vmatprep.mubr.msk.f32.mxu1 %vm14407_vm6, %v14402_v7  ;;  %v13128_v62 = vld [vmem:[%s16775_s3 + $0x6b8] sm:$0xff]  ;;  %v6574_v9 = vrot.slane %v6552_v19, %v14867_v53  ;;  %v15697_v10 = vor.u32 %v6886_v59, %v6885_v58  ;;  %v13152_v19 = vld [vmem:[%s16775_s3 + $0x760] sm:$0x3]  ;;  %v13142_v58 = vld [vmem:[%s16775_s3 + $0x710] sm:$0xff] }
 0x1fc   :  { %v1157_v11 = vpop.f32.mrb[29].mxu0  ;;  %14086 = vmatprep.subr.bf16.mxu1 %v14085_v63  ;;  %v13135_v63 = vld [vmem:[%s16775_s3 + $0x6f0] sm:$0x3]  ;;  %v13149_v59 = vld [vmem:[%s16775_s3 + $0x748] sm:$0x3] }
 0x1fd   :  { %v1225_v15 = vpop.f32.mrb[28].mxu1  ;;  %v14105_v13 = vpack.c.bf16 %v13135_v63, %v13128_v62 }
 0x1fe   :  { %v1226_v21 = vadd.f32 %v1225_v15, %v1155_v6  ;;  %v1227_v23 = vpop.f32.mrb[29].mxu1  ;;  %v14103_v15 = vpack.c.bf16 %v13132_v5, %v13125_v4  ;;  %v7250_v4 = vld [vmem:[#allocation2 + $0x71] ss:$8 sm:$0xf]  ;;  %v14119_v5 = vpack.c.bf16 %v13149_v59, %v13142_v58 }
 0x1ff   :  { %v7619_v59 = vld [vmem:[#allocation2 + $0x72] ss:$8 sm:$0xf] }
 0x200   :  { %6066 = vmatmul.mubr.f32.vlgmr.msra.gmra.mrb[82].mxu0 %v5829_v12 }
 0x201   :  { %14084 = vmatpush1.bf16.xpose.msra.mxu0 %v14083_v17  ;;  %6294 = vmatprep.mubr.f32.mxu0 %v6205_v18  ;;  %v6551_v17 = vrot.slane %v6537_v0, %v14867_v53  ;;  %v15700_v18 = vor.u32 %v6882_v57, %v6881_v14 }
 0x202   :  { %13649 = vmatmul.mubr.msk.f32.vlgmr.msra.gmra.mrb[82].mxu1 %vm498_vm4, %v5845_v29  ;;  %14090 = vmatprep.subr.bf16.mxu0 %v14089_v24  ;;  %v13127_v24 = vld [vmem:[%s16775_s3 + $0x6b0] sm:$0xff]  ;;  %v13148_v29 = vld [vmem:[%s16775_s3 + $0x740] sm:$0x3] }
 0x203   :  { %v1295_v48 = vpop.f32.mrb[30].mxu0  ;;  %14088 = vmatpush1.bf16.xpose.msra.mxu1 %v14087_v26  ;;  %6364 = vmatprep.mubr.f32.mxu1 %v6215_v31  ;;  %v6905_v23 = vcombine.low %v15700_v18, %v15697_v10  ;;  %v6553_v27 = vcombine.high %v6551_v17, %v6551_v17  ;;  %v14107_v30 = vpack.c.bf16 %v13134_v25, %v13127_v24  ;;  %v13146_v24 = vld [vmem:[%s16775_s3 + $0x730] sm:$0xff]  ;;  %v13153_v25 = vld [vmem:[%s16775_s3 + $0x768] sm:$0x3] }
 0x204   :  { %v1296_v35 = vadd.f32 %v1295_v48, %v1226_v21  ;;  %v1297_v36 = vpop.f32.mrb[31].mxu0  ;;  %14093 = vmatprep.subr.bf16.mxu1 %v14405_v47  ;;  %v6584_v21 = vcombine.high %v6574_v9, %v6574_v9  ;;  %v13136_v48 = vld [vmem:[%s16775_s3 + $0x6f8] sm:$0x3]  ;;  %v14113_v39 = vpack.c.bf16 %v13148_v29, %v13141_v28  ;;  %v6906_v54 = vcombine.high %v15700_v18, %v15697_v10  ;;  %v13165_v18 = vld [vmem:[%s16775_s3 + $0x7b0] sm:$0x3]  ;;  %v13160_v29 = vld [vmem:[%s16775_s3 + $0x788] sm:$0xff] }
 0x205   :  { %v1365_v40 = vpop.f32.mrb[30].mxu1  ;;  %v6913_v34 = vrot.slane %v6905_v23, %v14867_v53  ;;  %v13150_v36 = vld [vmem:[%s16775_s3 + $0x750] sm:$0x3]  ;;  %v6567_v57 = vrot.slane %v6551_v17, %v14867_v53  ;;  %v13158_v17 = vld [vmem:[%s16775_s3 + $0x778] sm:$0xff] }
 0x206   :  { %v1366_v61 = vadd.f32 %v1365_v40, %v1296_v35  ;;  %v13559_v45 = vpop.f32.mrb[31].mxu1  ;;  %v13143_v35 = vld [vmem:[%s16775_s3 + $0x718] sm:$0xff]  ;;  %v6581_v40 = vrot.slane %v6553_v27, %v14867_v53 }
 0x207   :  { %v14117_v43 = vpack.c.bf16 %v13150_v36, %v13143_v35  ;;  %v6921_v44 = vcombine.high %v6913_v34, %v6913_v34  ;;  %v13147_v45 = vld [vmem:[%s16775_s3 + $0x738] sm:$0x3]  ;;  %v6929_v23 = vrot.slane %v6913_v34, %v14867_v53 }
 0x208   :  { %6295 = vmatmul.mubr.f32.vlgmr.msra.gmra.mrb[84].mxu0 %v6191_v37 }
 0x209   :  { %14092 = vmatpush1.bf16.xpose.msra.mxu0 %v14091_v41  ;;  %6434 = vmatprep.mubr.f32.mxu0 %v6212_v49  ;;  %v14110_v41 = vpack.c.bf16 %v13136_v48, %v13129_v33  ;;  %v7254_v49 = vld [vmem:[#allocation2 + $0x151] ss:$8 sm:$0xf]  ;;  %v6943_v63 = vrot.slane %v6921_v44, %v14867_v53  ;;  %v14129_v33 = vpack.c.bf16 %v13165_v18, %v13158_v17 }
 0x20a   :  { %6365 = vmatmul.mubr.f32.vlgmr.msra.gmra.mrb[84].mxu1 %v6213_v51  ;;  %14098 = vmatprep.subr.bf16.mxu0 %v14097_v46  ;;  %v7251_v46 = vld [vmem:[#allocation2 + $0x71] ss:$8 sm:$0x70]  ;;  %v6951_v34 = vcombine.high %v6929_v23, %v6929_v23 }
 0x20b   :  { %v1500_v60 = vpop.f32.mrb[32].mxu0  ;;  %14096 = vmatpush3.bf16.xpose.msk.msra.mxu1 %vm14901_vm5, %v14094_v50  ;;  %13655 = vmatprep.mubr.msk.f32.mxu1 %vm14407_vm6, %v14402_v7  ;;  %v7255_v50 = vld [vmem:[#allocation2 + $0x151] ss:$8 sm:$0x70]  ;;  %v6953_v10 = vcombine.high %v6943_v63, %v6943_v63 }
 0x20c   :  { %v1501_v1 = vadd.f32 %v1500_v60, %v1366_v61  ;;  %v1502_v2 = vpop.f32.mrb[33].mxu0  ;;  %14102 = vmatprep.subr.bf16.mxu1 %v14101_v52  ;;  %v13140_v61 = vld [vmem:[%s16775_s3 + $0x700] sm:$0xff]  ;;  %v13145_v52 = vld [vmem:[%s16775_s3 + $0x728] sm:$0xff]  ;;  %v15761_v0 = vor.u32 %v7255_v50, %v7254_v49  ;;  %v13169_v44 = vld [vmem:[%s16775_s3 + $0x7d0] sm:$0x3] }
 0x20d   :  { %v1570_v6 = vpop.f32.mrb[32].mxu1  ;;  %v14115_v62 = vpack.c.bf16 %v13147_v45, %v13140_v61  ;;  %v13159_v49 = vld [vmem:[%s16775_s3 + $0x780] sm:$0xff]  ;;  %v13166_v50 = vld [vmem:[%s16775_s3 + $0x7b8] sm:$0x3] }
 0x20e   :  { %v1571_v11 = vadd.f32 %v1570_v6, %v1501_v1  ;;  %v1572_v12 = vpop.f32.mrb[33].mxu1  ;;  %v6920_v6 = vrot.slane %v6906_v54, %v14867_v53 }
 0x20f   :  { %v13144_v12 = vld [vmem:[%s16775_s3 + $0x720] sm:$0xff] }
 0x210   :  { %6435 = vmatmul.mubr.f32.vlgmr.msra.gmra.mrb[86].mxu0 %v6198_v3  ;;  %v14121_v3 = vpack.c.bf16 %v13152_v19, %v13145_v52 }
 0x211   :  { %14100 = vmatpush1.bf16.xpose.msra.mxu0 %v14099_v8  ;;  %6663 = vmatprep.mubr.f32.mxu0 %v6574_v9  ;;  %v15764_v8 = vor.u32 %v7251_v46, %v7250_v4  ;;  %v6583_v9 = vcombine.high %v6567_v57, %v6567_v57  ;;  %v6936_v46 = vrot.slane %v6920_v6, %v14867_v53  ;;  %v13168_v4 = vld [vmem:[%s16775_s3 + $0x7c8] sm:$0x3] }
 0x212   :  { %13656 = vmatmul.mubr.msk.f32.vlgmr.msra.gmra.mrb[86].mxu1 %vm498_vm4, %v6214_v20  ;;  %14106 = vmatprep.subr.bf16.mxu0 %v14105_v13  ;;  %v13151_v13 = vld [vmem:[%s16775_s3 + $0x758] sm:$0x3] }
 0x213   :  { %v1640_v26 = vpop.f32.mrb[34].mxu0  ;;  %14104 = vmatpush1.bf16.xpose.msra.mxu1 %v14103_v15  ;;  %6733 = vmatprep.mubr.f32.mxu1 %v6584_v21  ;;  %v6922_v15 = vcombine.high %v6920_v6, %v6920_v6  ;;  %v14123_v27 = vpack.c.bf16 %v13151_v13, %v13144_v12  ;;  %v7275_v61 = vcombine.high %v15764_v8, %v15761_v0  ;;  %v13163_v13 = vld [vmem:[%s16775_s3 + $0x7a0] sm:$0xff] }
 0x214   :  { %v1641_v31 = vadd.f32 %v1640_v26, %v1571_v11  ;;  %v1642_v55 = vpop.f32.mrb[35].mxu0  ;;  %14109 = vmatprep.subr.bf16.mxu1 %v14405_v47  ;;  %v7274_v11 = vcombine.low %v15764_v8, %v15761_v0  ;;  %v6952_v0 = vcombine.high %v6936_v46, %v6936_v46  ;;  %v13175_v8 = vld [vmem:[%s16775_s3 + $0x7e8] sm:$0xff] }
 0x215   :  { %v1710_v16 = vpop.f32.mrb[34].mxu1  ;;  %v6950_v48 = vrot.slane %v6922_v15, %v14867_v53 }
 0x216   :  { %v15732_v37 = vadd.f32 %v1710_v16, %v1641_v31  ;;  %v13566_v38 = vpop.f32.mrb[35].mxu1  ;;  %v7282_v28 = vrot.slane %v7274_v11, %v14867_v53  ;;  %v13167_v31 = vld [vmem:[%s16775_s3 + $0x7c0] sm:$0x3]  ;;  %v14126_v16 = vpack.c.bf16 %v13153_v25, %v13146_v24 }
 0x217   :  { %v14133_v35 = vpack.c.bf16 %v13167_v31, %v13160_v29  ;;  %v13157_v38 = vld [vmem:[%s16775_s3 + $0x770] sm:$0xff] }
 0x218   :  { %6664 = vmatmul.mubr.f32.vlgmr.msra.gmra.mrb[88].mxu0 %v6560_v32  ;;  %v7290_v36 = vcombine.high %v7282_v28, %v7282_v28  ;;  %v7298_v12 = vrot.slane %v7282_v28, %v14867_v53 }
 0x219   :  { %14108 = vmatpush1.bf16.xpose.msra.mxu0 %v14107_v30  ;;  %6803 = vmatprep.mubr.f32.mxu0 %v6581_v40  ;;  %v7620_v40 = vld [vmem:[#allocation2 + $0x72] ss:$8 sm:$0x70] }
 0x21a   :  { %6734 = vmatmul.mubr.f32.vlgmr.msra.gmra.mrb[88].mxu1 %v6582_v42  ;;  %14114 = vmatprep.subr.bf16.mxu0 %v14113_v39  ;;  %v13164_v39 = vld [vmem:[%s16775_s3 + $0x7a8] sm:$0x3]  ;;  %v7312_v19 = vrot.slane %v7290_v36, %v14867_v53  ;;  %v7320_v29 = vcombine.high %v7298_v12, %v7298_v12  ;;  %v13186_v36 = vld [vmem:[%s16775_s3 + $0x840] sm:$0x3] }
 0x21b   :  { %v1868_v51 = vpop.f32.mrb[36].mxu0  ;;  %14112 = vmatpush3.bf16.xpose.msk.msra.mxu1 %vm14901_vm5, %v14110_v41  ;;  %13662 = vmatprep.mubr.msk.f32.mxu1 %vm14407_vm6, %v14402_v7  ;;  %v7623_v41 = vld [vmem:[#allocation2 + $0x152] ss:$8 sm:$0xf]  ;;  %v14131_v52 = vpack.c.bf16 %v13164_v39, %v13157_v38 }
 0x21c   :  { %v1870_v56 = vpop.f32.mrb[37].mxu0  ;;  %14118 = vmatprep.subr.bf16.mxu1 %v14117_v43  ;;  %v13162_v43 = vld [vmem:[%s16775_s3 + $0x798] sm:$0xff] }
 0x21d   :  { %v1938_v60 = vpop.f32.mrb[36].mxu1  ;;  %v14137_v58 = vpack.c.bf16 %v13169_v44, %v13162_v43 }
 0x21e   :  { %v1939_v1 = vadd.f32 %v1938_v60, %v1868_v51  ;;  %v1940_v2 = vpop.f32.mrb[37].mxu1  ;;  %v14135_v60 = vpack.c.bf16 %v13166_v50, %v13159_v49  ;;  %v7988_v50 = vld [vmem:[#allocation2 + $0x73] ss:$8 sm:$0xf] }
 0x220   :  { %6804 = vmatmul.mubr.f32.vlgmr.msra.gmra.mrb[90].mxu0 %v6567_v57 }
 0x221   :  { %14116 = vmatpush1.bf16.xpose.msra.mxu0 %v14115_v62  ;;  %7032 = vmatprep.mubr.f32.mxu0 %v6943_v63  ;;  %v7289_v62 = vrot.slane %v7275_v61, %v14867_v53  ;;  %v15829_v63 = vor.u32 %v7620_v40, %v7619_v59  ;;  %v13185_v59 = vld [vmem:[%s16775_s3 + $0x838] sm:$0x3] }
 0x222   :  { %13663 = vmatmul.mubr.msk.f32.vlgmr.msra.gmra.mrb[90].mxu1 %vm498_vm4, %v6583_v9  ;;  %14122 = vmatprep.subr.bf16.mxu0 %v14121_v3  ;;  %v13161_v3 = vld [vmem:[%s16775_s3 + $0x790] sm:$0xff]  ;;  %v13182_v9 = vld [vmem:[%s16775_s3 + $0x820] sm:$0x3] }
 0x223   :  { %v2008_v14 = vpop.f32.mrb[38].mxu0  ;;  %14120 = vmatpush1.bf16.xpose.msra.mxu1 %v14119_v5  ;;  %7102 = vmatprep.mubr.f32.mxu1 %v6953_v10  ;;  %v7291_v6 = vcombine.high %v7289_v62, %v7289_v62  ;;  %v14139_v17 = vpack.c.bf16 %v13168_v4, %v13161_v3  ;;  %v14145_v25 = vpack.c.bf16 %v13182_v9, %v13175_v8  ;;  %v13180_v4 = vld [vmem:[%s16775_s3 + $0x810] sm:$0xff] }
 0x224   :  { %v2009_v20 = vadd.f32 %v2008_v14, %v1939_v1  ;;  %v2010_v21 = vpop.f32.mrb[39].mxu0  ;;  %14125 = vmatprep.subr.bf16.mxu1 %v14405_v47  ;;  %v7322_v1 = vcombine.high %v7312_v19, %v7312_v19  ;;  %v13170_v14 = vld [vmem:[%s16775_s3 + $0x7d8] sm:$0x3]  ;;  %v7305_v40 = vrot.slane %v7289_v62, %v14867_v53 }
 0x225   :  { %v2078_v26 = vpop.f32.mrb[38].mxu1  ;;  %v13184_v21 = vld [vmem:[%s16775_s3 + $0x830] sm:$0x3] }
 0x226   :  { %v2079_v55 = vadd.f32 %v2078_v26, %v2009_v20  ;;  %v13573_v32 = vpop.f32.mrb[39].mxu1  ;;  %v13177_v20 = vld [vmem:[%s16775_s3 + $0x7f8] sm:$0xff]  ;;  %v7319_v26 = vrot.slane %v7291_v6, %v14867_v53 }
 0x227   :  { %v14149_v31 = vpack.c.bf16 %v13184_v21, %v13177_v20  ;;  %v13174_v32 = vld [vmem:[%s16775_s3 + $0x7e0] sm:$0xff] }
 0x228   :  { %v15798_v30 = vadd.f32 %v2079_v55, %v15732_v37  ;;  %7033 = vmatmul.mubr.f32.vlgmr.msra.gmra.mrb[92].mxu0 %v6929_v23  ;;  %v7624_v37 = vld [vmem:[#allocation2 + $0x152] ss:$8 sm:$0x70] }
 0x229   :  { %14124 = vmatpush1.bf16.xpose.msra.mxu0 %v14123_v27  ;;  %7172 = vmatprep.mubr.f32.mxu0 %v6950_v48  ;;  %v15826_v54 = vor.u32 %v7624_v37, %v7623_v41  ;;  %v14142_v27 = vpack.c.bf16 %v13170_v14, %v13163_v13  ;;  %v7989_v48 = vld [vmem:[#allocation2 + $0x73] ss:$8 sm:$0x70]  ;;  %v13183_v37 = vld [vmem:[%s16775_s3 + $0x828] sm:$0x3] }
 0x22a   :  { %7103 = vmatmul.mubr.f32.vlgmr.msra.gmra.mrb[92].mxu1 %v6951_v34  ;;  %14130 = vmatprep.subr.bf16.mxu0 %v14129_v33  ;;  %v13181_v33 = vld [vmem:[%s16775_s3 + $0x818] sm:$0x3]  ;;  %v13176_v41 = vld [vmem:[%s16775_s3 + $0x7f0] sm:$0xff] }
 0x22b   :  { %v2237_v42 = vpop.f32.mrb[40].mxu0  ;;  %14128 = vmatpush3.bf16.xpose.msk.msra.mxu1 %vm14901_vm5, %v14126_v16  ;;  %13669 = vmatprep.mubr.msk.f32.mxu1 %vm14407_vm6, %v14402_v7  ;;  %v7643_v2 = vcombine.low %v15829_v63, %v15826_v54  ;;  %v7992_v16 = vld [vmem:[#allocation2 + $0x153] ss:$8 sm:$0xf]  ;;  %v7644_v38 = vcombine.high %v15829_v63, %v15826_v54  ;;  %v14147_v43 = vpack.c.bf16 %v13181_v33, %v13174_v32 }
 0x22c   :  { %v2239_v45 = vpop.f32.mrb[41].mxu0  ;;  %14134 = vmatprep.subr.bf16.mxu1 %v14133_v35  ;;  %v13179_v35 = vld [vmem:[%s16775_s3 + $0x808] sm:$0xff]  ;;  %v7321_v54 = vcombine.high %v7305_v40, %v7305_v40  ;;  %v13192_v63 = vld [vmem:[%s16775_s3 + $0x858] sm:$0xff] }
 0x22d   :  { %v2307_v51 = vpop.f32.mrb[40].mxu1  ;;  %v7651_v18 = vrot.slane %v7643_v2, %v14867_v53  ;;  %v14153_v49 = vpack.c.bf16 %v13186_v36, %v13179_v35 }
 0x22e   :  { %v2308_v56 = vadd.f32 %v2307_v51, %v2237_v42  ;;  %v2309_v57 = vpop.f32.mrb[41].mxu1  ;;  %v14151_v51 = vpack.c.bf16 %v13183_v37, %v13176_v41  ;;  %v8357_v37 = vld [vmem:[#allocation2 + $0x74] ss:$8 sm:$0xf] }
 0x22f   :  { %v7659_v55 = vcombine.high %v7651_v18, %v7651_v18  ;;  %v7667_v3 = vrot.slane %v7651_v18, %v14867_v53 }
 0x230   :  { %7173 = vmatmul.mubr.f32.vlgmr.msra.gmra.mrb[94].mxu0 %v6936_v46 }
 0x231   :  { %14132 = vmatpush1.bf16.xpose.msra.mxu0 %v14131_v52  ;;  %7401 = vmatprep.mubr.f32.mxu0 %v7312_v19  ;;  %v7681_v44 = vrot.slane %v7659_v55, %v14867_v53  ;;  %v7658_v52 = vrot.slane %v7644_v38, %v14867_v53  ;;  %v15894_v19 = vor.u32 %v7989_v48, %v7988_v50  ;;  %v13203_v55 = vld [vmem:[%s16775_s3 + $0x8b0] sm:$0x3]  ;;  %v13202_v50 = vld [vmem:[%s16775_s3 + $0x8a8] sm:$0x3] }
 0x232   :  { %13670 = vmatmul.mubr.msk.f32.vlgmr.msra.gmra.mrb[94].mxu1 %vm498_vm4, %v6952_v0  ;;  %14138 = vmatprep.subr.bf16.mxu0 %v14137_v58  ;;  %v13178_v58 = vld [vmem:[%s16775_s3 + $0x800] sm:$0xff]  ;;  %v13199_v0 = vld [vmem:[%s16775_s3 + $0x890] sm:$0x3]  ;;  %v7689_v20 = vcombine.high %v7667_v3, %v7667_v3 }
 0x233   :  { %v2377_v5 = vpop.f32.mrb[42].mxu0  ;;  %14136 = vmatpush1.bf16.xpose.msra.mxu1 %v14135_v60  ;;  %7471 = vmatprep.mubr.f32.mxu1 %v7322_v1  ;;  %v7660_v62 = vcombine.high %v7658_v52, %v7658_v52  ;;  %v14155_v8 = vpack.c.bf16 %v13185_v59, %v13178_v58  ;;  %v14161_v14 = vpack.c.bf16 %v13199_v0, %v13192_v63  ;;  %v13197_v59 = vld [vmem:[%s16775_s3 + $0x880] sm:$0xff] }
 0x234   :  { %v2378_v10 = vadd.f32 %v2377_v5, %v2308_v56  ;;  %v2379_v11 = vpop.f32.mrb[43].mxu0  ;;  %14141 = vmatprep.subr.bf16.mxu1 %v14405_v47  ;;  %v7691_v56 = vcombine.high %v7681_v44, %v7681_v44  ;;  %v13187_v5 = vld [vmem:[%s16775_s3 + $0x848] sm:$0x3]  ;;  %v7674_v48 = vrot.slane %v7658_v52, %v14867_v53 }
 0x235   :  { %v2447_v15 = vpop.f32.mrb[42].mxu1  ;;  %v13201_v11 = vld [vmem:[%s16775_s3 + $0x8a0] sm:$0x3] }
 0x236   :  { %v2448_v23 = vadd.f32 %v2447_v15, %v2378_v10  ;;  %v13580_v24 = vpop.f32.mrb[43].mxu1  ;;  %v13194_v10 = vld [vmem:[%s16775_s3 + $0x868] sm:$0xff]  ;;  %v7688_v15 = vrot.slane %v7660_v62, %v14867_v53 }
 0x237   :  { %v14165_v21 = vpack.c.bf16 %v13201_v11, %v13194_v10  ;;  %v13191_v24 = vld [vmem:[%s16775_s3 + $0x850] sm:$0xff] }
 0x238   :  { %v15863_v28 = vadd.f32 %v2448_v23, %v15798_v30  ;;  %7402 = vmatmul.mubr.f32.vlgmr.msra.gmra.mrb[96].mxu0 %v7298_v12  ;;  %v7993_v30 = vld [vmem:[#allocation2 + $0x153] ss:$8 sm:$0x70] }
 0x239   :  { %14140 = vmatpush1.bf16.xpose.msra.mxu0 %v14139_v17  ;;  %7541 = vmatprep.mubr.f32.mxu0 %v7319_v26  ;;  %v15891_v61 = vor.u32 %v7993_v30, %v7992_v16  ;;  %v14158_v17 = vpack.c.bf16 %v13187_v5, %v13180_v4  ;;  %v8358_v26 = vld [vmem:[#allocation2 + $0x74] ss:$8 sm:$0x70]  ;;  %v13200_v30 = vld [vmem:[%s16775_s3 + $0x898] sm:$0x3] }
 0x23a   :  { %7472 = vmatmul.mubr.f32.vlgmr.msra.gmra.mrb[96].mxu1 %v7320_v29  ;;  %14146 = vmatprep.subr.bf16.mxu0 %v14145_v25  ;;  %v13198_v25 = vld [vmem:[%s16775_s3 + $0x888] sm:$0x3]  ;;  %v13193_v16 = vld [vmem:[%s16775_s3 + $0x860] sm:$0xff] }
 0x23b   :  { %v2606_v34 = vpop.f32.mrb[44].mxu0  ;;  %14144 = vmatpush3.bf16.xpose.msk.msra.mxu1 %vm14901_vm5, %v14142_v27  ;;  %13676 = vmatprep.mubr.msk.f32.mxu1 %vm14407_vm6, %v14402_v7  ;;  %v8012_v57 = vcombine.low %v15894_v19, %v15891_v61  ;;  %v8361_v27 = vld [vmem:[#allocation2 + $0x154] ss:$8 sm:$0xf]  ;;  %v8013_v32 = vcombine.high %v15894_v19, %v15891_v61  ;;  %v14163_v35 = vpack.c.bf16 %v13198_v25, %v13191_v24 }
 0x23c   :  { %v2608_v39 = vpop.f32.mrb[45].mxu0  ;;  %14150 = vmatprep.subr.bf16.mxu1 %v14149_v31  ;;  %v13196_v31 = vld [vmem:[%s16775_s3 + $0x878] sm:$0xff]  ;;  %v7690_v61 = vcombine.high %v7674_v48, %v7674_v48  ;;  %v13209_v19 = vld [vmem:[%s16775_s3 + $0x8c8] sm:$0xff] }
 0x23d   :  { %v2676_v42 = vpop.f32.mrb[44].mxu1  ;;  %v8020_v9 = vrot.slane %v8012_v57, %v14867_v53  ;;  %v14169_v41 = vpack.c.bf16 %v13203_v55, %v13196_v31 }
 0x23e   :  { %v2677_v45 = vadd.f32 %v2676_v42, %v2606_v34  ;;  %v2678_v46 = vpop.f32.mrb[45].mxu1  ;;  %v14167_v42 = vpack.c.bf16 %v13200_v30, %v13193_v16  ;;  %v8726_v30 = vld [vmem:[#allocation2 + $0x75] ss:$8 sm:$0xf] }
 0x23f   :  { %v8028_v23 = vcombine.high %v8020_v9, %v8020_v9  ;;  %v8036_v58 = vrot.slane %v8020_v9, %v14867_v53 }
 0x240   :  { %7542 = vmatmul.mubr.f32.vlgmr.msra.gmra.mrb[98].mxu0 %v7305_v40 }
 0x241   :  { %14148 = vmatpush1.bf16.xpose.msra.mxu0 %v14147_v43  ;;  %7770 = vmatprep.mubr.f32.mxu0 %v7681_v44  ;;  %v8050_v36 = vrot.slane %v8028_v23, %v14867_v53  ;;  %v8027_v43 = vrot.slane %v8013_v32, %v14867_v53  ;;  %v15959_v44 = vor.u32 %v8358_v26, %v8357_v37  ;;  %v13220_v23 = vld [vmem:[%s16775_s3 + $0x920] sm:$0x3]  ;;  %v13219_v37 = vld [vmem:[%s16775_s3 + $0x918] sm:$0x3] }
 0x242   :  { %13677 = vmatmul.mubr.msk.f32.vlgmr.msra.gmra.mrb[98].mxu1 %vm498_vm4, %v7321_v54  ;;  %14154 = vmatprep.subr.bf16.mxu0 %v14153_v49  ;;  %v13195_v49 = vld [vmem:[%s16775_s3 + $0x870] sm:$0xff]  ;;  %v13216_v54 = vld [vmem:[%s16775_s3 + $0x900] sm:$0x3]  ;;  %v8058_v10 = vcombine.high %v8036_v58, %v8036_v58 }
 0x243   :  { %v2746_v60 = vpop.f32.mrb[46].mxu0  ;;  %14152 = vmatpush1.bf16.xpose.msra.mxu1 %v14151_v51  ;;  %7840 = vmatprep.mubr.f32.mxu1 %v7691_v56  ;;  %v8029_v52 = vcombine.high %v8027_v43, %v8027_v43  ;;  %v14171_v63 = vpack.c.bf16 %v13202_v50, %v13195_v49  ;;  %v14177_v5 = vpack.c.bf16 %v13216_v54, %v13209_v19  ;;  %v13214_v50 = vld [vmem:[%s16775_s3 + $0x8f0] sm:$0xff] }
 0x244   :  { %v2747_v1 = vadd.f32 %v2746_v60, %v2677_v45  ;;  %v2748_v2 = vpop.f32.mrb[47].mxu0  ;;  %14157 = vmatprep.subr.bf16.mxu1 %v14405_v47  ;;  %v8060_v45 = vcombine.high %v8050_v36, %v8050_v36  ;;  %v13204_v60 = vld [vmem:[%s16775_s3 + $0x8b8] sm:$0x3]  ;;  %v8043_v26 = vrot.slane %v8027_v43, %v14867_v53 }
 0x245   :  { %v2816_v6 = vpop.f32.mrb[46].mxu1  ;;  %v13218_v2 = vld [vmem:[%s16775_s3 + $0x910] sm:$0x3] }
 0x246   :  { %v2817_v12 = vadd.f32 %v2816_v6, %v2747_v1  ;;  %v13587_v13 = vpop.f32.mrb[47].mxu1  ;;  %v13211_v1 = vld [vmem:[%s16775_s3 + $0x8d8] sm:$0xff]  ;;  %v8057_v6 = vrot.slane %v8029_v52, %v14867_v53 }
 0x247   :  { %v14181_v11 = vpack.c.bf16 %v13218_v2, %v13211_v1  ;;  %v13208_v13 = vld [vmem:[%s16775_s3 + $0x8c0] sm:$0xff] }
 0x248   :  { %v15928_v18 = vadd.f32 %v2817_v12, %v15863_v28  ;;  %7771 = vmatmul.mubr.f32.vlgmr.msra.gmra.mrb[100].mxu0 %v7667_v3  ;;  %v8362_v28 = vld [vmem:[#allocation2 + $0x154] ss:$8 sm:$0x70] }
 0x249   :  { %14156 = vmatpush1.bf16.xpose.msra.mxu0 %v14155_v8  ;;  %7910 = vmatprep.mubr.f32.mxu0 %v7688_v15  ;;  %v15956_v38 = vor.u32 %v8362_v28, %v8361_v27  ;;  %v14174_v8 = vpack.c.bf16 %v13204_v60, %v13197_v59  ;;  %v8727_v15 = vld [vmem:[#allocation2 + $0x75] ss:$8 sm:$0x70]  ;;  %v13217_v28 = vld [vmem:[%s16775_s3 + $0x908] sm:$0x3] }
 0x24a   :  { %7841 = vmatmul.mubr.f32.vlgmr.msra.gmra.mrb[100].mxu1 %v7689_v20  ;;  %14162 = vmatprep.subr.bf16.mxu0 %v14161_v14  ;;  %v13215_v14 = vld [vmem:[%s16775_s3 + $0x8f8] sm:$0x3]  ;;  %v13210_v27 = vld [vmem:[%s16775_s3 + $0x8d0] sm:$0xff] }
 0x24b   :  { %v2975_v29 = vpop.f32.mrb[48].mxu0  ;;  %14160 = vmatpush3.bf16.xpose.msk.msra.mxu1 %vm14901_vm5, %v14158_v17  ;;  %13683 = vmatprep.mubr.msk.f32.mxu1 %vm14407_vm6, %v14402_v7  ;;  %v8381_v46 = vcombine.low %v15959_v44, %v15956_v38  ;;  %v8730_v17 = vld [vmem:[#allocation2 + $0x155] ss:$8 sm:$0xf]  ;;  %v8382_v24 = vcombine.high %v15959_v44, %v15956_v38  ;;  %v14179_v31 = vpack.c.bf16 %v13215_v14, %v13208_v13 }
 0x24c   :  { %v2977_v33 = vpop.f32.mrb[49].mxu0  ;;  %14166 = vmatprep.subr.bf16.mxu1 %v14165_v21  ;;  %v13213_v21 = vld [vmem:[%s16775_s3 + $0x8e8] sm:$0xff]  ;;  %v8059_v38 = vcombine.high %v8043_v26, %v8043_v26  ;;  %v13226_v44 = vld [vmem:[%s16775_s3 + $0x938] sm:$0xff] }
 0x24d   :  { %v3045_v34 = vpop.f32.mrb[48].mxu1  ;;  %v8389_v0 = vrot.slane %v8381_v46, %v14867_v53  ;;  %v14185_v16 = vpack.c.bf16 %v13220_v23, %v13213_v21 }
 0x24e   :  { %v3046_v39 = vadd.f32 %v3045_v34, %v2975_v29  ;;  %v3047_v40 = vpop.f32.mrb[49].mxu1  ;;  %v14183_v34 = vpack.c.bf16 %v13217_v28, %v13210_v27  ;;  %v9095_v28 = vld [vmem:[#allocation2 + $0x76] ss:$8 sm:$0xf] }
 0x24f   :  { %v8397_v12 = vcombine.high %v8389_v0, %v8389_v0  ;;  %v8405_v49 = vrot.slane %v8389_v0, %v14867_v53 }
 0x250   :  { %7911 = vmatmul.mubr.f32.vlgmr.msra.gmra.mrb[102].mxu0 %v7674_v48 }
 0x251   :  { %14164 = vmatpush1.bf16.xpose.msra.mxu0 %v14163_v35  ;;  %8139 = vmatprep.mubr.f32.mxu0 %v8050_v36  ;;  %v8419_v55 = vrot.slane %v8397_v12, %v14867_v53  ;;  %v8396_v35 = vrot.slane %v8382_v24, %v14867_v53  ;;  %v16024_v36 = vor.u32 %v8727_v15, %v8726_v30  ;;  %v13237_v12 = vld [vmem:[%s16775_s3 + $0x990] sm:$0x3]  ;;  %v13236_v30 = vld [vmem:[%s16775_s3 + $0x988] sm:$0x3] }
 0x252   :  { %13684 = vmatmul.mubr.msk.f32.vlgmr.msra.gmra.mrb[102].mxu1 %vm498_vm4, %v7690_v61  ;;  %14170 = vmatprep.subr.bf16.mxu0 %v14169_v41  ;;  %v13212_v41 = vld [vmem:[%s16775_s3 + $0x8e0] sm:$0xff]  ;;  %v13233_v61 = vld [vmem:[%s16775_s3 + $0x970] sm:$0x3]  ;;  %v8427_v1 = vcombine.high %v8405_v49, %v8405_v49 }
 0x253   :  { %v3115_v51 = vpop.f32.mrb[50].mxu0  ;;  %14168 = vmatpush1.bf16.xpose.msra.mxu1 %v14167_v42  ;;  %8209 = vmatprep.mubr.f32.mxu1 %v8060_v45  ;;  %v8398_v43 = vcombine.high %v8396_v35, %v8396_v35  ;;  %v14187_v19 = vpack.c.bf16 %v13219_v37, %v13212_v41  ;;  %v14193_v60 = vpack.c.bf16 %v13233_v61, %v13226_v44  ;;  %v13231_v37 = vld [vmem:[%s16775_s3 + $0x960] sm:$0xff] }
 0x254   :  { %v3116_v56 = vadd.f32 %v3115_v51, %v3046_v39  ;;  %v3117_v57 = vpop.f32.mrb[51].mxu0  ;;  %14173 = vmatprep.subr.bf16.mxu1 %v14405_v47  ;;  %v8429_v39 = vcombine.high %v8419_v55, %v8419_v55  ;;  %v13221_v51 = vld [vmem:[%s16775_s3 + $0x928] sm:$0x3]  ;;  %v8412_v15 = vrot.slane %v8396_v35, %v14867_v53 }
 0x255   :  { %v3185_v62 = vpop.f32.mrb[50].mxu1  ;;  %v13235_v57 = vld [vmem:[%s16775_s3 + $0x980] sm:$0x3] }
 0x256   :  { %v3186_v3 = vadd.f32 %v3185_v62, %v3116_v56  ;;  %v13594_v4 = vpop.f32.mrb[51].mxu1  ;;  %v13228_v56 = vld [vmem:[%s16775_s3 + $0x948] sm:$0xff]  ;;  %v8426_v62 = vrot.slane %v8398_v43, %v14867_v53 }
 0x257   :  { %v14197_v2 = vpack.c.bf16 %v13235_v57, %v13228_v56  ;;  %v13225_v4 = vld [vmem:[%s16775_s3 + $0x930] sm:$0xff] }
 0x258   :  { %v15993_v9 = vadd.f32 %v3186_v3, %v15928_v18  ;;  %8140 = vmatmul.mubr.f32.vlgmr.msra.gmra.mrb[104].mxu0 %v8036_v58  ;;  %v8731_v18 = vld [vmem:[#allocation2 + $0x155] ss:$8 sm:$0x70] }
 0x259   :  { %14172 = vmatpush1.bf16.xpose.msra.mxu0 %v14171_v63  ;;  %8279 = vmatprep.mubr.f32.mxu0 %v8057_v6  ;;  %v16021_v32 = vor.u32 %v8731_v18, %v8730_v17  ;;  %v14190_v63 = vpack.c.bf16 %v13221_v51, %v13214_v50  ;;  %v9096_v6 = vld [vmem:[#allocation2 + $0x76] ss:$8 sm:$0x70]  ;;  %v13234_v18 = vld [vmem:[%s16775_s3 + $0x978] sm:$0x3] }
 0x25a   :  { %8210 = vmatmul.mubr.f32.vlgmr.msra.gmra.mrb[104].mxu1 %v8058_v10  ;;  %14178 = vmatprep.subr.bf16.mxu0 %v14177_v5  ;;  %v13232_v5 = vld [vmem:[%s16775_s3 + $0x968] sm:$0x3]  ;;  %v13227_v17 = vld [vmem:[%s16775_s3 + $0x940] sm:$0xff] }
 0x25b   :  { %v3344_v20 = vpop.f32.mrb[52].mxu0  ;;  %14176 = vmatpush3.bf16.xpose.msk.msra.mxu1 %vm14901_vm5, %v14174_v8  ;;  %13690 = vmatprep.mubr.msk.f32.mxu1 %vm14407_vm6, %v14402_v7  ;;  %v8750_v40 = vcombine.low %v16024_v36, %v16021_v32  ;;  %v9099_v8 = vld [vmem:[#allocation2 + $0x156] ss:$8 sm:$0xf]  ;;  %v8751_v13 = vcombine.high %v16024_v36, %v16021_v32  ;;  %v14195_v21 = vpack.c.bf16 %v13232_v5, %v13225_v4 }
 0x25c   :  { %v3346_v25 = vpop.f32.mrb[53].mxu0  ;;  %14182 = vmatprep.subr.bf16.mxu1 %v14181_v11  ;;  %v13230_v11 = vld [vmem:[%s16775_s3 + $0x958] sm:$0xff]  ;;  %v8428_v32 = vcombine.high %v8412_v15, %v8412_v15  ;;  %v13243_v36 = vld [vmem:[%s16775_s3 + $0x9a8] sm:$0xff] }
 0x25d   :  { %v3414_v29 = vpop.f32.mrb[52].mxu1  ;;  %v8758_v54 = vrot.slane %v8750_v40, %v14867_v53  ;;  %v14201_v27 = vpack.c.bf16 %v13237_v12, %v13230_v11 }
 0x25e   :  { %v3415_v33 = vadd.f32 %v3414_v29, %v3344_v20  ;;  %v3416_v48 = vpop.f32.mrb[53].mxu1  ;;  %v14199_v29 = vpack.c.bf16 %v13234_v18, %v13227_v17  ;;  %v9464_v18 = vld [vmem:[#allocation2 + $0x77] ss:$8 sm:$0xf] }
 0x25f   :  { %v8766_v3 = vcombine.high %v8758_v54, %v8758_v54  ;;  %v8774_v41 = vrot.slane %v8758_v54, %v14867_v53 }
 0x260   :  { %8280 = vmatmul.mubr.f32.vlgmr.msra.gmra.mrb[106].mxu0 %v8043_v26 }
 0x261   :  { %14180 = vmatpush1.bf16.xpose.msra.mxu0 %v14179_v31  ;;  %8508 = vmatprep.mubr.f32.mxu0 %v8419_v55  ;;  %v8788_v23 = vrot.slane %v8766_v3, %v14867_v53  ;;  %v8765_v31 = vrot.slane %v8751_v13, %v14867_v53  ;;  %v16089_v55 = vor.u32 %v9096_v6, %v9095_v28  ;;  %v13254_v3 = vld [vmem:[%s16775_s3 + $0xa00] sm:$0x3]  ;;  %v13253_v28 = vld [vmem:[%s16775_s3 + $0x9f8] sm:$0x3] }
 0x262   :  { %13691 = vmatmul.mubr.msk.f32.vlgmr.msra.gmra.mrb[106].mxu1 %vm498_vm4, %v8059_v38  ;;  %14186 = vmatprep.subr.bf16.mxu0 %v14185_v16  ;;  %v13229_v16 = vld [vmem:[%s16775_s3 + $0x950] sm:$0xff]  ;;  %v13250_v38 = vld [vmem:[%s16775_s3 + $0x9e0] sm:$0x3]  ;;  %v8796_v56 = vcombine.high %v8774_v41, %v8774_v41 }
 0x263   :  { %v3484_v42 = vpop.f32.mrb[54].mxu0  ;;  %14184 = vmatpush1.bf16.xpose.msra.mxu1 %v14183_v34  ;;  %8578 = vmatprep.mubr.f32.mxu1 %v8429_v39  ;;  %v8767_v35 = vcombine.high %v8765_v31, %v8765_v31  ;;  %v14203_v44 = vpack.c.bf16 %v13236_v30, %v13229_v16  ;;  %v14209_v51 = vpack.c.bf16 %v13250_v38, %v13243_v36  ;;  %v13248_v30 = vld [vmem:[%s16775_s3 + $0x9d0] sm:$0xff] }
 0x264   :  { %v3485_v45 = vadd.f32 %v3484_v42, %v3415_v33  ;;  %v3486_v46 = vpop.f32.mrb[55].mxu0  ;;  %14189 = vmatprep.subr.bf16.mxu1 %v14405_v47  ;;  %v8798_v33 = vcombine.high %v8788_v23, %v8788_v23  ;;  %v13238_v42 = vld [vmem:[%s16775_s3 + $0x998] sm:$0x3]  ;;  %v8781_v6 = vrot.slane %v8765_v31, %v14867_v53 }
 0x265   :  { %v3554_v52 = vpop.f32.mrb[54].mxu1  ;;  %v13252_v46 = vld [vmem:[%s16775_s3 + $0x9f0] sm:$0x3] }
 0x266   :  { %v3555_v58 = vadd.f32 %v3554_v52, %v3485_v45  ;;  %v13601_v59 = vpop.f32.mrb[55].mxu1  ;;  %v13245_v45 = vld [vmem:[%s16775_s3 + $0x9b8] sm:$0xff]  ;;  %v8795_v52 = vrot.slane %v8767_v35, %v14867_v53 }
 0x267   :  { %v14213_v57 = vpack.c.bf16 %v13252_v46, %v13245_v45  ;;  %v13242_v59 = vld [vmem:[%s16775_s3 + $0x9a0] sm:$0xff] }
 0x268   :  { %v16058_v0 = vadd.f32 %v3555_v58, %v15993_v9  ;;  %8509 = vmatmul.mubr.f32.vlgmr.msra.gmra.mrb[108].mxu0 %v8405_v49  ;;  %v9100_v9 = vld [vmem:[#allocation2 + $0x156] ss:$8 sm:$0x70] }
 0x269   :  { %14188 = vmatpush1.bf16.xpose.msra.mxu0 %v14187_v19  ;;  %8648 = vmatprep.mubr.f32.mxu0 %v8426_v62  ;;  %v16086_v24 = vor.u32 %v9100_v9, %v9099_v8  ;;  %v14206_v19 = vpack.c.bf16 %v13238_v42, %v13231_v37  ;;  %v9465_v62 = vld [vmem:[#allocation2 + $0x77] ss:$8 sm:$0x70]  ;;  %v13251_v9 = vld [vmem:[%s16775_s3 + $0x9e8] sm:$0x3] }
 0x26a   :  { %8579 = vmatmul.mubr.f32.vlgmr.msra.gmra.mrb[108].mxu1 %v8427_v1  ;;  %14194 = vmatprep.subr.bf16.mxu0 %v14193_v60  ;;  %v13249_v60 = vld [vmem:[%s16775_s3 + $0x9d8] sm:$0x3]  ;;  %v13244_v8 = vld [vmem:[%s16775_s3 + $0x9b0] sm:$0xff] }
 0x26b   :  { %v3713_v10 = vpop.f32.mrb[56].mxu0  ;;  %14192 = vmatpush3.bf16.xpose.msk.msra.mxu1 %vm14901_vm5, %v14190_v63  ;;  %13697 = vmatprep.mubr.msk.f32.mxu1 %vm14407_vm6, %v14402_v7  ;;  %v9119_v48 = vcombine.low %v16089_v55, %v16086_v24  ;;  %v9468_v63 = vld [vmem:[#allocation2 + $0x157] ss:$8 sm:$0xf]  ;;  %v9120_v4 = vcombine.high %v16089_v55, %v16086_v24  ;;  %v14211_v11 = vpack.c.bf16 %v13249_v60, %v13242_v59 }
 0x26c   :  { %v3715_v14 = vpop.f32.mrb[57].mxu0  ;;  %14198 = vmatprep.subr.bf16.mxu1 %v14197_v2  ;;  %v13247_v2 = vld [vmem:[%s16775_s3 + $0x9c8] sm:$0xff]  ;;  %v8797_v24 = vcombine.high %v8781_v6, %v8781_v6  ;;  %v13260_v55 = vld [vmem:[%s16775_s3 + $0xa18] sm:$0xff] }
 0x26d   :  { %v3783_v20 = vpop.f32.mrb[56].mxu1  ;;  %v9127_v61 = vrot.slane %v9119_v48, %v14867_v53  ;;  %v14217_v17 = vpack.c.bf16 %v13254_v3, %v13247_v2 }
 0x26e   :  { %v3784_v25 = vadd.f32 %v3783_v20, %v3713_v10  ;;  %v3785_v26 = vpop.f32.mrb[57].mxu1  ;;  %v14215_v20 = vpack.c.bf16 %v13251_v9, %v13244_v8  ;;  %v9833_v9 = vld [vmem:[#allocation2 + $0xa8] ss:$8 sm:$0xf] }
 0x26f   :  { %v9135_v58 = vcombine.high %v9127_v61, %v9127_v61  ;;  %v9143_v16 = vrot.slane %v9127_v61, %v14867_v53 }
 0x270   :  { %8649 = vmatmul.mubr.f32.vlgmr.msra.gmra.mrb[110].mxu0 %v8412_v15 }
 0x271   :  { %14196 = vmatpush1.bf16.xpose.msra.mxu0 %v14195_v21  ;;  %8877 = vmatprep.mubr.f32.mxu0 %v8788_v23  ;;  %v9157_v12 = vrot.slane %v9135_v58, %v14867_v53  ;;  %v9134_v21 = vrot.slane %v9120_v4, %v14867_v53  ;;  %v16154_v23 = vor.u32 %v9465_v62, %v9464_v18  ;;  %v13271_v58 = vld [vmem:[%s16775_s3 + $0xa70] sm:$0x3]  ;;  %v13270_v18 = vld [vmem:[%s16775_s3 + $0xa68] sm:$0x3] }
 0x272   :  { %13698 = vmatmul.mubr.msk.f32.vlgmr.msra.gmra.mrb[110].mxu1 %vm498_vm4, %v8428_v32  ;;  %14202 = vmatprep.subr.bf16.mxu0 %v14201_v27  ;;  %v13246_v27 = vld [vmem:[%s16775_s3 + $0x9c0] sm:$0xff]  ;;  %v13267_v32 = vld [vmem:[%s16775_s3 + $0xa50] sm:$0x3]  ;;  %v9165_v45 = vcombine.high %v9143_v16, %v9143_v16 }
 0x273   :  { %v3853_v34 = vpop.f32.mrb[58].mxu0  ;;  %14200 = vmatpush1.bf16.xpose.msra.mxu1 %v14199_v29  ;;  %8947 = vmatprep.mubr.f32.mxu1 %v8798_v33  ;;  %v9136_v31 = vcombine.high %v9134_v21, %v9134_v21  ;;  %v14219_v36 = vpack.c.bf16 %v13253_v28, %v13246_v27  ;;  %v14225_v42 = vpack.c.bf16 %v13267_v32, %v13260_v55  ;;  %v13265_v28 = vld [vmem:[%s16775_s3 + $0xa40] sm:$0xff] }
 0x274   :  { %v3854_v39 = vadd.f32 %v3853_v34, %v3784_v25  ;;  %v3855_v40 = vpop.f32.mrb[59].mxu0  ;;  %14205 = vmatprep.subr.bf16.mxu1 %v14405_v47  ;;  %v9167_v25 = vcombine.high %v9157_v12, %v9157_v12  ;;  %v13255_v34 = vld [vmem:[%s16775_s3 + $0xa08] sm:$0x3]  ;;  %v9150_v62 = vrot.slane %v9134_v21, %v14867_v53 }
 0x275   :  { %v3923_v43 = vpop.f32.mrb[58].mxu1  ;;  %v13269_v40 = vld [vmem:[%s16775_s3 + $0xa60] sm:$0x3] }
 0x276   :  { %v3924_v49 = vadd.f32 %v3923_v43, %v3854_v39  ;;  %v13608_v50 = vpop.f32.mrb[59].mxu1  ;;  %v13262_v39 = vld [vmem:[%s16775_s3 + $0xa28] sm:$0xff]  ;;  %v9164_v43 = vrot.slane %v9136_v31, %v14867_v53 }
 0x277   :  { %v14229_v46 = vpack.c.bf16 %v13269_v40, %v13262_v39  ;;  %v13259_v50 = vld [vmem:[%s16775_s3 + $0xa10] sm:$0xff] }
 0x278   :  { %v16123_v54 = vadd.f32 %v3924_v49, %v16058_v0  ;;  %8878 = vmatmul.mubr.f32.vlgmr.msra.gmra.mrb[112].mxu0 %v8774_v41  ;;  %v9469_v0 = vld [vmem:[#allocation2 + $0x157] ss:$8 sm:$0x70] }
 0x279   :  { %14204 = vmatpush1.bf16.xpose.msra.mxu0 %v14203_v44  ;;  %9017 = vmatprep.mubr.f32.mxu0 %v8795_v52  ;;  %v16151_v13 = vor.u32 %v9469_v0, %v9468_v63  ;;  %v14222_v44 = vpack.c.bf16 %v13255_v34, %v13248_v30  ;;  %v9834_v52 = vld [vmem:[#allocation2 + $0xa8] ss:$8 sm:$0x70]  ;;  %v13261_v63 = vld [vmem:[%s16775_s3 + $0xa20] sm:$0xff] }
 0x27a   :  { %8948 = vmatmul.mubr.f32.vlgmr.msra.gmra.mrb[112].mxu1 %v8796_v56  ;;  %14210 = vmatprep.subr.bf16.mxu0 %v14209_v51  ;;  %v13266_v51 = vld [vmem:[%s16775_s3 + $0xa48] sm:$0x3]  ;;  %v13268_v0 = vld [vmem:[%s16775_s3 + $0xa58] sm:$0x3] }
 0x27b   :  { %v4082_v1 = vpop.f32.mrb[60].mxu0  ;;  %14208 = vmatpush3.bf16.xpose.msk.msra.mxu1 %vm14901_vm5, %v14206_v19  ;;  %13704 = vmatprep.mubr.msk.f32.mxu1 %vm14407_vm6, %v14402_v7  ;;  %v9488_v26 = vcombine.low %v16154_v23, %v16151_v13  ;;  %v9837_v19 = vld [vmem:[#allocation2 + $0x188] ss:$8 sm:$0xf]  ;;  %v9489_v59 = vcombine.high %v16154_v23, %v16151_v13  ;;  %v14227_v2 = vpack.c.bf16 %v13266_v51, %v13259_v50 }
 0x27c   :  { %v4084_v5 = vpop.f32.mrb[61].mxu0  ;;  %14214 = vmatprep.subr.bf16.mxu1 %v14213_v57  ;;  %v13264_v57 = vld [vmem:[%s16775_s3 + $0xa38] sm:$0xff]  ;;  %v9166_v13 = vcombine.high %v9150_v62, %v9150_v62  ;;  %v13277_v23 = vld [vmem:[%s16775_s3 + $0xa88] sm:$0xff] }
 0x27d   :  { %v4152_v10 = vpop.f32.mrb[60].mxu1  ;;  %v9496_v38 = vrot.slane %v9488_v26, %v14867_v53  ;;  %v14233_v8 = vpack.c.bf16 %v13271_v58, %v13264_v57 }
 0x27e   :  { %v4153_v14 = vadd.f32 %v4152_v10, %v4082_v1  ;;  %v4154_v15 = vpop.f32.mrb[61].mxu1  ;;  %v14231_v10 = vpack.c.bf16 %v13268_v0, %v13261_v63  ;;  %v10202_v0 = vld [vmem:[#allocation2 + $0xa9] ss:$8 sm:$0xf] }
 0x27f   :  { %v9504_v49 = vcombine.high %v9496_v38, %v9496_v38  ;;  %v9512_v27 = vrot.slane %v9496_v38, %v14867_v53 }
 0x280   :  { %9018 = vmatmul.mubr.f32.vlgmr.msra.gmra.mrb[114].mxu0 %v8781_v6 }
 0x281   :  { %14212 = vmatpush1.bf16.xpose.msra.mxu0 %v14211_v11  ;;  %9246 = vmatprep.mubr.f32.mxu0 %v9157_v12  ;;  %v9526_v3 = vrot.slane %v9504_v49, %v14867_v53  ;;  %v9503_v11 = vrot.slane %v9489_v59, %v14867_v53  ;;  %v16219_v12 = vor.u32 %v9834_v52, %v9833_v9  ;;  %v13288_v49 = vld [vmem:[%s16775_s3 + $0xae0] sm:$0x3]  ;;  %v13287_v9 = vld [vmem:[%s16775_s3 + $0xad8] sm:$0x3] }
 0x282   :  { %13705 = vmatmul.mubr.msk.f32.vlgmr.msra.gmra.mrb[114].mxu1 %vm498_vm4, %v8797_v24  ;;  %14218 = vmatprep.subr.bf16.mxu0 %v14217_v17  ;;  %v13263_v17 = vld [vmem:[%s16775_s3 + $0xa30] sm:$0xff]  ;;  %v13284_v24 = vld [vmem:[%s16775_s3 + $0xac0] sm:$0x3]  ;;  %v9534_v39 = vcombine.high %v9512_v27, %v9512_v27 }
 0x283   :  { %v4222_v29 = vpop.f32.mrb[62].mxu0  ;;  %14216 = vmatpush1.bf16.xpose.msra.mxu1 %v14215_v20  ;;  %9316 = vmatprep.mubr.f32.mxu1 %v9167_v25  ;;  %v9505_v21 = vcombine.high %v9503_v11, %v9503_v11  ;;  %v14235_v55 = vpack.c.bf16 %v13270_v18, %v13263_v17  ;;  %v14241_v34 = vpack.c.bf16 %v13284_v24, %v13277_v23  ;;  %v13282_v18 = vld [vmem:[%s16775_s3 + $0xab0] sm:$0xff] }
 0x284   :  { %v4223_v33 = vadd.f32 %v4222_v29, %v4153_v14  ;;  %v4224_v48 = vpop.f32.mrb[63].mxu0  ;;  %14221 = vmatprep.subr.bf16.mxu1 %v14405_v47  ;;  %v9536_v14 = vcombine.high %v9526_v3, %v9526_v3  ;;  %v13272_v29 = vld [vmem:[%s16775_s3 + $0xa78] sm:$0x3]  ;;  %v9519_v52 = vrot.slane %v9503_v11, %v14867_v53 }
 0x285   :  { %v4292_v35 = vpop.f32.mrb[62].mxu1  ;;  %v13286_v48 = vld [vmem:[%s16775_s3 + $0xad0] sm:$0x3] }
 0x286   :  { %v4293_v41 = vadd.f32 %v4292_v35, %v4223_v33  ;;  %v13615_v37 = vpop.f32.mrb[63].mxu1  ;;  %v13279_v33 = vld [vmem:[%s16775_s3 + $0xa98] sm:$0xff]  ;;  %v9533_v35 = vrot.slane %v9505_v21, %v14867_v53 }
 0x287   :  { %v14245_v40 = vpack.c.bf16 %v13286_v48, %v13279_v33  ;;  %v13276_v37 = vld [vmem:[%s16775_s3 + $0xa80] sm:$0xff] }
 0x288   :  { %v16188_v61 = vadd.f32 %v4293_v41, %v16123_v54  ;;  %9247 = vmatmul.mubr.f32.vlgmr.msra.gmra.mrb[116].mxu0 %v9143_v16  ;;  %v9838_v54 = vld [vmem:[#allocation2 + $0x188] ss:$8 sm:$0x70] }
 0x289   :  { %14220 = vmatpush1.bf16.xpose.msra.mxu0 %v14219_v36  ;;  %9386 = vmatprep.mubr.f32.mxu0 %v9164_v43  ;;  %v16216_v4 = vor.u32 %v9838_v54, %v9837_v19  ;;  %v14238_v36 = vpack.c.bf16 %v13272_v29, %v13265_v28  ;;  %v10203_v43 = vld [vmem:[#allocation2 + $0xa9] ss:$8 sm:$0x70] }
 0x28a   :  { %9317 = vmatmul.mubr.f32.vlgmr.msra.gmra.mrb[116].mxu1 %v9165_v45  ;;  %14226 = vmatprep.subr.bf16.mxu0 %v14225_v42  ;;  %v13283_v42 = vld [vmem:[%s16775_s3 + $0xab8] sm:$0x3]  ;;  %v13278_v19 = vld [vmem:[%s16775_s3 + $0xa90] sm:$0xff]  ;;  %v13285_v54 = vld [vmem:[%s16775_s3 + $0xac8] sm:$0x3] }
 0x28b   :  { %v4451_v56 = vpop.f32.mrb[64].mxu0  ;;  %14224 = vmatpush3.bf16.xpose.msk.msra.mxu1 %vm14901_vm5, %v14222_v44  ;;  %13711 = vmatprep.mubr.msk.f32.mxu1 %vm14407_vm6, %v14402_v7  ;;  %v9857_v15 = vcombine.low %v16219_v12, %v16216_v4  ;;  %v10206_v44 = vld [vmem:[#allocation2 + $0x189] ss:$8 sm:$0xf]  ;;  %v9858_v50 = vcombine.high %v16219_v12, %v16216_v4  ;;  %v14243_v57 = vpack.c.bf16 %v13283_v42, %v13276_v37 }
 0x28c   :  { %v4453_v60 = vpop.f32.mrb[65].mxu0  ;;  %14230 = vmatprep.subr.bf16.mxu1 %v14229_v46  ;;  %v13281_v46 = vld [vmem:[%s16775_s3 + $0xaa8] sm:$0xff]  ;;  %v9535_v4 = vcombine.high %v9519_v52, %v9519_v52  ;;  %v13294_v12 = vld [vmem:[%s16775_s3 + $0xaf8] sm:$0xff] }
 0x28d   :  { %v4521_v1 = vpop.f32.mrb[64].mxu1  ;;  %v9865_v32 = vrot.slane %v9857_v15, %v14867_v53  ;;  %v14249_v63 = vpack.c.bf16 %v13288_v49, %v13281_v46 }
 0x28e   :  { %v4522_v5 = vadd.f32 %v4521_v1, %v4451_v56  ;;  %v4523_v6 = vpop.f32.mrb[65].mxu1  ;;  %v14247_v1 = vpack.c.bf16 %v13285_v54, %v13278_v19  ;;  %v10571_v54 = vld [vmem:[#allocation2 + $0xaa] ss:$8 sm:$0xf] }
 0x28f   :  { %v9873_v41 = vcombine.high %v9865_v32, %v9865_v32  ;;  %v9881_v17 = vrot.slane %v9865_v32, %v14867_v53 }
 0x290   :  { %9387 = vmatmul.mubr.f32.vlgmr.msra.gmra.mrb[118].mxu0 %v9150_v62 }
 0x291   :  { %14228 = vmatpush1.bf16.xpose.msra.mxu0 %v14227_v2  ;;  %9615 = vmatprep.mubr.f32.mxu0 %v9526_v3  ;;  %v9895_v58 = vrot.slane %v9873_v41, %v14867_v53  ;;  %v9872_v2 = vrot.slane %v9858_v50, %v14867_v53  ;;  %v16284_v3 = vor.u32 %v10203_v43, %v10202_v0  ;;  %v13305_v41 = vld [vmem:[%s16775_s3 + $0xb50] sm:$0x3]  ;;  %v13304_v0 = vld [vmem:[%s16775_s3 + $0xb48] sm:$0x3] }
 0x292   :  { %13712 = vmatmul.mubr.msk.f32.vlgmr.msra.gmra.mrb[118].mxu1 %vm498_vm4, %v9166_v13  ;;  %14234 = vmatprep.subr.bf16.mxu0 %v14233_v8  ;;  %v13280_v8 = vld [vmem:[%s16775_s3 + $0xaa0] sm:$0xff]  ;;  %v13301_v13 = vld [vmem:[%s16775_s3 + $0xb30] sm:$0x3]  ;;  %v9903_v33 = vcombine.high %v9881_v17, %v9881_v17 }
 0x293   :  { %v4591_v20 = vpop.f32.mrb[66].mxu0  ;;  %14232 = vmatpush1.bf16.xpose.msra.mxu1 %v14231_v10  ;;  %9685 = vmatprep.mubr.f32.mxu1 %v9536_v14  ;;  %v9874_v11 = vcombine.high %v9872_v2, %v9872_v2  ;;  %v14251_v23 = vpack.c.bf16 %v13287_v9, %v13280_v8  ;;  %v14257_v29 = vpack.c.bf16 %v13301_v13, %v13294_v12  ;;  %v13299_v9 = vld [vmem:[%s16775_s3 + $0xb20] sm:$0xff] }
 0x294   :  { %v4592_v25 = vadd.f32 %v4591_v20, %v4522_v5  ;;  %v4593_v26 = vpop.f32.mrb[67].mxu0  ;;  %14237 = vmatprep.subr.bf16.mxu1 %v14405_v47  ;;  %v9905_v5 = vcombine.high %v9895_v58, %v9895_v58  ;;  %v13289_v20 = vld [vmem:[%s16775_s3 + $0xae8] sm:$0x3]  ;;  %v9888_v43 = vrot.slane %v9872_v2, %v14867_v53 }
 0x295   :  { %v4661_v31 = vpop.f32.mrb[66].mxu1  ;;  %v13303_v26 = vld [vmem:[%s16775_s3 + $0xb40] sm:$0x3] }
 0x296   :  { %v4662_v16 = vadd.f32 %v4661_v31, %v4592_v25  ;;  %v13622_v30 = vpop.f32.mrb[67].mxu1  ;;  %v13296_v25 = vld [vmem:[%s16775_s3 + $0xb08] sm:$0xff]  ;;  %v9902_v31 = vrot.slane %v9874_v11, %v14867_v53 }
 0x297   :  { %v14261_v48 = vpack.c.bf16 %v13303_v26, %v13296_v25  ;;  %v13293_v30 = vld [vmem:[%s16775_s3 + $0xaf0] sm:$0xff] }
 0x298   :  { %v16253_v38 = vadd.f32 %v4662_v16, %v16188_v61  ;;  %9616 = vmatmul.mubr.f32.vlgmr.msra.gmra.mrb[120].mxu0 %v9512_v27  ;;  %v10207_v61 = vld [vmem:[#allocation2 + $0x189] ss:$8 sm:$0x70] }
 0x299   :  { %14236 = vmatpush1.bf16.xpose.msra.mxu0 %v14235_v55  ;;  %9755 = vmatprep.mubr.f32.mxu0 %v9533_v35  ;;  %v16281_v59 = vor.u32 %v10207_v61, %v10206_v44  ;;  %v14254_v55 = vpack.c.bf16 %v13289_v20, %v13282_v18  ;;  %v10572_v35 = vld [vmem:[#allocation2 + $0xaa] ss:$8 sm:$0x70]  ;;  %v13295_v44 = vld [vmem:[%s16775_s3 + $0xb00] sm:$0xff]  ;;  %v13302_v61 = vld [vmem:[%s16775_s3 + $0xb38] sm:$0x3] }
 0x29a   :  { %9686 = vmatmul.mubr.f32.vlgmr.msra.gmra.mrb[120].mxu1 %v9534_v39  ;;  %14242 = vmatprep.subr.bf16.mxu0 %v14241_v34  ;;  %v13300_v34 = vld [vmem:[%s16775_s3 + $0xb28] sm:$0x3] }
 0x29b   :  { %v4820_v45 = vpop.f32.mrb[68].mxu0  ;;  %14240 = vmatpush3.bf16.xpose.msk.msra.mxu1 %vm14901_vm5, %v14238_v36  ;;  %13718 = vmatprep.mubr.msk.f32.mxu1 %vm14407_vm6, %v14402_v7  ;;  %v10226_v6 = vcombine.low %v16284_v3, %v16281_v59  ;;  %v10575_v36 = vld [vmem:[#allocation2 + $0x18a] ss:$8 sm:$0xf]  ;;  %v10227_v37 = vcombine.high %v16284_v3, %v16281_v59  ;;  %v14259_v46 = vpack.c.bf16 %v13300_v34, %v13293_v30 }
 0x29c   :  { %v4822_v51 = vpop.f32.mrb[69].mxu0  ;;  %14246 = vmatprep.subr.bf16.mxu1 %v14245_v40  ;;  %v13298_v40 = vld [vmem:[%s16775_s3 + $0xb18] sm:$0xff]  ;;  %v9904_v59 = vcombine.high %v9888_v43, %v9888_v43  ;;  %v13311_v3 = vld [vmem:[%s16775_s3 + $0xb68] sm:$0xff] }
 0x29d   :  { %v4890_v56 = vpop.f32.mrb[68].mxu1  ;;  %v10234_v24 = vrot.slane %v10226_v6, %v14867_v53  ;;  %v14265_v19 = vpack.c.bf16 %v13305_v41, %v13298_v40 }
 0x29e   :  { %v4891_v60 = vadd.f32 %v4890_v56, %v4820_v45  ;;  %v4892_v62 = vpop.f32.mrb[69].mxu1  ;;  %v14263_v56 = vpack.c.bf16 %v13302_v61, %v13295_v44  ;;  %v10940_v61 = vld [vmem:[#allocation2 + $0xab] ss:$8 sm:$0xf] }
 0x29f   :  { %v10242_v16 = vcombine.high %v10234_v24, %v10234_v24  ;;  %v10250_v8 = vrot.slane %v10234_v24, %v14867_v53 }
 0x2a0   :  { %9756 = vmatmul.mubr.f32.vlgmr.msra.gmra.mrb[122].mxu0 %v9519_v52 }
 0x2a1   :  { %14244 = vmatpush1.bf16.xpose.msra.mxu0 %v14243_v57  ;;  %9984 = vmatprep.mubr.f32.mxu0 %v9895_v58  ;;  %v10264_v49 = vrot.slane %v10242_v16, %v14867_v53  ;;  %v10241_v57 = vrot.slane %v10227_v37, %v14867_v53  ;;  %v16349_v58 = vor.u32 %v10572_v35, %v10571_v54  ;;  %v13322_v16 = vld [vmem:[%s16775_s3 + $0xbc0] sm:$0x3]  ;;  %v13321_v54 = vld [vmem:[%s16775_s3 + $0xbb8] sm:$0x3] }
 0x2a2   :  { %13719 = vmatmul.mubr.msk.f32.vlgmr.msra.gmra.mrb[122].mxu1 %vm498_vm4, %v9535_v4  ;;  %14250 = vmatprep.subr.bf16.mxu0 %v14249_v63  ;;  %v13297_v63 = vld [vmem:[%s16775_s3 + $0xb10] sm:$0xff]  ;;  %v13318_v4 = vld [vmem:[%s16775_s3 + $0xba0] sm:$0x3]  ;;  %v10272_v25 = vcombine.high %v10250_v8, %v10250_v8 }
 0x2a3   :  { %v4960_v10 = vpop.f32.mrb[70].mxu0  ;;  %14248 = vmatpush1.bf16.xpose.msra.mxu1 %v14247_v1  ;;  %10054 = vmatprep.mubr.f32.mxu1 %v9905_v5  ;;  %v10243_v2 = vcombine.high %v10241_v57, %v10241_v57  ;;  %v14267_v12 = vpack.c.bf16 %v13304_v0, %v13297_v63  ;;  %v14273_v20 = vpack.c.bf16 %v13318_v4, %v13311_v3  ;;  %v13316_v0 = vld [vmem:[%s16775_s3 + $0xb90] sm:$0xff] }
 0x2a4   :  { %v4961_v14 = vadd.f32 %v4960_v10, %v4891_v60  ;;  %v4962_v15 = vpop.f32.mrb[71].mxu0  ;;  %14253 = vmatprep.subr.bf16.mxu1 %v14405_v47  ;;  %v10274_v60 = vcombine.high %v10264_v49, %v10264_v49  ;;  %v13306_v10 = vld [vmem:[%s16775_s3 + $0xb58] sm:$0x3]  ;;  %v10257_v35 = vrot.slane %v10241_v57, %v14867_v53 }
 0x2a5   :  { %v5030_v21 = vpop.f32.mrb[70].mxu1  ;;  %v13320_v15 = vld [vmem:[%s16775_s3 + $0xbb0] sm:$0x3] }
 0x2a6   :  { %v5031_v27 = vadd.f32 %v5030_v21, %v4961_v14  ;;  %v13629_v28 = vpop.f32.mrb[71].mxu1  ;;  %v13313_v14 = vld [vmem:[%s16775_s3 + $0xb78] sm:$0xff]  ;;  %v10271_v21 = vrot.slane %v10243_v2, %v14867_v53 }
 0x2a7   :  { %v14277_v26 = vpack.c.bf16 %v13320_v15, %v13313_v14  ;;  %v13310_v28 = vld [vmem:[%s16775_s3 + $0xb60] sm:$0xff] }
 0x2a8   :  { %v16318_v32 = vadd.f32 %v5031_v27, %v16253_v38  ;;  %9985 = vmatmul.mubr.f32.vlgmr.msra.gmra.mrb[124].mxu0 %v9881_v17  ;;  %v10576_v38 = vld [vmem:[#allocation2 + $0x18a] ss:$8 sm:$0x70] }
 0x2a9   :  { %14252 = vmatpush1.bf16.xpose.msra.mxu0 %v14251_v23  ;;  %10124 = vmatprep.mubr.f32.mxu0 %v9902_v31  ;;  %v16346_v50 = vor.u32 %v10576_v38, %v10575_v36  ;;  %v14270_v23 = vpack.c.bf16 %v13306_v10, %v13299_v9  ;;  %v10941_v31 = vld [vmem:[#allocation2 + $0xab] ss:$8 sm:$0x70]  ;;  %v13319_v38 = vld [vmem:[%s16775_s3 + $0xba8] sm:$0x3] }
 0x2aa   :  { %10055 = vmatmul.mubr.f32.vlgmr.msra.gmra.mrb[124].mxu1 %v9903_v33  ;;  %14258 = vmatprep.subr.bf16.mxu0 %v14257_v29  ;;  %v13317_v29 = vld [vmem:[%s16775_s3 + $0xb98] sm:$0x3]  ;;  %v13312_v36 = vld [vmem:[%s16775_s3 + $0xb70] sm:$0xff] }
 0x2ab   :  { %v5189_v39 = vpop.f32.mrb[72].mxu0  ;;  %14256 = vmatpush3.bf16.xpose.msk.msra.mxu1 %vm14901_vm5, %v14254_v55  ;;  %13725 = vmatprep.mubr.msk.f32.mxu1 %vm14407_vm6, %v14402_v7  ;;  %v10595_v62 = vcombine.low %v16349_v58, %v16346_v50  ;;  %v10944_v55 = vld [vmem:[#allocation2 + $0x18b] ss:$8 sm:$0xf]  ;;  %v10596_v30 = vcombine.high %v16349_v58, %v16346_v50  ;;  %v14275_v40 = vpack.c.bf16 %v13317_v29, %v13310_v28 }
 0x2ac   :  { %v5191_v42 = vpop.f32.mrb[73].mxu0  ;;  %14262 = vmatprep.subr.bf16.mxu1 %v14261_v48  ;;  %v13315_v48 = vld [vmem:[%s16775_s3 + $0xb88] sm:$0xff]  ;;  %v10273_v50 = vcombine.high %v10257_v35, %v10257_v35  ;;  %v13328_v58 = vld [vmem:[%s16775_s3 + $0xbd8] sm:$0xff] }
 0x2ad   :  { %v5259_v45 = vpop.f32.mrb[72].mxu1  ;;  %v10603_v13 = vrot.slane %v10595_v62, %v14867_v53  ;;  %v14281_v44 = vpack.c.bf16 %v13322_v16, %v13315_v48 }
 0x2ae   :  { %v5260_v51 = vadd.f32 %v5259_v45, %v5189_v39  ;;  %v5261_v52 = vpop.f32.mrb[73].mxu1  ;;  %v14279_v45 = vpack.c.bf16 %v13319_v38, %v13312_v36  ;;  %v11309_v38 = vld [vmem:[#allocation2 + $0xac] ss:$8 sm:$0xf] }
 0x2af   :  { %v10611_v27 = vcombine.high %v10603_v13, %v10603_v13  ;;  %v10619_v63 = vrot.slane %v10603_v13, %v14867_v53 }
 0x2b0   :  { %10125 = vmatmul.mubr.f32.vlgmr.msra.gmra.mrb[126].mxu0 %v9888_v43 }
 0x2b1   :  { %14260 = vmatpush1.bf16.xpose.msra.mxu0 %v14259_v46  ;;  %10353 = vmatprep.mubr.f32.mxu0 %v10264_v49  ;;  %v10633_v41 = vrot.slane %v10611_v27, %v14867_v53  ;;  %v10610_v46 = vrot.slane %v10596_v30, %v14867_v53  ;;  %v16414_v49 = vor.u32 %v10941_v31, %v10940_v61  ;;  %v13339_v27 = vld [vmem:[%s16775_s3 + $0xc30] sm:$0x3]  ;;  %v13338_v61 = vld [vmem:[%s16775_s3 + $0xc28] sm:$0x3] }
 0x2b2   :  { %13726 = vmatmul.mubr.msk.f32.vlgmr.msra.gmra.mrb[126].mxu1 %vm498_vm4, %v9904_v59  ;;  %14266 = vmatprep.subr.bf16.mxu0 %v14265_v19  ;;  %v13314_v19 = vld [vmem:[%s16775_s3 + $0xb80] sm:$0xff]  ;;  %v13335_v59 = vld [vmem:[%s16775_s3 + $0xc10] sm:$0x3]  ;;  %v10641_v14 = vcombine.high %v10619_v63, %v10619_v63 }
 0x2b3   :  { %v5329_v1 = vpop.f32.mrb[74].mxu0  ;;  %14264 = vmatpush1.bf16.xpose.msra.mxu1 %v14263_v56  ;;  %10423 = vmatprep.mubr.f32.mxu1 %v10274_v60  ;;  %v10612_v57 = vcombine.high %v10610_v46, %v10610_v46  ;;  %v14283_v3 = vpack.c.bf16 %v13321_v54, %v13314_v19  ;;  %v14289_v10 = vpack.c.bf16 %v13335_v59, %v13328_v58  ;;  %v13333_v54 = vld [vmem:[%s16775_s3 + $0xc00] sm:$0xff] }
 0x2b4   :  { %v5330_v5 = vadd.f32 %v5329_v1, %v5260_v51  ;;  %v5331_v6 = vpop.f32.mrb[75].mxu0  ;;  %14269 = vmatprep.subr.bf16.mxu1 %v14405_v47  ;;  %v10643_v51 = vcombine.high %v10633_v41, %v10633_v41  ;;  %v13323_v1 = vld [vmem:[%s16775_s3 + $0xbc8] sm:$0x3]  ;;  %v10626_v31 = vrot.slane %v10610_v46, %v14867_v53 }
 0x2b5   :  { %v5399_v11 = vpop.f32.mrb[74].mxu1  ;;  %v13337_v6 = vld [vmem:[%s16775_s3 + $0xc20] sm:$0x3] }
 0x2b6   :  { %v5400_v17 = vadd.f32 %v5399_v11, %v5330_v5  ;;  %v13636_v18 = vpop.f32.mrb[75].mxu1  ;;  %v13330_v5 = vld [vmem:[%s16775_s3 + $0xbe8] sm:$0xff]  ;;  %v10640_v11 = vrot.slane %v10612_v57, %v14867_v53 }
 0x2b7   :  { %v14293_v15 = vpack.c.bf16 %v13337_v6, %v13330_v5  ;;  %v13327_v18 = vld [vmem:[%s16775_s3 + $0xbd0] sm:$0xff] }
 0x2b8   :  { %v16383_v24 = vadd.f32 %v5400_v17, %v16318_v32  ;;  %10354 = vmatmul.mubr.f32.vlgmr.msra.gmra.mrb[128].mxu0 %v10250_v8  ;;  %v10945_v32 = vld [vmem:[#allocation2 + $0x18b] ss:$8 sm:$0x70] }
 0x2b9   :  { %14268 = vmatpush1.bf16.xpose.msra.mxu0 %v14267_v12  ;;  %10493 = vmatprep.mubr.f32.mxu0 %v10271_v21  ;;  %v16411_v37 = vor.u32 %v10945_v32, %v10944_v55  ;;  %v14286_v12 = vpack.c.bf16 %v13323_v1, %v13316_v0  ;;  %v11310_v21 = vld [vmem:[#allocation2 + $0xac] ss:$8 sm:$0x70]  ;;  %v13329_v55 = vld [vmem:[%s16775_s3 + $0xbe0] sm:$0xff]  ;;  %v13336_v32 = vld [vmem:[%s16775_s3 + $0xc18] sm:$0x3] }
 0x2ba   :  { %10424 = vmatmul.mubr.f32.vlgmr.msra.gmra.mrb[128].mxu1 %v10272_v25  ;;  %14274 = vmatprep.subr.bf16.mxu0 %v14273_v20  ;;  %v13334_v20 = vld [vmem:[%s16775_s3 + $0xc08] sm:$0x3] }
 0x2bb   :  { %v5558_v33 = vpop.f32.mrb[76].mxu0  ;;  %14272 = vmatpush3.bf16.xpose.msk.msra.mxu1 %vm14901_vm5, %v14270_v23  ;;  %13732 = vmatprep.mubr.msk.f32.mxu1 %vm14407_vm6, %v14402_v7  ;;  %v10964_v52 = vcombine.low %v16414_v49, %v16411_v37  ;;  %v11313_v23 = vld [vmem:[#allocation2 + $0x18c] ss:$8 sm:$0xf]  ;;  %v10965_v28 = vcombine.high %v16414_v49, %v16411_v37  ;;  %v14291_v48 = vpack.c.bf16 %v13334_v20, %v13327_v18 }
 0x2bc   :  { %v5560_v34 = vpop.f32.mrb[77].mxu0  ;;  %14278 = vmatprep.subr.bf16.mxu1 %v14277_v26  ;;  %v13332_v26 = vld [vmem:[%s16775_s3 + $0xbf8] sm:$0xff]  ;;  %v10642_v37 = vcombine.high %v10626_v31, %v10626_v31  ;;  %v13345_v49 = vld [vmem:[%s16775_s3 + $0xc48] sm:$0xff] }
 0x2bd   :  { %v5628_v39 = vpop.f32.mrb[76].mxu1  ;;  %v10972_v4 = vrot.slane %v10964_v52, %v14867_v53  ;;  %v14297_v36 = vpack.c.bf16 %v13339_v27, %v13332_v26 }
 0x2be   :  { %v5629_v42 = vadd.f32 %v5628_v39, %v5558_v33  ;;  %v5630_v43 = vpop.f32.mrb[77].mxu1  ;;  %v14295_v39 = vpack.c.bf16 %v13336_v32, %v13329_v55  ;;  %v11678_v32 = vld [vmem:[#allocation2 + $0xad] ss:$8 sm:$0xf] }
 0x2bf   :  { %v10980_v17 = vcombine.high %v10972_v4, %v10972_v4  ;;  %v10988_v19 = vrot.slane %v10972_v4, %v14867_v53 }
 0x2c0   :  { %10494 = vmatmul.mubr.f32.vlgmr.msra.gmra.mrb[130].mxu0 %v10257_v35 }
 0x2c1   :  { %14276 = vmatpush1.bf16.xpose.msra.mxu0 %v14275_v40  ;;  %10722 = vmatprep.mubr.f32.mxu0 %v10633_v41  ;;  %v11002_v16 = vrot.slane %v10980_v17, %v14867_v53  ;;  %v10979_v40 = vrot.slane %v10965_v28, %v14867_v53  ;;  %v16479_v41 = vor.u32 %v11310_v21, %v11309_v38  ;;  %v13356_v17 = vld [vmem:[%s16775_s3 + $0xca0] sm:$0x3]  ;;  %v13355_v38 = vld [vmem:[%s16775_s3 + $0xc98] sm:$0x3] }
 0x2c2   :  { %13733 = vmatmul.mubr.msk.f32.vlgmr.msra.gmra.mrb[130].mxu1 %vm498_vm4, %v10273_v50  ;;  %14282 = vmatprep.subr.bf16.mxu0 %v14281_v44  ;;  %v13331_v44 = vld [vmem:[%s16775_s3 + $0xbf0] sm:$0xff]  ;;  %v13352_v50 = vld [vmem:[%s16775_s3 + $0xc80] sm:$0x3]  ;;  %v11010_v5 = vcombine.high %v10988_v19, %v10988_v19 }
 0x2c3   :  { %v5698_v56 = vpop.f32.mrb[78].mxu0  ;;  %14280 = vmatpush1.bf16.xpose.msra.mxu1 %v14279_v45  ;;  %10792 = vmatprep.mubr.f32.mxu1 %v10643_v51  ;;  %v10981_v46 = vcombine.high %v10979_v40, %v10979_v40  ;;  %v14299_v58 = vpack.c.bf16 %v13338_v61, %v13331_v44  ;;  %v14305_v1 = vpack.c.bf16 %v13352_v50, %v13345_v49  ;;  %v13350_v61 = vld [vmem:[%s16775_s3 + $0xc70] sm:$0xff] }
 0x2c4   :  { %v5699_v60 = vadd.f32 %v5698_v56, %v5629_v42  ;;  %v5700_v62 = vpop.f32.mrb[79].mxu0  ;;  %14285 = vmatprep.subr.bf16.mxu1 %v14405_v47  ;;  %v11012_v42 = vcombine.high %v11002_v16, %v11002_v16  ;;  %v13340_v56 = vld [vmem:[%s16775_s3 + $0xc38] sm:$0x3]  ;;  %v10995_v21 = vrot.slane %v10979_v40, %v14867_v53 }
 0x2c5   :  { %v5768_v2 = vpop.f32.mrb[78].mxu1  ;;  %v13354_v62 = vld [vmem:[%s16775_s3 + $0xc90] sm:$0x3] }
 0x2c6   :  { %v5769_v8 = vadd.f32 %v5768_v2, %v5699_v60  ;;  %v13643_v9 = vpop.f32.mrb[79].mxu1  ;;  %v13347_v60 = vld [vmem:[%s16775_s3 + $0xc58] sm:$0xff]  ;;  %v11009_v2 = vrot.slane %v10981_v46, %v14867_v53 }
 0x2c7   :  { %v14309_v6 = vpack.c.bf16 %v13354_v62, %v13347_v60  ;;  %v13344_v9 = vld [vmem:[%s16775_s3 + $0xc40] sm:$0xff] }
 0x2c8   :  { %v16448_v13 = vadd.f32 %v5769_v8, %v16383_v24  ;;  %10723 = vmatmul.mubr.f32.vlgmr.msra.gmra.mrb[132].mxu0 %v10619_v63  ;;  %v11314_v24 = vld [vmem:[#allocation2 + $0x18c] ss:$8 sm:$0x70] }
 0x2c9   :  { %14284 = vmatpush1.bf16.xpose.msra.mxu0 %v14283_v3  ;;  %10862 = vmatprep.mubr.f32.mxu0 %v10640_v11  ;;  %v16476_v30 = vor.u32 %v11314_v24, %v11313_v23  ;;  %v14302_v3 = vpack.c.bf16 %v13340_v56, %v13333_v54  ;;  %v11679_v11 = vld [vmem:[#allocation2 + $0xad] ss:$8 sm:$0x70]  ;;  %v13353_v24 = vld [vmem:[%s16775_s3 + $0xc88] sm:$0x3] }
 0x2ca   :  { %10793 = vmatmul.mubr.f32.vlgmr.msra.gmra.mrb[132].mxu1 %v10641_v14  ;;  %14290 = vmatprep.subr.bf16.mxu0 %v14289_v10  ;;  %v13351_v10 = vld [vmem:[%s16775_s3 + $0xc78] sm:$0x3]  ;;  %v13346_v23 = vld [vmem:[%s16775_s3 + $0xc50] sm:$0xff] }
 0x2cb   :  { %v5927_v25 = vpop.f32.mrb[80].mxu0  ;;  %14288 = vmatpush3.bf16.xpose.msk.msra.mxu1 %vm14901_vm5, %v14286_v12  ;;  %13739 = vmatprep.mubr.msk.f32.mxu1 %vm14407_vm6, %v14402_v7  ;;  %v11333_v43 = vcombine.low %v16479_v41, %v16476_v30  ;;  %v11682_v12 = vld [vmem:[#allocation2 + $0x18d] ss:$8 sm:$0xf]  ;;  %v11334_v18 = vcombine.high %v16479_v41, %v16476_v30  ;;  %v14307_v26 = vpack.c.bf16 %v13351_v10, %v13344_v9 }
 0x2cc   :  { %v5929_v29 = vpop.f32.mrb[81].mxu0  ;;  %14294 = vmatprep.subr.bf16.mxu1 %v14293_v15  ;;  %v13349_v15 = vld [vmem:[%s16775_s3 + $0xc68] sm:$0xff]  ;;  %v11011_v30 = vcombine.high %v10995_v21, %v10995_v21  ;;  %v13362_v41 = vld [vmem:[%s16775_s3 + $0xcb8] sm:$0xff] }
 0x2cd   :  { %v5997_v33 = vpop.f32.mrb[80].mxu1  ;;  %v11341_v59 = vrot.slane %v11333_v43, %v14867_v53  ;;  %v14313_v55 = vpack.c.bf16 %v13356_v17, %v13349_v15 }
 0x2ce   :  { %v5998_v34 = vadd.f32 %v5997_v33, %v5927_v25  ;;  %v5999_v35 = vpop.f32.mrb[81].mxu1  ;;  %v14311_v33 = vpack.c.bf16 %v13353_v24, %v13346_v23  ;;  %v12047_v24 = vld [vmem:[#allocation2 + $0xae] ss:$8 sm:$0xf] }
 0x2cf   :  { %v11349_v8 = vcombine.high %v11341_v59, %v11341_v59  ;;  %v11357_v44 = vrot.slane %v11341_v59, %v14867_v53 }
 0x2d0   :  { %10863 = vmatmul.mubr.f32.vlgmr.msra.gmra.mrb[134].mxu0 %v10626_v31 }
 0x2d1   :  { %14292 = vmatpush1.bf16.xpose.msra.mxu0 %v14291_v48  ;;  %11091 = vmatprep.mubr.f32.mxu0 %v11002_v16  ;;  %v11371_v27 = vrot.slane %v11349_v8, %v14867_v53  ;;  %v11348_v48 = vrot.slane %v11334_v18, %v14867_v53  ;;  %v16544_v16 = vor.u32 %v11679_v11, %v11678_v32  ;;  %v13373_v8 = vld [vmem:[%s16775_s3 + $0xd10] sm:$0x3]  ;;  %v13372_v32 = vld [vmem:[%s16775_s3 + $0xd08] sm:$0x3] }
 0x2d2   :  { %13740 = vmatmul.mubr.msk.f32.vlgmr.msra.gmra.mrb[134].mxu1 %vm498_vm4, %v10642_v37  ;;  %14298 = vmatprep.subr.bf16.mxu0 %v14297_v36  ;;  %v13348_v36 = vld [vmem:[%s16775_s3 + $0xc60] sm:$0xff]  ;;  %v13369_v37 = vld [vmem:[%s16775_s3 + $0xcf0] sm:$0x3]  ;;  %v11379_v60 = vcombine.high %v11357_v44, %v11357_v44 }
 0x2d3   :  { %v6067_v45 = vpop.f32.mrb[82].mxu0  ;;  %14296 = vmatpush1.bf16.xpose.msra.mxu1 %v14295_v39  ;;  %11161 = vmatprep.mubr.f32.mxu1 %v11012_v42  ;;  %v11350_v40 = vcombine.high %v11348_v48, %v11348_v48  ;;  %v14315_v49 = vpack.c.bf16 %v13355_v38, %v13348_v36  ;;  %v14321_v56 = vpack.c.bf16 %v13369_v37, %v13362_v41  ;;  %v13367_v38 = vld [vmem:[%s16775_s3 + $0xce0] sm:$0xff] }
 0x2d4   :  { %v6068_v51 = vadd.f32 %v6067_v45, %v5998_v34  ;;  %v6069_v52 = vpop.f32.mrb[83].mxu0  ;;  %14301 = vmatprep.subr.bf16.mxu1 %v14405_v47  ;;  %v11381_v34 = vcombine.high %v11371_v27, %v11371_v27  ;;  %v13357_v45 = vld [vmem:[%s16775_s3 + $0xca8] sm:$0x3]  ;;  %v11364_v11 = vrot.slane %v11348_v48, %v14867_v53 }
 0x2d5   :  { %v6137_v57 = vpop.f32.mrb[82].mxu1  ;;  %v13371_v52 = vld [vmem:[%s16775_s3 + $0xd00] sm:$0x3] }
 0x2d6   :  { %v6138_v63 = vadd.f32 %v6137_v57, %v6068_v51  ;;  %v13650_v0 = vpop.f32.mrb[83].mxu1  ;;  %v13364_v51 = vld [vmem:[%s16775_s3 + $0xcc8] sm:$0xff]  ;;  %v11378_v57 = vrot.slane %v11350_v40, %v14867_v53 }
 0x2d7   :  { %v14325_v62 = vpack.c.bf16 %v13371_v52, %v13364_v51  ;;  %v13361_v0 = vld [vmem:[%s16775_s3 + $0xcb0] sm:$0xff] }
 0x2d8   :  { %v16513_v4 = vadd.f32 %v6138_v63, %v16448_v13  ;;  %11092 = vmatmul.mubr.f32.vlgmr.msra.gmra.mrb[136].mxu0 %v10988_v19  ;;  %v11683_v13 = vld [vmem:[#allocation2 + $0x18d] ss:$8 sm:$0x70] }
 0x2d9   :  { %14300 = vmatpush1.bf16.xpose.msra.mxu0 %v14299_v58  ;;  %11231 = vmatprep.mubr.f32.mxu0 %v11009_v2  ;;  %v16541_v28 = vor.u32 %v11683_v13, %v11682_v12  ;;  %v14318_v58 = vpack.c.bf16 %v13357_v45, %v13350_v61  ;;  %v12048_v2 = vld [vmem:[#allocation2 + $0xae] ss:$8 sm:$0x70]  ;;  %v13363_v12 = vld [vmem:[%s16775_s3 + $0xcc0] sm:$0xff]  ;;  %v13370_v13 = vld [vmem:[%s16775_s3 + $0xcf8] sm:$0x3] }
 0x2da   :  { %11162 = vmatmul.mubr.f32.vlgmr.msra.gmra.mrb[136].mxu1 %v11010_v5  ;;  %14306 = vmatprep.subr.bf16.mxu0 %v14305_v1  ;;  %v13368_v1 = vld [vmem:[%s16775_s3 + $0xce8] sm:$0x3] }
 0x2db   :  { %v6296_v14 = vpop.f32.mrb[84].mxu0  ;;  %14304 = vmatpush3.bf16.xpose.msk.msra.mxu1 %vm14901_vm5, %v14302_v3  ;;  %13746 = vmatprep.mubr.msk.f32.mxu1 %vm14407_vm6, %v14402_v7  ;;  %v11702_v35 = vcombine.low %v16544_v16, %v16541_v28  ;;  %v12051_v3 = vld [vmem:[#allocation2 + $0x18e] ss:$8 sm:$0xf]  ;;  %v11703_v9 = vcombine.high %v16544_v16, %v16541_v28  ;;  %v14323_v15 = vpack.c.bf16 %v13368_v1, %v13361_v0 }
 0x2dc   :  { %v6298_v20 = vpop.f32.mrb[85].mxu0  ;;  %14310 = vmatprep.subr.bf16.mxu1 %v14309_v6  ;;  %v13366_v6 = vld [vmem:[%s16775_s3 + $0xcd8] sm:$0xff]  ;;  %v11380_v28 = vcombine.high %v11364_v11, %v11364_v11  ;;  %v13379_v16 = vld [vmem:[%s16775_s3 + $0xd28] sm:$0xff] }
 0x2dd   :  { %v6366_v25 = vpop.f32.mrb[84].mxu1  ;;  %v11710_v50 = vrot.slane %v11702_v35, %v14867_v53  ;;  %v14329_v23 = vpack.c.bf16 %v13373_v8, %v13366_v6 }
 0x2de   :  { %v6367_v29 = vadd.f32 %v6366_v25, %v6296_v14  ;;  %v6368_v31 = vpop.f32.mrb[85].mxu1  ;;  %v14327_v25 = vpack.c.bf16 %v13370_v13, %v13363_v12  ;;  %v12416_v13 = vld [vmem:[#allocation2 + $0xaf] ss:$8 sm:$0xf] }
 0x2df   :  { %v11718_v63 = vcombine.high %v11710_v50, %v11710_v50  ;;  %v11726_v36 = vrot.slane %v11710_v50, %v14867_v53 }
 0x2e0   :  { %11232 = vmatmul.mubr.f32.vlgmr.msra.gmra.mrb[138].mxu0 %v10995_v21 }
 0x2e1   :  { %14308 = vmatpush1.bf16.xpose.msra.mxu0 %v14307_v26  ;;  %11460 = vmatprep.mubr.f32.mxu0 %v11371_v27  ;;  %v11740_v17 = vrot.slane %v11718_v63, %v14867_v53  ;;  %v11717_v26 = vrot.slane %v11703_v9, %v14867_v53  ;;  %v16609_v27 = vor.u32 %v12048_v2, %v12047_v24  ;;  %v13390_v63 = vld [vmem:[%s16775_s3 + $0xd80] sm:$0x3]  ;;  %v13389_v24 = vld [vmem:[%s16775_s3 + $0xd78] sm:$0x3] }
 0x2e2   :  { %13747 = vmatmul.mubr.msk.f32.vlgmr.msra.gmra.mrb[138].mxu1 %vm498_vm4, %v11011_v30  ;;  %14314 = vmatprep.subr.bf16.mxu0 %v14313_v55  ;;  %v13365_v55 = vld [vmem:[%s16775_s3 + $0xcd0] sm:$0xff]  ;;  %v13386_v30 = vld [vmem:[%s16775_s3 + $0xd60] sm:$0x3]  ;;  %v11748_v51 = vcombine.high %v11726_v36, %v11726_v36 }
 0x2e3   :  { %v6436_v39 = vpop.f32.mrb[86].mxu0  ;;  %14312 = vmatpush1.bf16.xpose.msra.mxu1 %v14311_v33  ;;  %11530 = vmatprep.mubr.f32.mxu1 %v11381_v34  ;;  %v11719_v48 = vcombine.high %v11717_v26, %v11717_v26  ;;  %v14331_v41 = vpack.c.bf16 %v13372_v32, %v13365_v55  ;;  %v14337_v45 = vpack.c.bf16 %v13386_v30, %v13379_v16  ;;  %v13384_v32 = vld [vmem:[%s16775_s3 + $0xd50] sm:$0xff] }
 0x2e4   :  { %v6437_v42 = vadd.f32 %v6436_v39, %v6367_v29  ;;  %v6438_v43 = vpop.f32.mrb[87].mxu0  ;;  %14317 = vmatprep.subr.bf16.mxu1 %v14405_v47  ;;  %v11750_v29 = vcombine.high %v11740_v17, %v11740_v17  ;;  %v13374_v39 = vld [vmem:[%s16775_s3 + $0xd18] sm:$0x3]  ;;  %v11733_v2 = vrot.slane %v11717_v26, %v14867_v53 }
 0x2e5   :  { %v6506_v46 = vpop.f32.mrb[86].mxu1  ;;  %v13388_v43 = vld [vmem:[%s16775_s3 + $0xd70] sm:$0x3] }
 0x2e6   :  { %v6507_v19 = vadd.f32 %v6506_v46, %v6437_v42  ;;  %v13657_v54 = vpop.f32.mrb[87].mxu1  ;;  %v13381_v42 = vld [vmem:[%s16775_s3 + $0xd38] sm:$0xff]  ;;  %v11747_v46 = vrot.slane %v11719_v48, %v14867_v53 }
 0x2e7   :  { %v14341_v52 = vpack.c.bf16 %v13388_v43, %v13381_v42  ;;  %v13378_v54 = vld [vmem:[%s16775_s3 + $0xd20] sm:$0xff] }
 0x2e8   :  { %v16578_v59 = vadd.f32 %v6507_v19, %v16513_v4  ;;  %11461 = vmatmul.mubr.f32.vlgmr.msra.gmra.mrb[140].mxu0 %v11357_v44  ;;  %v12052_v4 = vld [vmem:[#allocation2 + $0x18e] ss:$8 sm:$0x70] }
 0x2e9   :  { %14316 = vmatpush1.bf16.xpose.msra.mxu0 %v14315_v49  ;;  %11600 = vmatprep.mubr.f32.mxu0 %v11378_v57  ;;  %v16606_v18 = vor.u32 %v12052_v4, %v12051_v3  ;;  %v14334_v49 = vpack.c.bf16 %v13374_v39, %v13367_v38  ;;  %v12417_v57 = vld [vmem:[#allocation2 + $0xaf] ss:$8 sm:$0x70]  ;;  %v13387_v4 = vld [vmem:[%s16775_s3 + $0xd68] sm:$0x3] }
 0x2ea   :  { %11531 = vmatmul.mubr.f32.vlgmr.msra.gmra.mrb[140].mxu1 %v11379_v60  ;;  %14322 = vmatprep.subr.bf16.mxu0 %v14321_v56  ;;  %v13385_v56 = vld [vmem:[%s16775_s3 + $0xd58] sm:$0x3]  ;;  %v13380_v3 = vld [vmem:[%s16775_s3 + $0xd30] sm:$0xff] }
 0x2eb   :  { %v6665_v5 = vpop.f32.mrb[88].mxu0  ;;  %14320 = vmatpush3.bf16.xpose.msk.msra.mxu1 %vm14901_vm5, %v14318_v58  ;;  %13753 = vmatprep.mubr.msk.f32.mxu1 %vm14407_vm6, %v14402_v7  ;;  %v12071_v31 = vcombine.low %v16609_v27, %v16606_v18  ;;  %v12420_v58 = vld [vmem:[#allocation2 + $0x18f] ss:$8 sm:$0xf]  ;;  %v12072_v0 = vcombine.high %v16609_v27, %v16606_v18  ;;  %v14339_v6 = vpack.c.bf16 %v13385_v56, %v13378_v54  ;;  %v13404_v56 = vld [vmem:[%s16775_s3 + $0xdd8] sm:$0x3] }
 0x2ec   :  { %v6667_v10 = vpop.f32.mrb[89].mxu0  ;;  %14326 = vmatprep.subr.bf16.mxu1 %v14325_v62  ;;  %v13383_v62 = vld [vmem:[%s16775_s3 + $0xd48] sm:$0xff]  ;;  %v11749_v18 = vcombine.high %v11733_v2, %v11733_v2  ;;  %v13396_v27 = vld [vmem:[%s16775_s3 + $0xd98] sm:$0xff]  ;;  %v13397_v54 = vld [vmem:[%s16775_s3 + $0xda0] sm:$0xff] }
 0x2ed   :  { %v6735_v14 = vpop.f32.mrb[88].mxu1  ;;  %v12079_v37 = vrot.slane %v12071_v31, %v14867_v53  ;;  %v14345_v12 = vpack.c.bf16 %v13390_v63, %v13383_v62 }
 0x2ee   :  { %v6736_v20 = vadd.f32 %v6735_v14, %v6665_v5  ;;  %v6737_v21 = vpop.f32.mrb[89].mxu1  ;;  %v14343_v14 = vpack.c.bf16 %v13387_v4, %v13380_v3  ;;  %v13399_v4 = vld [vmem:[%s16775_s3 + $0xdb0] sm:$0xff] }
 0x2ef   :  { %v12087_v19 = vcombine.high %v12079_v37, %v12079_v37  ;;  %v12095_v55 = vrot.slane %v12079_v37, %v14867_v53 }
 0x2f0   :  { %11601 = vmatmul.mubr.f32.vlgmr.msra.gmra.mrb[142].mxu0 %v11364_v11 }
 0x2f1   :  { %14324 = vmatpush1.bf16.xpose.msra.mxu0 %v14323_v15  ;;  %11829 = vmatprep.mubr.f32.mxu0 %v11740_v17  ;;  %v12109_v8 = vrot.slane %v12087_v19, %v14867_v53  ;;  %v12086_v15 = vrot.slane %v12072_v0, %v14867_v53  ;;  %v16674_v17 = vor.u32 %v12417_v57, %v12416_v13  ;;  %v13408_v13 = vld [vmem:[%s16775_s3 + $0xdf8] sm:$0x3] }
 0x2f2   :  { %13754 = vmatmul.mubr.msk.f32.vlgmr.msra.gmra.mrb[142].mxu1 %vm498_vm4, %v11380_v28  ;;  %14330 = vmatprep.subr.bf16.mxu0 %v14329_v23  ;;  %v13382_v23 = vld [vmem:[%s16775_s3 + $0xd40] sm:$0xff]  ;;  %v13403_v28 = vld [vmem:[%s16775_s3 + $0xdd0] sm:$0x3]  ;;  %v12117_v42 = vcombine.high %v12095_v55, %v12095_v55  ;;  %v14359_v0 = vpack.c.bf16 %v13404_v56, %v13397_v54 }
 0x2f3   :  { %v6805_v33 = vpop.f32.mrb[90].mxu0  ;;  %14328 = vmatpush1.bf16.xpose.msra.mxu1 %v14327_v25  ;;  %11899 = vmatprep.mubr.f32.mxu1 %v11750_v29  ;;  %v12088_v26 = vcombine.high %v12086_v15, %v12086_v15  ;;  %v14347_v16 = vpack.c.bf16 %v13389_v24, %v13382_v23  ;;  %v14353_v39 = vpack.c.bf16 %v13403_v28, %v13396_v27 }
 0x2f4   :  { %v6806_v34 = vadd.f32 %v6805_v33, %v6736_v20  ;;  %v6807_v35 = vpop.f32.mrb[91].mxu0  ;;  %14333 = vmatprep.subr.bf16.mxu1 %v14405_v47  ;;  %v12119_v20 = vcombine.high %v12109_v8, %v12109_v8  ;;  %v13391_v33 = vld [vmem:[%s16775_s3 + $0xd88] sm:$0x3]  ;;  %v12102_v19 = vrot.slane %v12086_v15, %v14867_v53 }
 0x2f5   :  { %v6875_v40 = vpop.f32.mrb[90].mxu1  ;;  %v13405_v35 = vld [vmem:[%s16775_s3 + $0xde0] sm:$0x3] }
 0x2f6   :  { %v6876_v44 = vadd.f32 %v6875_v40, %v6806_v34  ;;  %v13664_v61 = vpop.f32.mrb[91].mxu1  ;;  %v13398_v34 = vld [vmem:[%s16775_s3 + $0xda8] sm:$0xff]  ;;  %v12116_v40 = vrot.slane %v12088_v26, %v14867_v53 }
 0x2f7   :  { %v14357_v43 = vpack.c.bf16 %v13405_v35, %v13398_v34  ;;  %v13395_v61 = vld [vmem:[%s16775_s3 + $0xd90] sm:$0xff] }
 0x2f8   :  { %v16643_v50 = vadd.f32 %v6876_v44, %v16578_v59  ;;  %11830 = vmatmul.mubr.f32.vlgmr.msra.gmra.mrb[144].mxu0 %v11726_v36  ;;  %v12421_v59 = vld [vmem:[#allocation2 + $0x18f] ss:$8 sm:$0x70] }
 0x2f9   :  { %14332 = vmatpush1.bf16.xpose.msra.mxu0 %v14331_v41  ;;  %11969 = vmatprep.mubr.f32.mxu0 %v11747_v46  ;;  %v16671_v9 = vor.u32 %v12421_v59, %v12420_v58  ;;  %v14350_v41 = vpack.c.bf16 %v13391_v33, %v13384_v32 }
 0x2fa   :  { %11900 = vmatmul.mubr.f32.vlgmr.msra.gmra.mrb[144].mxu1 %v11748_v51  ;;  %14338 = vmatprep.subr.bf16.mxu0 %v14337_v45  ;;  %v13402_v45 = vld [vmem:[%s16775_s3 + $0xdc8] sm:$0x3] }
 0x2fb   :  { %v7034_v60 = vpop.f32.mrb[92].mxu0  ;;  %14336 = vmatpush3.bf16.xpose.msk.msra.mxu1 %vm14901_vm5, %v14334_v49  ;;  %13760 = vmatprep.mubr.msk.f32.mxu1 %vm14407_vm6, %v14402_v7  ;;  %v12440_v21 = vcombine.low %v16674_v17, %v16671_v9  ;;  %v13400_v49 = vld [vmem:[%s16775_s3 + $0xdb8] sm:$0xff]  ;;  %v12441_v51 = vcombine.high %v16674_v17, %v16671_v9  ;;  %v14355_v58 = vpack.c.bf16 %v13402_v45, %v13395_v61 }
 0x2fc   :  { %v7036_v1 = vpop.f32.mrb[93].mxu0  ;;  %14342 = vmatprep.subr.bf16.mxu1 %v14341_v52 }
 0x2fd   :  { %v7104_v5 = vpop.f32.mrb[92].mxu1  ;;  %v12448_v30 = vrot.slane %v12440_v21, %v14867_v53  ;;  %v12455_v1 = vrot.slane %v12441_v51, %v14867_v53 }
 0x2fe   :  { %v7105_v10 = vadd.f32 %v7104_v5, %v7034_v60  ;;  %v7106_v11 = vpop.f32.mrb[93].mxu1  ;;  %v13406_v5 = vld [vmem:[%s16775_s3 + $0xde8] sm:$0x3] }
 0x2ff   :  { %v12456_v44 = vcombine.high %v12448_v30, %v12448_v30  ;;  %v12464_v11 = vrot.slane %v12448_v30, %v14867_v53  ;;  %v14363_v15 = vpack.c.bf16 %v13406_v5, %v13399_v4  ;;  %v12471_v26 = vrot.slane %v12455_v1, %v14867_v53 }
 0x300   :  { %11970 = vmatmul.mubr.f32.vlgmr.msra.gmra.mrb[146].mxu0 %v11733_v2  ;;  %v12118_v2 = vcombine.high %v12102_v19, %v12102_v19 }
 0x301   :  { %14340 = vmatpush1.bf16.xpose.msra.mxu0 %v14339_v6  ;;  %12198 = vmatprep.mubr.f32.mxu0 %v12109_v8  ;;  %v12478_v59 = vrot.slane %v12456_v44, %v14867_v53  ;;  %v12457_v8 = vcombine.high %v12455_v1, %v12455_v1  ;;  %v12486_v24 = vcombine.high %v12464_v11, %v12464_v11 }
 0x302   :  { %13761 = vmatmul.mubr.msk.f32.vlgmr.msra.gmra.mrb[146].mxu1 %vm498_vm4, %v11749_v18  ;;  %14346 = vmatprep.subr.bf16.mxu0 %v14345_v12  ;;  %v13401_v12 = vld [vmem:[%s16775_s3 + $0xdc0] sm:$0xff] }
 0x303   :  { %v7174_v25 = vpop.f32.mrb[94].mxu0  ;;  %14344 = vmatpush1.bf16.xpose.msra.mxu1 %v14343_v14  ;;  %12268 = vmatprep.mubr.f32.mxu1 %v12119_v20  ;;  %v12488_v3 = vcombine.high %v12478_v59, %v12478_v59  ;;  %v12485_v20 = vrot.slane %v12457_v8, %v14867_v53  ;;  %v14366_v21 = vpack.c.bf16 %v13408_v13, %v13401_v12 }
 0x304   :  { %v7175_v29 = vadd.f32 %v7174_v25, %v7105_v10  ;;  %v7176_v31 = vpop.f32.mrb[95].mxu0  ;;  %14349 = vmatprep.subr.bf16.mxu1 %v14405_v47 }
 0x305   :  { %v7244_v48 = vpop.f32.mrb[94].mxu1  ;;  %v12487_v31 = vcombine.high %v12471_v26, %v12471_v26 }
 0x306   :  { %v7245_v36 = vadd.f32 %v7244_v48, %v7175_v29  ;;  %v13671_v38 = vpop.f32.mrb[95].mxu1 }
 0x308   :  { %v7248_v37 = vadd.f32 %v7245_v36, %v16643_v50  ;;  %12199 = vmatmul.mubr.f32.vlgmr.msra.gmra.mrb[148].mxu0 %v12095_v55  ;;  %v13407_v50 = vld [vmem:[%s16775_s3 + $0xdf0] sm:$0x3] }
 0x309   :  { %14348 = vmatpush1.bf16.xpose.msra.mxu0 %v14347_v16  ;;  %12338 = vmatprep.mubr.f32.mxu0 %v12116_v40  ;;  %v14361_v63 = vpack.c.bf16 %v13407_v50, %v13400_v49 }
 0x30a   :  { %12269 = vmatmul.mubr.f32.vlgmr.msra.gmra.mrb[148].mxu1 %v12117_v42  ;;  %14354 = vmatprep.subr.bf16.mxu0 %v14353_v39 }
 0x30b   :  { %v7403_v46 = vpop.f32.mrb[96].mxu0  ;;  %14352 = vmatpush3.bf16.xpose.msk.msra.mxu1 %vm14901_vm5, %v14350_v41  ;;  %13767 = vmatprep.mubr.msk.f32.mxu1 %vm14407_vm6, %v14402_v7 }
 0x30c   :  { %v7405_v52 = vpop.f32.mrb[97].mxu0  ;;  %14358 = vmatprep.subr.bf16.mxu1 %v14357_v43 }
 0x30d   :  { %v7473_v57 = vpop.f32.mrb[96].mxu1 }
 0x30e   :  { %v7474_v60 = vadd.f32 %v7473_v57, %v7403_v46  ;;  %v7475_v62 = vpop.f32.mrb[97].mxu1 }
 0x310   :  { %12339 = vmatmul.mubr.f32.vlgmr.msra.gmra.mrb[150].mxu0 %v12102_v19 }
 0x311   :  { %14356 = vmatpush1.bf16.xpose.msra.mxu0 %v14355_v58  ;;  %12567 = vmatprep.mubr.f32.mxu0 %v12478_v59 }
 0x312   :  { %13768 = vmatmul.mubr.msk.f32.vlgmr.msra.gmra.mrb[150].mxu1 %vm498_vm4, %v12118_v2  ;;  %14362 = vmatprep.subr.bf16.mxu0 %v14361_v63 }
 0x313   :  { %v7543_v6 = vpop.f32.mrb[98].mxu0  ;;  %14360 = vmatpush1.bf16.xpose.msra.mxu1 %v14359_v0  ;;  %12637 = vmatprep.mubr.f32.mxu1 %v12488_v3 }
 0x314   :  { %v7544_v9 = vadd.f32 %v7543_v6, %v7474_v60  ;;  %v7545_v10 = vpop.f32.mrb[99].mxu0  ;;  %14365 = vmatprep.subr.bf16.mxu1 %v14405_v47 }
 0x315   :  { %v7613_v14 = vpop.f32.mrb[98].mxu1 }
 0x316   :  { %v7614_v17 = vadd.f32 %v7613_v14, %v7544_v9  ;;  %v13678_v18 = vpop.f32.mrb[99].mxu1 }
 0x318   :  { %v7617_v23 = vadd.f32 %v7614_v17, %v7248_v37  ;;  %12568 = vmatmul.mubr.f32.vlgmr.msra.gmra.mrb[152].mxu0 %v12464_v11 }
 0x319   :  { %14364 = vmatpush1.bf16.xpose.msra.mxu0 %v14363_v15  ;;  %12707 = vmatprep.mubr.f32.mxu0 %v12485_v20 }
 0x31a   :  { %12638 = vmatmul.mubr.f32.vlgmr.msra.gmra.mrb[152].mxu1 %v12486_v24 }
 0x31b   :  { %v7772_v47 = vpop.f32.mrb[100].mxu0  ;;  %14368 = vmatpush3.bf16.xpose.msk.msra.mxu1 %vm14901_vm5, %v14366_v21  ;;  %13774 = vmatprep.mubr.msk.f32.mxu1 %vm14407_vm6, %v14402_v7 }
 0x31c   :  { %v7774_v25 = vpop.f32.mrb[101].mxu0 }
 0x31d   :  { %v7842_v27 = vpop.f32.mrb[100].mxu1 }
 0x31e   :  { %v7843_v28 = vadd.f32 %v7842_v27, %v7772_v47  ;;  %v7844_v29 = vpop.f32.mrb[101].mxu1 }
 0x320   :  { %12708 = vmatmul.mubr.f32.vlgmr.msra.gmra.mrb[154].mxu0 %v12471_v26 }
 0x322   :  { %13775 = vmatmul.mubr.msk.f32.vlgmr.msra.gmra.mrb[154].mxu1 %vm498_vm4, %v12487_v31 }
 0x323   :  { %v7912_v55 = vpop.f32.mrb[102].mxu0 }
 0x324   :  { %v7913_v32 = vadd.f32 %v7912_v55, %v7843_v28  ;;  %v7914_v33 = vpop.f32.mrb[103].mxu0 }
 0x325   :  { %v7982_v48 = vpop.f32.mrb[102].mxu1 }
 0x326   :  { %v7983_v16 = vadd.f32 %v7982_v48, %v7913_v32  ;;  %v13685_v22 = vpop.f32.mrb[103].mxu1 }
 0x328   :  { %v7986_v30 = vadd.f32 %v7983_v16, %v7617_v23 }
 0x32b   :  { %v8141_v34 = vpop.f32.mrb[104].mxu0 }
 0x32c   :  { %v8143_v35 = vpop.f32.mrb[105].mxu0 }
 0x32d   :  { %v8211_v7 = vpop.f32.mrb[104].mxu1 }
 0x32e   :  { %v8212_v36 = vadd.f32 %v8211_v7, %v8141_v34  ;;  %v8213_v38 = vpop.f32.mrb[105].mxu1 }
 0x333   :  { %v8281_v53 = vpop.f32.mrb[106].mxu0 }
 0x334   :  { %v8282_v39 = vadd.f32 %v8281_v53, %v8212_v36  ;;  %v8283_v40 = vpop.f32.mrb[107].mxu0 }
 0x335   :  { %v8351_v41 = vpop.f32.mrb[106].mxu1 }
 0x336   :  { %v8352_v37 = vadd.f32 %v8351_v41, %v8282_v39  ;;  %v13692_v42 = vpop.f32.mrb[107].mxu1 }
 0x338   :  { %v8355_v43 = vadd.f32 %v8352_v37, %v7986_v30 }
 0x33b   :  { %v8510_v44 = vpop.f32.mrb[108].mxu0 }
 0x33c   :  { %v8512_v61 = vpop.f32.mrb[109].mxu0 }
 0x33d   :  { %v8580_v45 = vpop.f32.mrb[108].mxu1 }
 0x33e   :  { %v8581_v46 = vadd.f32 %v8580_v45, %v8510_v44  ;;  %v8582_v49 = vpop.f32.mrb[109].mxu1 }
 0x343   :  { %v8650_v50 = vpop.f32.mrb[110].mxu0 }
 0x344   :  { %v8651_v51 = vadd.f32 %v8650_v50, %v8581_v46  ;;  %v8652_v52 = vpop.f32.mrb[111].mxu0 }
 0x345   :  { %v8720_v19 = vpop.f32.mrb[110].mxu1 }
 0x346   :  { %v8721_v54 = vadd.f32 %v8720_v19, %v8651_v51  ;;  %v13699_v56 = vpop.f32.mrb[111].mxu1 }
 0x348   :  { %v8724_v57 = vadd.f32 %v8721_v54, %v8355_v43 }
 0x34b   :  { %v8879_v58 = vpop.f32.mrb[112].mxu0 }
 0x34c   :  { %v8881_v59 = vpop.f32.mrb[113].mxu0 }
 0x34d   :  { %v8949_v60 = vpop.f32.mrb[112].mxu1 }
 0x34e   :  { %v8950_v62 = vadd.f32 %v8949_v60, %v8879_v58  ;;  %v8951_v63 = vpop.f32.mrb[113].mxu1 }
 0x353   :  { %v9019_v0 = vpop.f32.mrb[114].mxu0 }
 0x354   :  { %v9020_v1 = vadd.f32 %v9019_v0, %v8950_v62  ;;  %v9021_v2 = vpop.f32.mrb[115].mxu0 }
 0x355   :  { %v9089_v3 = vpop.f32.mrb[114].mxu1 }
 0x356   :  { %v9090_v4 = vadd.f32 %v9089_v3, %v9020_v1  ;;  %v13706_v5 = vpop.f32.mrb[115].mxu1 }
 0x358   :  { %v9093_v6 = vadd.f32 %v9090_v4, %v8724_v57 }
 0x35b   :  { %v9248_v8 = vpop.f32.mrb[116].mxu0 }
 0x35c   :  { %v9250_v9 = vpop.f32.mrb[117].mxu0 }
 0x35d   :  { %v9318_v10 = vpop.f32.mrb[116].mxu1 }
 0x35e   :  { %v9319_v11 = vadd.f32 %v9318_v10, %v9248_v8  ;;  %v9320_v12 = vpop.f32.mrb[117].mxu1 }
 0x363   :  { %v9388_v13 = vpop.f32.mrb[118].mxu0 }
 0x364   :  { %v9389_v14 = vadd.f32 %v9388_v13, %v9319_v11  ;;  %v9390_v15 = vpop.f32.mrb[119].mxu0 }
 0x365   :  { %v9458_v17 = vpop.f32.mrb[118].mxu1 }
 0x366   :  { %v9459_v18 = vadd.f32 %v9458_v17, %v9389_v14  ;;  %v13713_v20 = vpop.f32.mrb[119].mxu1 }
 0x368   :  { %v9462_v21 = vadd.f32 %v9459_v18, %v9093_v6 }
 0x36b   :  { %v9617_v23 = vpop.f32.mrb[120].mxu0 }
 0x36c   :  { %v9619_v24 = vpop.f32.mrb[121].mxu0 }
 0x36d   :  { %v9687_v47 = vpop.f32.mrb[120].mxu1 }
 0x36e   :  { %v9688_v25 = vadd.f32 %v9687_v47, %v9617_v23  ;;  %v9689_v26 = vpop.f32.mrb[121].mxu1 }
 0x373   :  { %v9757_v27 = vpop.f32.mrb[122].mxu0 }
 0x374   :  { %v9758_v28 = vadd.f32 %v9757_v27, %v9688_v25  ;;  %v9759_v29 = vpop.f32.mrb[123].mxu0 }
 0x375   :  { %v9827_v31 = vpop.f32.mrb[122].mxu1 }
 0x376   :  { %v9828_v55 = vadd.f32 %v9827_v31, %v9758_v28  ;;  %v13720_v32 = vpop.f32.mrb[123].mxu1 }
 0x378   :  { %v9831_v33 = vadd.f32 %v9828_v55, %v9462_v21 }
 0x37b   :  { %v9986_v48 = vpop.f32.mrb[124].mxu0 }
 0x37c   :  { %v9988_v16 = vpop.f32.mrb[125].mxu0 }
 0x37d   :  { %v10056_v22 = vpop.f32.mrb[124].mxu1 }
 0x37e   :  { %v10057_v30 = vadd.f32 %v10056_v22, %v9986_v48  ;;  %v10058_v34 = vpop.f32.mrb[125].mxu1 }
 0x383   :  { %v10126_v35 = vpop.f32.mrb[126].mxu0 }
 0x384   :  { %v10127_v7 = vadd.f32 %v10126_v35, %v10057_v30  ;;  %v10128_v36 = vpop.f32.mrb[127].mxu0 }
 0x385   :  { %v10196_v38 = vpop.f32.mrb[126].mxu1 }
 0x386   :  { %v10197_v53 = vadd.f32 %v10196_v38, %v10127_v7  ;;  %v13727_v39 = vpop.f32.mrb[127].mxu1 }
 0x388   :  { %v10200_v40 = vadd.f32 %v10197_v53, %v9831_v33 }
 0x38b   :  { %v10355_v41 = vpop.f32.mrb[128].mxu0 }
 0x38c   :  { %v10357_v37 = vpop.f32.mrb[129].mxu0 }
 0x38d   :  { %v10425_v42 = vpop.f32.mrb[128].mxu1 }
 0x38e   :  { %v10426_v43 = vadd.f32 %v10425_v42, %v10355_v41  ;;  %v10427_v44 = vpop.f32.mrb[129].mxu1 }
 0x393   :  { %v10495_v61 = vpop.f32.mrb[130].mxu0 }
 0x394   :  { %v10496_v45 = vadd.f32 %v10495_v61, %v10426_v43  ;;  %v10497_v46 = vpop.f32.mrb[131].mxu0 }
 0x395   :  { %v10565_v49 = vpop.f32.mrb[130].mxu1 }
 0x396   :  { %v10566_v50 = vadd.f32 %v10565_v49, %v10496_v45  ;;  %v13734_v51 = vpop.f32.mrb[131].mxu1 }
 0x398   :  { %v10569_v52 = vadd.f32 %v10566_v50, %v10200_v40 }
 0x39b   :  { %v10724_v19 = vpop.f32.mrb[132].mxu0 }
 0x39c   :  { %v10726_v54 = vpop.f32.mrb[133].mxu0 }
 0x39d   :  { %v10794_v56 = vpop.f32.mrb[132].mxu1 }
 0x39e   :  { %v10795_v57 = vadd.f32 %v10794_v56, %v10724_v19  ;;  %v10796_v58 = vpop.f32.mrb[133].mxu1 }
 0x3a3   :  { %v10864_v59 = vpop.f32.mrb[134].mxu0 }
 0x3a4   :  { %v10865_v60 = vadd.f32 %v10864_v59, %v10795_v57  ;;  %v10866_v62 = vpop.f32.mrb[135].mxu0 }
 0x3a5   :  { %v10934_v63 = vpop.f32.mrb[134].mxu1  ;;  %v13412_v62 = vld [vmem:[%s16776_s4] ss:$0 sm:$0xff] }
 0x3a6   :  { %v10935_v0 = vadd.f32 %v10934_v63, %v10865_v60  ;;  %v13741_v1 = vpop.f32.mrb[135].mxu1 }
 0x3a8   :  { %v10938_v2 = vadd.f32 %v10935_v0, %v10569_v52 }
 0x3ab   :  { %v11093_v3 = vpop.f32.mrb[136].mxu0 }
 0x3ac   :  { %v11095_v4 = vpop.f32.mrb[137].mxu0 }
 0x3ad   :  { %v11163_v5 = vpop.f32.mrb[136].mxu1 }
 0x3ae   :  { %v11164_v6 = vadd.f32 %v11163_v5, %v11093_v3  ;;  %v11165_v8 = vpop.f32.mrb[137].mxu1 }
 0x3b3   :  { %v11233_v9 = vpop.f32.mrb[138].mxu0 }
 0x3b4   :  { %v11234_v10 = vadd.f32 %v11233_v9, %v11164_v6  ;;  %v11235_v11 = vpop.f32.mrb[139].mxu0 }
 0x3b5   :  { %v11303_v12 = vpop.f32.mrb[138].mxu1 }
 0x3b6   :  { %v11304_v13 = vadd.f32 %v11303_v12, %v11234_v10  ;;  %v13748_v14 = vpop.f32.mrb[139].mxu1 }
 0x3b8   :  { %v11307_v15 = vadd.f32 %v11304_v13, %v10938_v2 }
 0x3bb   :  { %v11462_v17 = vpop.f32.mrb[140].mxu0 }
 0x3bc   :  { %v11464_v18 = vpop.f32.mrb[141].mxu0 }
 0x3bd   :  { %v11532_v20 = vpop.f32.mrb[140].mxu1 }
 0x3be   :  { %v11533_v21 = vadd.f32 %v11532_v20, %v11462_v17  ;;  %v11534_v23 = vpop.f32.mrb[141].mxu1 }
 0x3c3   :  { %v11602_v24 = vpop.f32.mrb[142].mxu0 }
 0x3c4   :  { %v11603_v47 = vadd.f32 %v11602_v24, %v11533_v21  ;;  %v11604_v25 = vpop.f32.mrb[143].mxu0 }
 0x3c5   :  { %v11672_v26 = vpop.f32.mrb[142].mxu1 }
 0x3c6   :  { %v11673_v27 = vadd.f32 %v11672_v26, %v11603_v47  ;;  %v13755_v28 = vpop.f32.mrb[143].mxu1 }
 0x3c8   :  { %v11676_v29 = vadd.f32 %v11673_v27, %v11307_v15 }
 0x3cb   :  { %v11831_v31 = vpop.f32.mrb[144].mxu0 }
 0x3cc   :  { %v11833_v55 = vpop.f32.mrb[145].mxu0 }
 0x3cd   :  { %v11901_v32 = vpop.f32.mrb[144].mxu1 }
 0x3ce   :  { %v11902_v33 = vadd.f32 %v11901_v32, %v11831_v31  ;;  %v11903_v48 = vpop.f32.mrb[145].mxu1 }
 0x3d3   :  { %v11971_v16 = vpop.f32.mrb[146].mxu0 }
 0x3d4   :  { %v11972_v22 = vadd.f32 %v11971_v16, %v11902_v33  ;;  %v11973_v30 = vpop.f32.mrb[147].mxu0 }
 0x3d5   :  { %v12041_v34 = vpop.f32.mrb[146].mxu1 }
 0x3d6   :  { %v12042_v35 = vadd.f32 %v12041_v34, %v11972_v22  ;;  %v13762_v7 = vpop.f32.mrb[147].mxu1 }
 0x3d8   :  { %v12045_v36 = vadd.f32 %v12042_v35, %v11676_v29 }
 0x3db   :  { %v12200_v38 = vpop.f32.mrb[148].mxu0 }
 0x3dc   :  { %v12202_v53 = vpop.f32.mrb[149].mxu0 }
 0x3dd   :  { %v12270_v39 = vpop.f32.mrb[148].mxu1 }
 0x3de   :  { %v12271_v40 = vadd.f32 %v12270_v39, %v12200_v38  ;;  %v12272_v41 = vpop.f32.mrb[149].mxu1 }
 0x3e3   :  { %v12340_v37 = vpop.f32.mrb[150].mxu0 }
 0x3e4   :  { %v12341_v42 = vadd.f32 %v12340_v37, %v12271_v40  ;;  %v12342_v43 = vpop.f32.mrb[151].mxu0 }
 0x3e5   :  { %v12410_v44 = vpop.f32.mrb[150].mxu1 }
 0x3e6   :  { %v12411_v61 = vadd.f32 %v12410_v44, %v12341_v42  ;;  %v13769_v45 = vpop.f32.mrb[151].mxu1 }
 0x3e8   :  { %v12414_v46 = vadd.f32 %v12411_v61, %v12045_v36 }
 0x3eb   :  { %v12569_v49 = vpop.f32.mrb[152].mxu0 }
 0x3ec   :  { %v12571_v50 = vpop.f32.mrb[153].mxu0 }
 0x3ed   :  { %v12639_v51 = vpop.f32.mrb[152].mxu1 }
 0x3ee   :  { %v12640_v52 = vadd.f32 %v12639_v51, %v12569_v49  ;;  %v12641_v19 = vpop.f32.mrb[153].mxu1 }
 0x3f3   :  { %v12709_v54 = vpop.f32.mrb[154].mxu0 }
 0x3f4   :  { %v12710_v56 = vadd.f32 %v12709_v54, %v12640_v52  ;;  %v12711_v57 = vpop.f32.mrb[155].mxu0 }
 0x3f5   :  { %v12779_v58 = vpop.f32.mrb[154].mxu1 }
 0x3f6   :  { %v12780_v59 = vadd.f32 %v12779_v58, %v12710_v56  ;;  %v13776_v60 = vpop.f32.mrb[155].mxu1 }
 0x3f8   :  { %v12783_v63 = vadd.f32 %v12780_v59, %v12414_v46 }
 0x3fa   :  { %v12791_v0 = vadd.f32 %v13412_v62, %v12783_v63 }
 0x3fc   :  { %12793 = vst.msk [vmem:[#allocation3] sm:$0x3] %vm12792_vm7, %v12791_v0 }
 0x3fd   :  { %14389 = shalt.err (!%p14386_p4)
}
 0x3fe   :  { %s14390_s22 = scalar_lea.hbm %s16777_s5, 32 }
 0x3ff   :  { %p14391_p5 = scmp.ne.s32.totalorder %s16777_s5, %s14390_s22  ;;  %p14394_p6 = scmp.lt.u32.totalorder %s14390_s22, %s16777_s5 }
 0x401   :  { %p14396_p7 = pnand %p14394_p6, %p14391_p5 }
 0x403   :  { %14399 = shalt.err (!%p14396_p7)
}
 0x404   :  { %12803 = dma.vmem_to_hbm [thread:$0]  %s12801_s18, 32, %s16777_s5, [#allocation4]  }
 0x405   :  { %14400 = dma.done.wait [#allocation4], 32  }
 0x406   :  { %14401 = vsyncadd [#allocation4], 4294967264 }
 0x407   :  { %12807 = vsyncpa [#allocation4], 1 }

</bundles_post_ra>
